<compile_context>
chip_gen: v5e
topology: v5e:2x2
jax: 0.10.0
libtpu: 0.0.40
codegen_flags: <defaults>
</compile_context>

<pallas_src>
import functools

import jax
import jax.numpy as jnp
from jax import lax
from jax.experimental import pallas as pl
from jax.experimental.pallas import tpu as pltpu


# ---------------------------------------------------------------------------
# Parameter packing: raw per-direction PyTorch-style weights -> fused layout.
# Gate column blocks (each H wide): [i_f, i_b, f_f, f_b, g_f, g_b, o_f, o_b].
# ---------------------------------------------------------------------------
def _place_gate_cols(w, direction, hidden):
    """w: (rows, 4H) with gate order [i,f,g,o] -> (rows, 8H) in interleaved layout."""
    h = hidden
    rows = w.shape[0]
    w4 = w.reshape(rows, 4, h)
    out = jnp.zeros((rows, 4, 2, h), w.dtype)
    out = out.at[:, :, direction, :].set(w4)
    return out.reshape(rows, 8 * h)


def pack_bidir_lstm(layers_raw, hidden):
    """Pack raw ((wih_f, whh_f, b_f), (wih_b, whh_b, b_b)) per layer into the
    fused block-structured matrices consumed by the Pallas kernel."""
    h = hidden
    packed = []
    for layer_idx, ((wih_f, whh_f, b_f), (wih_b, whh_b, b_b)) in enumerate(layers_raw):
        if layer_idx == 0:
            # Layer-0 input row layout: [x(t) (D0) | x(S-1-t) (D0)].
            wih = jnp.concatenate([_place_gate_cols(wih_f, 0, h),
                                   _place_gate_cols(wih_b, 1, h)], axis=0)
            pad_k = (-wih.shape[0]) % 8          # keep contraction dim 8-aligned
            if pad_k:
                wih = jnp.pad(wih, ((0, pad_k), (0, 0)))
        else:
            # Layer>=1 input rows follow the io-scratch layout
            #   [A=h_f(t), B=h_b(S-1-t), C=h_f(S-1-t), D=h_b(t)]  (each H wide).
            pf = _place_gate_cols(wih_f, 0, h)   # rows: [mult. h_f(t); mult. h_b(t)] -> fwd gates
            pb = _place_gate_cols(wih_b, 1, h)   # rows: [mult. h_f(tau); mult. h_b(tau)] -> bwd gates
            wih = jnp.concatenate([pf[0:h],        # A -> fwd gates
                                   pb[h:2 * h],    # B -> bwd gates
                                   pb[0:h],        # C -> bwd gates
                                   pf[h:2 * h]],   # D -> fwd gates
                                  axis=0)          # (4H, 8H)
        whh = jnp.concatenate([_place_gate_cols(whh_f, 0, h),
                               _place_gate_cols(whh_b, 1, h)], axis=0)   # (2H, 8H) block-diag
        bias = (_place_gate_cols(b_f.reshape(1, 4 * h), 0, h)
                + _place_gate_cols(b_b.reshape(1, 4 * h), 1, h))          # (1, 8H)
        packed.append((wih, whh, bias))
    return packed


# ---------------------------------------------------------------------------
# Fused bidirectional multi-layer LSTM kernel.
# ---------------------------------------------------------------------------
def _encoder_lstm_kernel(*refs, num_layers, seq_len, batch, hidden):
    S, Bp, H = seq_len, batch, hidden
    n_in = 1 + 3 * num_layers
    x_ref = refs[0]                               # (S*Bp, K0)  augmented layer-0 input
    w_refs = refs[1:n_in]                         # per layer: wih, whh, bias
    hid_ref, cell_ref = refs[n_in], refs[n_in + 1]
    xproj_ref, io_ref, h_ref, c_ref = refs[n_in + 2:n_in + 6]

    # Lane mask selecting the cell-candidate ("g") gate blocks (blocks 4,5).
    lane = lax.broadcasted_iota(jnp.int32, (Bp, 8 * H), 1)
    g_mask = (lane >= 4 * H) & (lane < 6 * H)

    for layer in range(num_layers):               # static unroll over layers
        wih_ref = w_refs[3 * layer]
        whh_ref = w_refs[3 * layer + 1]
        b_ref = w_refs[3 * layer + 2]

        # -- whole-sequence input projection: one big MXU matmul -------------
        xin = x_ref[...] if layer == 0 else io_ref[...]
        xproj_ref[...] = jnp.dot(xin, wih_ref[...],
                                 preferred_element_type=jnp.float32)

        # loop invariants hoisted out of the recurrent loop
        whh = whh_ref[...]                        # (2H, 8H)
        bias = b_ref[...]                         # (1, 8H)

        h_ref[...] = jnp.zeros_like(h_ref)        # [h_fwd | h_bwd]
        c_ref[...] = jnp.zeros_like(c_ref)
        write_seq = layer < num_layers - 1        # last layer needs only final states

        def step(i, carry):
            row_f = pl.multiple_of(i * Bp, 8)
            gates = (xproj_ref[pl.ds(row_f, Bp), :]
                     + jnp.dot(h_ref[...], whh, preferred_element_type=jnp.float32)
                     + bias)                                        # (Bp, 8H)
            # Full-width nonlinearities, tanh only on the g-gate lanes.
            act = jnp.where(g_mask, jnp.tanh(gates), jax.nn.sigmoid(gates))
            i_g = act[:, 0:2 * H]
            f_g = act[:, 2 * H:4 * H]
            g_g = act[:, 4 * H:6 * H]
            o_g = act[:, 6 * H:8 * H]
            c_new = f_g * c_ref[...] + i_g * g_g                    # (Bp, 2H)
            h_new = o_g * jnp.tanh(c_new)
            c_ref[...] = c_new
            h_ref[...] = h_new
            if write_seq:
                # io layout per row t: [h_f(t), h_b(S-1-t), h_f(S-1-t), h_b(t)]
                row_b = pl.multiple_of((S - 1 - i) * Bp, 8)
                io_ref[pl.ds(row_f, Bp), 0:2 * H] = h_new
                io_ref[pl.ds(row_b, Bp), 2 * H:4 * H] = h_new
            return carry

        lax.fori_loop(0, S, step, 0, unroll=True if S <= 16 else 4)

        # final states: h = [h_f(S-1) | h_b(0)] — matches PyTorch ordering.
        hfin = h_ref[...]
        cfin = c_ref[...]
        hid_ref[2 * layer] = hfin[:, 0:H]
        hid_ref[2 * layer + 1] = hfin[:, H:2 * H]
        cell_ref[2 * layer] = cfin[:, 0:H]
        cell_ref[2 * layer + 1] = cfin[:, H:2 * H]


# ---------------------------------------------------------------------------
# Forward pass (embedding glue + single fused pallas_call).
# ---------------------------------------------------------------------------
def encoder_forward(params, x):
    """x: (B, S, F) float32, F = 2 + input_size. Returns (hidden, cell)."""
    layers_packed = params["lstm_packed"]
    num_layers = len(layers_packed)
    H = layers_packed[0][1].shape[0] // 2         # whh is (2H, 8H)
    B, S, _ = x.shape

    loc_idx = jnp.clip(x[:, :, 0].astype(jnp.int32), 0, params["loc_emb"].shape[0] - 1)
    time_idx = jnp.clip(x[:, :, 1].astype(jnp.int32), 0, params["time_emb"].shape[0] - 1)
    emb_loc = jnp.take(params["loc_emb"], loc_idx, axis=0)
    emb_time = jnp.take(params["time_emb"], time_idx, axis=0)
    feats = jnp.concatenate([emb_loc, emb_time, x[:, :, 2:]], axis=2)   # (B, S, D0)
    feats = jnp.transpose(feats, (1, 0, 2))                             # (S, B, D0)

    # Pad batch to a multiple of 8 sublanes (free MXU/vreg rows).
    Bp = -(-B // 8) * 8
    if Bp != B:
        feats = jnp.pad(feats, ((0, 0), (0, Bp - B), (0, 0)))

    # Augmented input [x(t) | x(S-1-t)] for the block-structured layer-0 W_ih.
    x_aug = jnp.concatenate([feats, feats[::-1]], axis=-1)              # (S, Bp, 2*D0)
    pad_k = (-x_aug.shape[-1]) % 8
    if pad_k:
        x_aug = jnp.pad(x_aug, ((0, 0), (0, 0), (0, pad_k)))
    x_aug = x_aug.reshape(S * Bp, x_aug.shape[-1])

    flat_w = []
    for (wih, whh, b) in layers_packed:
        flat_w += [wih, whh, b]

    kernel = functools.partial(_encoder_lstm_kernel, num_layers=num_layers,
                               seq_len=S, batch=Bp, hidden=H)
    vmem = pl.BlockSpec(memory_space=pltpu.MemorySpace.VMEM)
    hidden_out, cell_out = pl.pallas_call(
        kernel,
        out_shape=(jax.ShapeDtypeStruct((2 * num_layers, Bp, H), jnp.float32),
                   jax.ShapeDtypeStruct((2 * num_layers, Bp, H), jnp.float32)),
        in_specs=[vmem] * (1 + 3 * num_layers),
        out_specs=(vmem, vmem),
        scratch_shapes=[pltpu.VMEM((S * Bp, 8 * H), jnp.float32),   # per-layer input projection
                        pltpu.VMEM((S * Bp, 4 * H), jnp.float32),   # layer output + reversed copy
                        pltpu.VMEM((Bp, 2 * H), jnp.float32),       # [h_fwd | h_bwd]
                        pltpu.VMEM((Bp, 2 * H), jnp.float32)],      # [c_fwd | c_bwd]
        compiler_params=pltpu.CompilerParams(vmem_limit_bytes=32 * 1024 * 1024),
    )(x_aug, *flat_w)
    return hidden_out[:, :B, :], cell_out[:, :B, :]


# ---------------------------------------------------------------------------
# Pure-JAX reference (PyTorch bidirectional-LSTM semantics) for verification.
# ---------------------------------------------------------------------------
def encoder_reference(params, x):
    H = params["lstm_raw"][0][0][1].shape[0]
    loc_idx = jnp.clip(x[:, :, 0].astype(jnp.int32), 0, params["loc_emb"].shape[0] - 1)
    time_idx = jnp.clip(x[:, :, 1].astype(jnp.int32), 0, params["time_emb"].shape[0] - 1)
    emb_loc = jnp.take(params["loc_emb"], loc_idx, axis=0)
    emb_time = jnp.take(params["time_emb"], time_idx, axis=0)
    feats = jnp.concatenate([emb_loc, emb_time, x[:, :, 2:]], axis=2)
    layer_in = jnp.transpose(feats, (1, 0, 2))    # (S, B, D)

    def run_dir(xs, wih, whh, b, reverse):
        bb = xs.shape[1]
        h0 = jnp.zeros((bb, H), jnp.float32)
        c0 = jnp.zeros((bb, H), jnp.float32)

        def cell(carry, x_t):
            h, c = carry
            g = jnp.dot(x_t, wih) + jnp.dot(h, whh) + b
            i = jax.nn.sigmoid(g[:, 0:H])
            f = jax.nn.sigmoid(g[:, H:2 * H])
            gg = jnp.tanh(g[:, 2 * H:3 * H])
            o = jax.nn.sigmoid(g[:, 3 * H:4 * H])
            c = f * c + i * gg
            h = o * jnp.tanh(c)
            return (h, c), h

        seq = xs[::-1] if reverse else xs
        (h, c), out = lax.scan(cell, (h0, c0), seq)
        out = out[::-1] if reverse else out
        return out, h, c

    hs, cs = [], []
    for (fwd, bwd) in params["lstm_raw"]:
        outs = []
        for d, (wih, whh, b) in enumerate((fwd, bwd)):
            out, h, c = run_dir(layer_in, wih, whh, b, d == 1)
            outs.append(out)
            hs.append(h)
            cs.append(c)
        layer_in = jnp.concatenate(outs, axis=-1)
    return jnp.stack(hs, axis=0), jnp.stack(cs, axis=0)


# ---------------------------------------------------------------------------
# Synthetic parameters matching nn.Embedding / nn.LSTM shapes.
# ---------------------------------------------------------------------------
def init_encoder_params(key, input_size, hidden_size, num_layers,
                        loc_embedding_dim, loc_vocab_size,
                        time_embedding_dim, time_vocab_size):
    k = key

    def nxt():
        nonlocal k
        k, sub = jax.random.split(k)
        return sub

    params = {
        "loc_emb": jax.random.normal(nxt(), (loc_vocab_size, loc_embedding_dim),
                                     jnp.float32) * 0.1,
        "time_emb": jax.random.normal(nxt(), (time_vocab_size, time_embedding_dim),
                                      jnp.float32) * 0.1,
    }
    in0 = input_size + loc_embedding_dim + time_embedding_dim
    scale = 1.0 / float(hidden_size) ** 0.5
    layers = []
    for layer in range(num_layers):
        din = in0 if layer == 0 else 2 * hidden_size
        dirs = []
        for _direction in range(2):
            # Stored pre-transposed: (D_in, 4H) / (H, 4H), gate order [i,f,g,o].
            w_ih = jax.random.uniform(nxt(), (din, 4 * hidden_size), jnp.float32,
                                      -scale, scale)
            w_hh = jax.random.uniform(nxt(), (hidden_size, 4 * hidden_size), jnp.float32,
                                      -scale, scale)
            b_ih = jax.random.uniform(nxt(), (4 * hidden_size,), jnp.float32,
                                      -scale, scale)
            b_hh = jax.random.uniform(nxt(), (4 * hidden_size,), jnp.float32,
                                      -scale, scale)
            dirs.append((w_ih, w_hh, b_ih + b_hh))
        layers.append(tuple(dirs))
    params["lstm_raw"] = layers
    params["lstm_packed"] = pack_bidir_lstm(layers, hidden_size)
    return params


if __name__ == "__main__":
    input_size = 4          # continuous features (x[:, :, 2:])
    hidden_size = 32
    num_layers = 2
    loc_embedding_dim = 8
    loc_vocab_size = 16
    time_embedding_dim = 8
    time_vocab_size = 24
    B, S = 2, 8
    F = 2 + input_size      # [loc idx, time idx, 4 continuous]

    key = jax.random.PRNGKey(0)
    kp, kx, kl, kt = jax.random.split(key, 4)

    params = init_encoder_params(kp, input_size, hidden_size, num_layers,
                                 loc_embedding_dim, loc_vocab_size,
                                 time_embedding_dim, time_vocab_size)

    cont = jax.random.normal(kx, (B, S, input_size), jnp.float32)
    loc = jax.random.randint(kl, (B, S, 1), 0, loc_vocab_size).astype(jnp.float32)
    tim = jax.random.randint(kt, (B, S, 1), 0, time_vocab_size).astype(jnp.float32)
    x = jnp.concatenate([loc, tim, cont], axis=2)   # (B, S, F) float32 like the torch input

    hidden, cell = jax.jit(encoder_forward)(params, x)
    jax.block_until_ready((hidden, cell))
    assert hidden.shape == (num_layers * 2, B, hidden_size)
    assert cell.shape == (num_layers * 2, B, hidden_size)

    # Verify against the pure-JAX reference (loose tolerance: MXU vs XLA matmul precision).
    h_ref, c_ref = encoder_reference(params, x)
    jax.block_until_ready((h_ref, c_ref))
    assert float(jnp.max(jnp.abs(hidden - h_ref))) < 5e-2
    assert float(jnp.max(jnp.abs(cell - c_ref))) < 5e-2

    print("KERNEL_OK")
</pallas_src>

<mosaic_0001>
module attributes {stable_mosaic.version = 11 : i64} {
  func.func @_encoder_lstm_kernel(%arg0: memref<64x40xf32, #tpu.memory_space<vmem>>, %arg1: memref<40x256xf32, #tpu.memory_space<vmem>>, %arg2: memref<64x256xf32, #tpu.memory_space<vmem>>, %arg3: memref<1x256xf32, #tpu.memory_space<vmem>>, %arg4: memref<128x256xf32, #tpu.memory_space<vmem>>, %arg5: memref<64x256xf32, #tpu.memory_space<vmem>>, %arg6: memref<1x256xf32, #tpu.memory_space<vmem>>, %arg7: memref<4x8x32xf32, #tpu.memory_space<vmem>>, %arg8: memref<4x8x32xf32, #tpu.memory_space<vmem>>, %arg9: memref<64x256xf32, #tpu.memory_space<vmem>>, %arg10: memref<64x128xf32, #tpu.memory_space<vmem>>, %arg11: memref<8x64xf32, #tpu.memory_space<vmem>>, %arg12: memref<8x64xf32, #tpu.memory_space<vmem>>) attributes {dimension_semantics = [], scalar_prefetch = 0 : i64, scratch_operands = 4 : i64, tpu.core_type = #tpu.core_type<tc>} {
    %0 = tpu.iota {dimensions = array<i32: 1>} : vector<8x256xi32>
    %c128_i32 = arith.constant 128 : i32
    %1 = vector.broadcast %c128_i32 : i32 to vector<8x256xi32>
    %2 = arith.cmpi sge, %0, %1 : vector<8x256xi32>
    %c192_i32 = arith.constant 192 : i32
    %3 = vector.broadcast %c192_i32 : i32 to vector<8x256xi32>
    %4 = arith.cmpi slt, %0, %3 : vector<8x256xi32>
    %5 = arith.andi %2, %4 : vector<8x256xi1>
    %c0 = arith.constant 0 : index
    %c0_0 = arith.constant 0 : index
    %6 = vector.load %arg0[%c0, %c0_0] : memref<64x40xf32, #tpu.memory_space<vmem>>, vector<64x40xf32>
    %c0_1 = arith.constant 0 : index
    %c0_2 = arith.constant 0 : index
    %7 = vector.load %arg1[%c0_1, %c0_2] : memref<40x256xf32, #tpu.memory_space<vmem>>, vector<40x256xf32>
    %cst = arith.constant dense<0.000000e+00> : vector<64x256xf32>
    %8 = tpu.matmul %6, %7, %cst {dimension_numbers = #tpu.dot_dimension_numbers<[1], [0], [0], [1], [0, 0, 1, 1], [], []>} : vector<64x40xf32>, vector<40x256xf32>, vector<64x256xf32> -> vector<64x256xf32>
    %c0_3 = arith.constant 0 : index
    %c0_4 = arith.constant 0 : index
    %9 = vector.load %arg9[%c0_3, %c0_4] : memref<64x256xf32, #tpu.memory_space<vmem>>, vector<64x256xf32>
    tpu.vector_store %arg9[%c0_3, %c0_4], %8 {strides = array<i32>} : memref<64x256xf32, #tpu.memory_space<vmem>>, vector<64x256xf32>,
    %c0_5 = arith.constant 0 : index
    %c0_6 = arith.constant 0 : index
    %10 = vector.load %arg2[%c0_5, %c0_6] : memref<64x256xf32, #tpu.memory_space<vmem>>, vector<64x256xf32>
    %c0_7 = arith.constant 0 : index
    %c0_8 = arith.constant 0 : index
    %11 = vector.load %arg3[%c0_7, %c0_8] : memref<1x256xf32, #tpu.memory_space<vmem>>, vector<1x256xf32>
    %cst_9 = arith.constant 0.000000e+00 : f32
    %12 = vector.broadcast %cst_9 : f32 to vector<8x64xf32>
    %c0_10 = arith.constant 0 : index
    %c0_11 = arith.constant 0 : index
    %13 = vector.load %arg11[%c0_10, %c0_11] : memref<8x64xf32, #tpu.memory_space<vmem>>, vector<8x64xf32>
    tpu.vector_store %arg11[%c0_10, %c0_11], %12 {strides = array<i32>} : memref<8x64xf32, #tpu.memory_space<vmem>>, vector<8x64xf32>,
    %cst_12 = arith.constant 0.000000e+00 : f32
    %14 = vector.broadcast %cst_12 : f32 to vector<8x64xf32>
    %c0_13 = arith.constant 0 : index
    %c0_14 = arith.constant 0 : index
    %15 = vector.load %arg12[%c0_13, %c0_14] : memref<8x64xf32, #tpu.memory_space<vmem>>, vector<8x64xf32>
    tpu.vector_store %arg12[%c0_13, %c0_14], %14 {strides = array<i32>} : memref<8x64xf32, #tpu.memory_space<vmem>>, vector<8x64xf32>,
    %c0_i32 = arith.constant 0 : i32
    %c8_i32 = arith.constant 8 : i32
    %16 = arith.muli %c0_i32, %c8_i32 : i32
    %17 = tpu.assume_multiple %16, 8 : i32
    %18 = arith.index_cast %17 : i32 to index
    %c0_15 = arith.constant 0 : index
    %19 = vector.load %arg9[%18, %c0_15] : memref<64x256xf32, #tpu.memory_space<vmem>>, vector<8x256xf32>
    %c0_16 = arith.constant 0 : index
    %c0_17 = arith.constant 0 : index
    %20 = vector.load %arg11[%c0_16, %c0_17] : memref<8x64xf32, #tpu.memory_space<vmem>>, vector<8x64xf32>
    %cst_18 = arith.constant dense<0.000000e+00> : vector<8x256xf32>
    %21 = tpu.matmul %20, %10, %cst_18 {dimension_numbers = #tpu.dot_dimension_numbers<[1], [0], [0], [1], [0, 0, 1, 1], [], []>} : vector<8x64xf32>, vector<64x256xf32>, vector<8x256xf32> -> vector<8x256xf32>
    %22 = arith.addf %19, %21 : vector<8x256xf32>
    %23 = vector.broadcast %11 : vector<1x256xf32> to vector<8x256xf32>
    %24 = arith.addf %22, %23 : vector<8x256xf32>
    %25 = math.tanh %24 : vector<8x256xf32>
    %26 = arith.negf %24 : vector<8x256xf32>
    %27 = math.exp %26 : vector<8x256xf32>
    %cst_19 = arith.constant 1.000000e+00 : f32
    %28 = vector.broadcast %cst_19 : f32 to vector<8x256xf32>
    %29 = arith.addf %28, %27 : vector<8x256xf32>
    %30 = arith.divf %28, %29 : vector<8x256xf32>
    %31 = arith.select %5, %25, %30 : vector<8x256xi1>, vector<8x256xf32>
    %32 = vector.extract_strided_slice %31 {offsets = [0, 0], sizes = [8, 64], strides = [1, 1]} : vector<8x256xf32> to vector<8x64xf32>
    %33 = vector.extract_strided_slice %31 {offsets = [0, 64], sizes = [8, 64], strides = [1, 1]} : vector<8x256xf32> to vector<8x64xf32>
    %34 = vector.extract_strided_slice %31 {offsets = [0, 128], sizes = [8, 64], strides = [1, 1]} : vector<8x256xf32> to vector<8x64xf32>
    %35 = vector.extract_strided_slice %31 {offsets = [0, 192], sizes = [8, 64], strides = [1, 1]} : vector<8x256xf32> to vector<8x64xf32>
    %c0_20 = arith.constant 0 : index
    %c0_21 = arith.constant 0 : index
    %36 = vector.load %arg12[%c0_20, %c0_21] : memref<8x64xf32, #tpu.memory_space<vmem>>, vector<8x64xf32>
    %37 = arith.mulf %33, %36 : vector<8x64xf32>
    %38 = arith.mulf %32, %34 : vector<8x64xf32>
    %39 = arith.addf %37, %38 : vector<8x64xf32>
    %40 = math.tanh %39 : vector<8x64xf32>
    %41 = arith.mulf %35, %40 : vector<8x64xf32>
    %c0_22 = arith.constant 0 : index
    %c0_23 = arith.constant 0 : index
    %42 = vector.load %arg12[%c0_22, %c0_23] : memref<8x64xf32, #tpu.memory_space<vmem>>, vector<8x64xf32>
    tpu.vector_store %arg12[%c0_22, %c0_23], %39 {strides = array<i32>} : memref<8x64xf32, #tpu.memory_space<vmem>>, vector<8x64xf32>,
    %c0_24 = arith.constant 0 : index
    %c0_25 = arith.constant 0 : index
    %43 = vector.load %arg11[%c0_24, %c0_25] : memref<8x64xf32, #tpu.memory_space<vmem>>, vector<8x64xf32>
    tpu.vector_store %arg11[%c0_24, %c0_25], %41 {strides = array<i32>} : memref<8x64xf32, #tpu.memory_space<vmem>>, vector<8x64xf32>,
    %c7_i32 = arith.constant 7 : i32
    %44 = arith.subi %c7_i32, %c0_i32 : i32
    %c8_i32_26 = arith.constant 8 : i32
    %45 = arith.muli %44, %c8_i32_26 : i32
    %46 = tpu.assume_multiple %45, 8 : i32
    %47 = arith.index_cast %17 : i32 to index
    %c0_27 = arith.constant 0 : index
    %48 = vector.load %arg10[%47, %c0_27] : memref<64x128xf32, #tpu.memory_space<vmem>>, vector<8x64xf32>
    tpu.vector_store %arg10[%47, %c0_27], %41 {strides = array<i32>} : memref<64x128xf32, #tpu.memory_space<vmem>>, vector<8x64xf32>,
    %49 = arith.index_cast %46 : i32 to index
    %c64 = arith.constant 64 : index
    %50 = vector.load %arg10[%49, %c64] : memref<64x128xf32, #tpu.memory_space<vmem>>, vector<8x64xf32>
    tpu.vector_store %arg10[%49, %c64], %41 {strides = array<i32>} : memref<64x128xf32, #tpu.memory_space<vmem>>, vector<8x64xf32>,
    %c1_i32 = arith.constant 1 : i32
    %c8_i32_28 = arith.constant 8 : i32
    %51 = arith.muli %c1_i32, %c8_i32_28 : i32
    %52 = tpu.assume_multiple %51, 8 : i32
    %53 = arith.index_cast %52 : i32 to index
    %c0_29 = arith.constant 0 : index
    %54 = vector.load %arg9[%53, %c0_29] : memref<64x256xf32, #tpu.memory_space<vmem>>, vector<8x256xf32>
    %c0_30 = arith.constant 0 : index
    %c0_31 = arith.constant 0 : index
    %55 = vector.load %arg11[%c0_30, %c0_31] : memref<8x64xf32, #tpu.memory_space<vmem>>, vector<8x64xf32>
    %cst_32 = arith.constant dense<0.000000e+00> : vector<8x256xf32>
    %56 = tpu.matmul %55, %10, %cst_32 {dimension_numbers = #tpu.dot_dimension_numbers<[1], [0], [0], [1], [0, 0, 1, 1], [], []>} : vector<8x64xf32>, vector<64x256xf32>, vector<8x256xf32> -> vector<8x256xf32>
    %57 = arith.addf %54, %56 : vector<8x256xf32>
    %58 = vector.broadcast %11 : vector<1x256xf32> to vector<8x256xf32>
    %59 = arith.addf %57, %58 : vector<8x256xf32>
    %60 = math.tanh %59 : vector<8x256xf32>
    %61 = arith.negf %59 : vector<8x256xf32>
    %62 = math.exp %61 : vector<8x256xf32>
    %cst_33 = arith.constant 1.000000e+00 : f32
    %63 = vector.broadcast %cst_33 : f32 to vector<8x256xf32>
    %64 = arith.addf %63, %62 : vector<8x256xf32>
    %65 = arith.divf %63, %64 : vector<8x256xf32>
    %66 = arith.select %5, %60, %65 : vector<8x256xi1>, vector<8x256xf32>
    %67 = vector.extract_strided_slice %66 {offsets = [0, 0], sizes = [8, 64], strides = [1, 1]} : vector<8x256xf32> to vector<8x64xf32>
    %68 = vector.extract_strided_slice %66 {offsets = [0, 64], sizes = [8, 64], strides = [1, 1]} : vector<8x256xf32> to vector<8x64xf32>
    %69 = vector.extract_strided_slice %66 {offsets = [0, 128], sizes = [8, 64], strides = [1, 1]} : vector<8x256xf32> to vector<8x64xf32>
    %70 = vector.extract_strided_slice %66 {offsets = [0, 192], sizes = [8, 64], strides = [1, 1]} : vector<8x256xf32> to vector<8x64xf32>
    %c0_34 = arith.constant 0 : index
    %c0_35 = arith.constant 0 : index
    %71 = vector.load %arg12[%c0_34, %c0_35] : memref<8x64xf32, #tpu.memory_space<vmem>>, vector<8x64xf32>
    %72 = arith.mulf %68, %71 : vector<8x64xf32>
    %73 = arith.mulf %67, %69 : vector<8x64xf32>
    %74 = arith.addf %72, %73 : vector<8x64xf32>
    %75 = math.tanh %74 : vector<8x64xf32>
    %76 = arith.mulf %70, %75 : vector<8x64xf32>
    %c0_36 = arith.constant 0 : index
    %c0_37 = arith.constant 0 : index
    %77 = vector.load %arg12[%c0_36, %c0_37] : memref<8x64xf32, #tpu.memory_space<vmem>>, vector<8x64xf32>
    tpu.vector_store %arg12[%c0_36, %c0_37], %74 {strides = array<i32>} : memref<8x64xf32, #tpu.memory_space<vmem>>, vector<8x64xf32>,
    %c0_38 = arith.constant 0 : index
    %c0_39 = arith.constant 0 : index
    %78 = vector.load %arg11[%c0_38, %c0_39] : memref<8x64xf32, #tpu.memory_space<vmem>>, vector<8x64xf32>
    tpu.vector_store %arg11[%c0_38, %c0_39], %76 {strides = array<i32>} : memref<8x64xf32, #tpu.memory_space<vmem>>, vector<8x64xf32>,
    %c7_i32_40 = arith.constant 7 : i32
    %79 = arith.subi %c7_i32_40, %c1_i32 : i32
    %c8_i32_41 = arith.constant 8 : i32
    %80 = arith.muli %79, %c8_i32_41 : i32
    %81 = tpu.assume_multiple %80, 8 : i32
    %82 = arith.index_cast %52 : i32 to index
    %c0_42 = arith.constant 0 : index
    %83 = vector.load %arg10[%82, %c0_42] : memref<64x128xf32, #tpu.memory_space<vmem>>, vector<8x64xf32>
    tpu.vector_store %arg10[%82, %c0_42], %76 {strides = array<i32>} : memref<64x128xf32, #tpu.memory_space<vmem>>, vector<8x64xf32>,
    %84 = arith.index_cast %81 : i32 to index
    %c64_43 = arith.constant 64 : index
    %85 = vector.load %arg10[%84, %c64_43] : memref<64x128xf32, #tpu.memory_space<vmem>>, vector<8x64xf32>
    tpu.vector_store %arg10[%84, %c64_43], %76 {strides = array<i32>} : memref<64x128xf32, #tpu.memory_space<vmem>>, vector<8x64xf32>,
    %c2_i32 = arith.constant 2 : i32
    %c8_i32_44 = arith.constant 8 : i32
    %86 = arith.muli %c2_i32, %c8_i32_44 : i32
    %87 = tpu.assume_multiple %86, 8 : i32
    %88 = arith.index_cast %87 : i32 to index
    %c0_45 = arith.constant 0 : index
    %89 = vector.load %arg9[%88, %c0_45] : memref<64x256xf32, #tpu.memory_space<vmem>>, vector<8x256xf32>
    %c0_46 = arith.constant 0 : index
    %c0_47 = arith.constant 0 : index
    %90 = vector.load %arg11[%c0_46, %c0_47] : memref<8x64xf32, #tpu.memory_space<vmem>>, vector<8x64xf32>
    %cst_48 = arith.constant dense<0.000000e+00> : vector<8x256xf32>
    %91 = tpu.matmul %90, %10, %cst_48 {dimension_numbers = #tpu.dot_dimension_numbers<[1], [0], [0], [1], [0, 0, 1, 1], [], []>} : vector<8x64xf32>, vector<64x256xf32>, vector<8x256xf32> -> vector<8x256xf32>
    %92 = arith.addf %89, %91 : vector<8x256xf32>
    %93 = vector.broadcast %11 : vector<1x256xf32> to vector<8x256xf32>
    %94 = arith.addf %92, %93 : vector<8x256xf32>
    %95 = math.tanh %94 : vector<8x256xf32>
    %96 = arith.negf %94 : vector<8x256xf32>
    %97 = math.exp %96 : vector<8x256xf32>
    %cst_49 = arith.constant 1.000000e+00 : f32
    %98 = vector.broadcast %cst_49 : f32 to vector<8x256xf32>
    %99 = arith.addf %98, %97 : vector<8x256xf32>
    %100 = arith.divf %98, %99 : vector<8x256xf32>
    %101 = arith.select %5, %95, %100 : vector<8x256xi1>, vector<8x256xf32>
    %102 = vector.extract_strided_slice %101 {offsets = [0, 0], sizes = [8, 64], strides = [1, 1]} : vector<8x256xf32> to vector<8x64xf32>
    %103 = vector.extract_strided_slice %101 {offsets = [0, 64], sizes = [8, 64], strides = [1, 1]} : vector<8x256xf32> to vector<8x64xf32>
    %104 = vector.extract_strided_slice %101 {offsets = [0, 128], sizes = [8, 64], strides = [1, 1]} : vector<8x256xf32> to vector<8x64xf32>
    %105 = vector.extract_strided_slice %101 {offsets = [0, 192], sizes = [8, 64], strides = [1, 1]} : vector<8x256xf32> to vector<8x64xf32>
    %c0_50 = arith.constant 0 : index
    %c0_51 = arith.constant 0 : index
    %106 = vector.load %arg12[%c0_50, %c0_51] : memref<8x64xf32, #tpu.memory_space<vmem>>, vector<8x64xf32>
    %107 = arith.mulf %103, %106 : vector<8x64xf32>
    %108 = arith.mulf %102, %104 : vector<8x64xf32>
    %109 = arith.addf %107, %108 : vector<8x64xf32>
    %110 = math.tanh %109 : vector<8x64xf32>
    %111 = arith.mulf %105, %110 : vector<8x64xf32>
    %c0_52 = arith.constant 0 : index
    %c0_53 = arith.constant 0 : index
    %112 = vector.load %arg12[%c0_52, %c0_53] : memref<8x64xf32, #tpu.memory_space<vmem>>, vector<8x64xf32>
    tpu.vector_store %arg12[%c0_52, %c0_53], %109 {strides = array<i32>} : memref<8x64xf32, #tpu.memory_space<vmem>>, vector<8x64xf32>,
    %c0_54 = arith.constant 0 : index
    %c0_55 = arith.constant 0 : index
    %113 = vector.load %arg11[%c0_54, %c0_55] : memref<8x64xf32, #tpu.memory_space<vmem>>, vector<8x64xf32>
    tpu.vector_store %arg11[%c0_54, %c0_55], %111 {strides = array<i32>} : memref<8x64xf32, #tpu.memory_space<vmem>>, vector<8x64xf32>,
    %c7_i32_56 = arith.constant 7 : i32
    %114 = arith.subi %c7_i32_56, %c2_i32 : i32
    %c8_i32_57 = arith.constant 8 : i32
    %115 = arith.muli %114, %c8_i32_57 : i32
    %116 = tpu.assume_multiple %115, 8 : i32
    %117 = arith.index_cast %87 : i32 to index
    %c0_58 = arith.constant 0 : index
    %118 = vector.load %arg10[%117, %c0_58] : memref<64x128xf32, #tpu.memory_space<vmem>>, vector<8x64xf32>
    tpu.vector_store %arg10[%117, %c0_58], %111 {strides = array<i32>} : memref<64x128xf32, #tpu.memory_space<vmem>>, vector<8x64xf32>,
    %119 = arith.index_cast %116 : i32 to index
    %c64_59 = arith.constant 64 : index
    %120 = vector.load %arg10[%119, %c64_59] : memref<64x128xf32, #tpu.memory_space<vmem>>, vector<8x64xf32>
    tpu.vector_store %arg10[%119, %c64_59], %111 {strides = array<i32>} : memref<64x128xf32, #tpu.memory_space<vmem>>, vector<8x64xf32>,
    %c3_i32 = arith.constant 3 : i32
    %c8_i32_60 = arith.constant 8 : i32
    %121 = arith.muli %c3_i32, %c8_i32_60 : i32
    %122 = tpu.assume_multiple %121, 8 : i32
    %123 = arith.index_cast %122 : i32 to index
    %c0_61 = arith.constant 0 : index
    %124 = vector.load %arg9[%123, %c0_61] : memref<64x256xf32, #tpu.memory_space<vmem>>, vector<8x256xf32>
    %c0_62 = arith.constant 0 : index
    %c0_63 = arith.constant 0 : index
    %125 = vector.load %arg11[%c0_62, %c0_63] : memref<8x64xf32, #tpu.memory_space<vmem>>, vector<8x64xf32>
    %cst_64 = arith.constant dense<0.000000e+00> : vector<8x256xf32>
    %126 = tpu.matmul %125, %10, %cst_64 {dimension_numbers = #tpu.dot_dimension_numbers<[1], [0], [0], [1], [0, 0, 1, 1], [], []>} : vector<8x64xf32>, vector<64x256xf32>, vector<8x256xf32> -> vector<8x256xf32>
    %127 = arith.addf %124, %126 : vector<8x256xf32>
    %128 = vector.broadcast %11 : vector<1x256xf32> to vector<8x256xf32>
    %129 = arith.addf %127, %128 : vector<8x256xf32>
    %130 = math.tanh %129 : vector<8x256xf32>
    %131 = arith.negf %129 : vector<8x256xf32>
    %132 = math.exp %131 : vector<8x256xf32>
    %cst_65 = arith.constant 1.000000e+00 : f32
    %133 = vector.broadcast %cst_65 : f32 to vector<8x256xf32>
    %134 = arith.addf %133, %132 : vector<8x256xf32>
    %135 = arith.divf %133, %134 : vector<8x256xf32>
    %136 = arith.select %5, %130, %135 : vector<8x256xi1>, vector<8x256xf32>
    %137 = vector.extract_strided_slice %136 {offsets = [0, 0], sizes = [8, 64], strides = [1, 1]} : vector<8x256xf32> to vector<8x64xf32>
    %138 = vector.extract_strided_slice %136 {offsets = [0, 64], sizes = [8, 64], strides = [1, 1]} : vector<8x256xf32> to vector<8x64xf32>
    %139 = vector.extract_strided_slice %136 {offsets = [0, 128], sizes = [8, 64], strides = [1, 1]} : vector<8x256xf32> to vector<8x64xf32>
    %140 = vector.extract_strided_slice %136 {offsets = [0, 192], sizes = [8, 64], strides = [1, 1]} : vector<8x256xf32> to vector<8x64xf32>
    %c0_66 = arith.constant 0 : index
    %c0_67 = arith.constant 0 : index
    %141 = vector.load %arg12[%c0_66, %c0_67] : memref<8x64xf32, #tpu.memory_space<vmem>>, vector<8x64xf32>
    %142 = arith.mulf %138, %141 : vector<8x64xf32>
    %143 = arith.mulf %137, %139 : vector<8x64xf32>
    %144 = arith.addf %142, %143 : vector<8x64xf32>
    %145 = math.tanh %144 : vector<8x64xf32>
    %146 = arith.mulf %140, %145 : vector<8x64xf32>
    %c0_68 = arith.constant 0 : index
    %c0_69 = arith.constant 0 : index
    %147 = vector.load %arg12[%c0_68, %c0_69] : memref<8x64xf32, #tpu.memory_space<vmem>>, vector<8x64xf32>
    tpu.vector_store %arg12[%c0_68, %c0_69], %144 {strides = array<i32>} : memref<8x64xf32, #tpu.memory_space<vmem>>, vector<8x64xf32>,
    %c0_70 = arith.constant 0 : index
    %c0_71 = arith.constant 0 : index
    %148 = vector.load %arg11[%c0_70, %c0_71] : memref<8x64xf32, #tpu.memory_space<vmem>>, vector<8x64xf32>
    tpu.vector_store %arg11[%c0_70, %c0_71], %146 {strides = array<i32>} : memref<8x64xf32, #tpu.memory_space<vmem>>, vector<8x64xf32>,
    %c7_i32_72 = arith.constant 7 : i32
    %149 = arith.subi %c7_i32_72, %c3_i32 : i32
    %c8_i32_73 = arith.constant 8 : i32
    %150 = arith.muli %149, %c8_i32_73 : i32
    %151 = tpu.assume_multiple %150, 8 : i32
    %152 = arith.index_cast %122 : i32 to index
    %c0_74 = arith.constant 0 : index
    %153 = vector.load %arg10[%152, %c0_74] : memref<64x128xf32, #tpu.memory_space<vmem>>, vector<8x64xf32>
    tpu.vector_store %arg10[%152, %c0_74], %146 {strides = array<i32>} : memref<64x128xf32, #tpu.memory_space<vmem>>, vector<8x64xf32>,
    %154 = arith.index_cast %151 : i32 to index
    %c64_75 = arith.constant 64 : index
    %155 = vector.load %arg10[%154, %c64_75] : memref<64x128xf32, #tpu.memory_space<vmem>>, vector<8x64xf32>
    tpu.vector_store %arg10[%154, %c64_75], %146 {strides = array<i32>} : memref<64x128xf32, #tpu.memory_space<vmem>>, vector<8x64xf32>,
    %c4_i32 = arith.constant 4 : i32
    %c8_i32_76 = arith.constant 8 : i32
    %156 = arith.muli %c4_i32, %c8_i32_76 : i32
    %157 = tpu.assume_multiple %156, 8 : i32
    %158 = arith.index_cast %157 : i32 to index
    %c0_77 = arith.constant 0 : index
    %159 = vector.load %arg9[%158, %c0_77] : memref<64x256xf32, #tpu.memory_space<vmem>>, vector<8x256xf32>
    %c0_78 = arith.constant 0 : index
    %c0_79 = arith.constant 0 : index
    %160 = vector.load %arg11[%c0_78, %c0_79] : memref<8x64xf32, #tpu.memory_space<vmem>>, vector<8x64xf32>
    %cst_80 = arith.constant dense<0.000000e+00> : vector<8x256xf32>
    %161 = tpu.matmul %160, %10, %cst_80 {dimension_numbers = #tpu.dot_dimension_numbers<[1], [0], [0], [1], [0, 0, 1, 1], [], []>} : vector<8x64xf32>, vector<64x256xf32>, vector<8x256xf32> -> vector<8x256xf32>
    %162 = arith.addf %159, %161 : vector<8x256xf32>
    %163 = vector.broadcast %11 : vector<1x256xf32> to vector<8x256xf32>
    %164 = arith.addf %162, %163 : vector<8x256xf32>
    %165 = math.tanh %164 : vector<8x256xf32>
    %166 = arith.negf %164 : vector<8x256xf32>
    %167 = math.exp %166 : vector<8x256xf32>
    %cst_81 = arith.constant 1.000000e+00 : f32
    %168 = vector.broadcast %cst_81 : f32 to vector<8x256xf32>
    %169 = arith.addf %168, %167 : vector<8x256xf32>
    %170 = arith.divf %168, %169 : vector<8x256xf32>
    %171 = arith.select %5, %165, %170 : vector<8x256xi1>, vector<8x256xf32>
    %172 = vector.extract_strided_slice %171 {offsets = [0, 0], sizes = [8, 64], strides = [1, 1]} : vector<8x256xf32> to vector<8x64xf32>
    %173 = vector.extract_strided_slice %171 {offsets = [0, 64], sizes = [8, 64], strides = [1, 1]} : vector<8x256xf32> to vector<8x64xf32>
    %174 = vector.extract_strided_slice %171 {offsets = [0, 128], sizes = [8, 64], strides = [1, 1]} : vector<8x256xf32> to vector<8x64xf32>
    %175 = vector.extract_strided_slice %171 {offsets = [0, 192], sizes = [8, 64], strides = [1, 1]} : vector<8x256xf32> to vector<8x64xf32>
    %c0_82 = arith.constant 0 : index
    %c0_83 = arith.constant 0 : index
    %176 = vector.load %arg12[%c0_82, %c0_83] : memref<8x64xf32, #tpu.memory_space<vmem>>, vector<8x64xf32>
    %177 = arith.mulf %173, %176 : vector<8x64xf32>
    %178 = arith.mulf %172, %174 : vector<8x64xf32>
    %179 = arith.addf %177, %178 : vector<8x64xf32>
    %180 = math.tanh %179 : vector<8x64xf32>
    %181 = arith.mulf %175, %180 : vector<8x64xf32>
    %c0_84 = arith.constant 0 : index
    %c0_85 = arith.constant 0 : index
    %182 = vector.load %arg12[%c0_84, %c0_85] : memref<8x64xf32, #tpu.memory_space<vmem>>, vector<8x64xf32>
    tpu.vector_store %arg12[%c0_84, %c0_85], %179 {strides = array<i32>} : memref<8x64xf32, #tpu.memory_space<vmem>>, vector<8x64xf32>,
    %c0_86 = arith.constant 0 : index
    %c0_87 = arith.constant 0 : index
    %183 = vector.load %arg11[%c0_86, %c0_87] : memref<8x64xf32, #tpu.memory_space<vmem>>, vector<8x64xf32>
    tpu.vector_store %arg11[%c0_86, %c0_87], %181 {strides = array<i32>} : memref<8x64xf32, #tpu.memory_space<vmem>>, vector<8x64xf32>,
    %c7_i32_88 = arith.constant 7 : i32
    %184 = arith.subi %c7_i32_88, %c4_i32 : i32
    %c8_i32_89 = arith.constant 8 : i32
    %185 = arith.muli %184, %c8_i32_89 : i32
    %186 = tpu.assume_multiple %185, 8 : i32
    %187 = arith.index_cast %157 : i32 to index
    %c0_90 = arith.constant 0 : index
    %188 = vector.load %arg10[%187, %c0_90] : memref<64x128xf32, #tpu.memory_space<vmem>>, vector<8x64xf32>
    tpu.vector_store %arg10[%187, %c0_90], %181 {strides = array<i32>} : memref<64x128xf32, #tpu.memory_space<vmem>>, vector<8x64xf32>,
    %189 = arith.index_cast %186 : i32 to index
    %c64_91 = arith.constant 64 : index
    %190 = vector.load %arg10[%189, %c64_91] : memref<64x128xf32, #tpu.memory_space<vmem>>, vector<8x64xf32>
    tpu.vector_store %arg10[%189, %c64_91], %181 {strides = array<i32>} : memref<64x128xf32, #tpu.memory_space<vmem>>, vector<8x64xf32>,
    %c5_i32 = arith.constant 5 : i32
    %c8_i32_92 = arith.constant 8 : i32
    %191 = arith.muli %c5_i32, %c8_i32_92 : i32
    %192 = tpu.assume_multiple %191, 8 : i32
    %193 = arith.index_cast %192 : i32 to index
    %c0_93 = arith.constant 0 : index
    %194 = vector.load %arg9[%193, %c0_93] : memref<64x256xf32, #tpu.memory_space<vmem>>, vector<8x256xf32>
    %c0_94 = arith.constant 0 : index
    %c0_95 = arith.constant 0 : index
    %195 = vector.load %arg11[%c0_94, %c0_95] : memref<8x64xf32, #tpu.memory_space<vmem>>, vector<8x64xf32>
    %cst_96 = arith.constant dense<0.000000e+00> : vector<8x256xf32>
    %196 = tpu.matmul %195, %10, %cst_96 {dimension_numbers = #tpu.dot_dimension_numbers<[1], [0], [0], [1], [0, 0, 1, 1], [], []>} : vector<8x64xf32>, vector<64x256xf32>, vector<8x256xf32> -> vector<8x256xf32>
    %197 = arith.addf %194, %196 : vector<8x256xf32>
    %198 = vector.broadcast %11 : vector<1x256xf32> to vector<8x256xf32>
    %199 = arith.addf %197, %198 : vector<8x256xf32>
    %200 = math.tanh %199 : vector<8x256xf32>
    %201 = arith.negf %199 : vector<8x256xf32>
    %202 = math.exp %201 : vector<8x256xf32>
    %cst_97 = arith.constant 1.000000e+00 : f32
    %203 = vector.broadcast %cst_97 : f32 to vector<8x256xf32>
    %204 = arith.addf %203, %202 : vector<8x256xf32>
    %205 = arith.divf %203, %204 : vector<8x256xf32>
    %206 = arith.select %5, %200, %205 : vector<8x256xi1>, vector<8x256xf32>
    %207 = vector.extract_strided_slice %206 {offsets = [0, 0], sizes = [8, 64], strides = [1, 1]} : vector<8x256xf32> to vector<8x64xf32>
    %208 = vector.extract_strided_slice %206 {offsets = [0, 64], sizes = [8, 64], strides = [1, 1]} : vector<8x256xf32> to vector<8x64xf32>
    %209 = vector.extract_strided_slice %206 {offsets = [0, 128], sizes = [8, 64], strides = [1, 1]} : vector<8x256xf32> to vector<8x64xf32>
    %210 = vector.extract_strided_slice %206 {offsets = [0, 192], sizes = [8, 64], strides = [1, 1]} : vector<8x256xf32> to vector<8x64xf32>
    %c0_98 = arith.constant 0 : index
    %c0_99 = arith.constant 0 : index
    %211 = vector.load %arg12[%c0_98, %c0_99] : memref<8x64xf32, #tpu.memory_space<vmem>>, vector<8x64xf32>
    %212 = arith.mulf %208, %211 : vector<8x64xf32>
    %213 = arith.mulf %207, %209 : vector<8x64xf32>
    %214 = arith.addf %212, %213 : vector<8x64xf32>
    %215 = math.tanh %214 : vector<8x64xf32>
    %216 = arith.mulf %210, %215 : vector<8x64xf32>
    %c0_100 = arith.constant 0 : index
    %c0_101 = arith.constant 0 : index
    %217 = vector.load %arg12[%c0_100, %c0_101] : memref<8x64xf32, #tpu.memory_space<vmem>>, vector<8x64xf32>
    tpu.vector_store %arg12[%c0_100, %c0_101], %214 {strides = array<i32>} : memref<8x64xf32, #tpu.memory_space<vmem>>, vector<8x64xf32>,
    %c0_102 = arith.constant 0 : index
    %c0_103 = arith.constant 0 : index
    %218 = vector.load %arg11[%c0_102, %c0_103] : memref<8x64xf32, #tpu.memory_space<vmem>>, vector<8x64xf32>
    tpu.vector_store %arg11[%c0_102, %c0_103], %216 {strides = array<i32>} : memref<8x64xf32, #tpu.memory_space<vmem>>, vector<8x64xf32>,
    %c7_i32_104 = arith.constant 7 : i32
    %219 = arith.subi %c7_i32_104, %c5_i32 : i32
    %c8_i32_105 = arith.constant 8 : i32
    %220 = arith.muli %219, %c8_i32_105 : i32
    %221 = tpu.assume_multiple %220, 8 : i32
    %222 = arith.index_cast %192 : i32 to index
    %c0_106 = arith.constant 0 : index
    %223 = vector.load %arg10[%222, %c0_106] : memref<64x128xf32, #tpu.memory_space<vmem>>, vector<8x64xf32>
    tpu.vector_store %arg10[%222, %c0_106], %216 {strides = array<i32>} : memref<64x128xf32, #tpu.memory_space<vmem>>, vector<8x64xf32>,
    %224 = arith.index_cast %221 : i32 to index
    %c64_107 = arith.constant 64 : index
    %225 = vector.load %arg10[%224, %c64_107] : memref<64x128xf32, #tpu.memory_space<vmem>>, vector<8x64xf32>
    tpu.vector_store %arg10[%224, %c64_107], %216 {strides = array<i32>} : memref<64x128xf32, #tpu.memory_space<vmem>>, vector<8x64xf32>,
    %c6_i32 = arith.constant 6 : i32
    %c8_i32_108 = arith.constant 8 : i32
    %226 = arith.muli %c6_i32, %c8_i32_108 : i32
    %227 = tpu.assume_multiple %226, 8 : i32
    %228 = arith.index_cast %227 : i32 to index
    %c0_109 = arith.constant 0 : index
    %229 = vector.load %arg9[%228, %c0_109] : memref<64x256xf32, #tpu.memory_space<vmem>>, vector<8x256xf32>
    %c0_110 = arith.constant 0 : index
    %c0_111 = arith.constant 0 : index
    %230 = vector.load %arg11[%c0_110, %c0_111] : memref<8x64xf32, #tpu.memory_space<vmem>>, vector<8x64xf32>
    %cst_112 = arith.constant dense<0.000000e+00> : vector<8x256xf32>
    %231 = tpu.matmul %230, %10, %cst_112 {dimension_numbers = #tpu.dot_dimension_numbers<[1], [0], [0], [1], [0, 0, 1, 1], [], []>} : vector<8x64xf32>, vector<64x256xf32>, vector<8x256xf32> -> vector<8x256xf32>
    %232 = arith.addf %229, %231 : vector<8x256xf32>
    %233 = vector.broadcast %11 : vector<1x256xf32> to vector<8x256xf32>
    %234 = arith.addf %232, %233 : vector<8x256xf32>
    %235 = math.tanh %234 : vector<8x256xf32>
    %236 = arith.negf %234 : vector<8x256xf32>
    %237 = math.exp %236 : vector<8x256xf32>
    %cst_113 = arith.constant 1.000000e+00 : f32
    %238 = vector.broadcast %cst_113 : f32 to vector<8x256xf32>
    %239 = arith.addf %238, %237 : vector<8x256xf32>
    %240 = arith.divf %238, %239 : vector<8x256xf32>
    %241 = arith.select %5, %235, %240 : vector<8x256xi1>, vector<8x256xf32>
    %242 = vector.extract_strided_slice %241 {offsets = [0, 0], sizes = [8, 64], strides = [1, 1]} : vector<8x256xf32> to vector<8x64xf32>
    %243 = vector.extract_strided_slice %241 {offsets = [0, 64], sizes = [8, 64], strides = [1, 1]} : vector<8x256xf32> to vector<8x64xf32>
    %244 = vector.extract_strided_slice %241 {offsets = [0, 128], sizes = [8, 64], strides = [1, 1]} : vector<8x256xf32> to vector<8x64xf32>
    %245 = vector.extract_strided_slice %241 {offsets = [0, 192], sizes = [8, 64], strides = [1, 1]} : vector<8x256xf32> to vector<8x64xf32>
    %c0_114 = arith.constant 0 : index
    %c0_115 = arith.constant 0 : index
    %246 = vector.load %arg12[%c0_114, %c0_115] : memref<8x64xf32, #tpu.memory_space<vmem>>, vector<8x64xf32>
    %247 = arith.mulf %243, %246 : vector<8x64xf32>
    %248 = arith.mulf %242, %244 : vector<8x64xf32>
    %249 = arith.addf %247, %248 : vector<8x64xf32>
    %250 = math.tanh %249 : vector<8x64xf32>
    %251 = arith.mulf %245, %250 : vector<8x64xf32>
    %c0_116 = arith.constant 0 : index
    %c0_117 = arith.constant 0 : index
    %252 = vector.load %arg12[%c0_116, %c0_117] : memref<8x64xf32, #tpu.memory_space<vmem>>, vector<8x64xf32>
    tpu.vector_store %arg12[%c0_116, %c0_117], %249 {strides = array<i32>} : memref<8x64xf32, #tpu.memory_space<vmem>>, vector<8x64xf32>,
    %c0_118 = arith.constant 0 : index
    %c0_119 = arith.constant 0 : index
    %253 = vector.load %arg11[%c0_118, %c0_119] : memref<8x64xf32, #tpu.memory_space<vmem>>, vector<8x64xf32>
    tpu.vector_store %arg11[%c0_118, %c0_119], %251 {strides = array<i32>} : memref<8x64xf32, #tpu.memory_space<vmem>>, vector<8x64xf32>,
    %c7_i32_120 = arith.constant 7 : i32
    %254 = arith.subi %c7_i32_120, %c6_i32 : i32
    %c8_i32_121 = arith.constant 8 : i32
    %255 = arith.muli %254, %c8_i32_121 : i32
    %256 = tpu.assume_multiple %255, 8 : i32
    %257 = arith.index_cast %227 : i32 to index
    %c0_122 = arith.constant 0 : index
    %258 = vector.load %arg10[%257, %c0_122] : memref<64x128xf32, #tpu.memory_space<vmem>>, vector<8x64xf32>
    tpu.vector_store %arg10[%257, %c0_122], %251 {strides = array<i32>} : memref<64x128xf32, #tpu.memory_space<vmem>>, vector<8x64xf32>,
    %259 = arith.index_cast %256 : i32 to index
    %c64_123 = arith.constant 64 : index
    %260 = vector.load %arg10[%259, %c64_123] : memref<64x128xf32, #tpu.memory_space<vmem>>, vector<8x64xf32>
    tpu.vector_store %arg10[%259, %c64_123], %251 {strides = array<i32>} : memref<64x128xf32, #tpu.memory_space<vmem>>, vector<8x64xf32>,
    %c7_i32_124 = arith.constant 7 : i32
    %c8_i32_125 = arith.constant 8 : i32
    %261 = arith.muli %c7_i32_124, %c8_i32_125 : i32
    %262 = tpu.assume_multiple %261, 8 : i32
    %263 = arith.index_cast %262 : i32 to index
    %c0_126 = arith.constant 0 : index
    %264 = vector.load %arg9[%263, %c0_126] : memref<64x256xf32, #tpu.memory_space<vmem>>, vector<8x256xf32>
    %c0_127 = arith.constant 0 : index
    %c0_128 = arith.constant 0 : index
    %265 = vector.load %arg11[%c0_127, %c0_128] : memref<8x64xf32, #tpu.memory_space<vmem>>, vector<8x64xf32>
    %cst_129 = arith.constant dense<0.000000e+00> : vector<8x256xf32>
    %266 = tpu.matmul %265, %10, %cst_129 {dimension_numbers = #tpu.dot_dimension_numbers<[1], [0], [0], [1], [0, 0, 1, 1], [], []>} : vector<8x64xf32>, vector<64x256xf32>, vector<8x256xf32> -> vector<8x256xf32>
    %267 = arith.addf %264, %266 : vector<8x256xf32>
    %268 = vector.broadcast %11 : vector<1x256xf32> to vector<8x256xf32>
    %269 = arith.addf %267, %268 : vector<8x256xf32>
    %270 = math.tanh %269 : vector<8x256xf32>
    %271 = arith.negf %269 : vector<8x256xf32>
    %272 = math.exp %271 : vector<8x256xf32>
    %cst_130 = arith.constant 1.000000e+00 : f32
    %273 = vector.broadcast %cst_130 : f32 to vector<8x256xf32>
    %274 = arith.addf %273, %272 : vector<8x256xf32>
    %275 = arith.divf %273, %274 : vector<8x256xf32>
    %276 = arith.select %5, %270, %275 : vector<8x256xi1>, vector<8x256xf32>
    %277 = vector.extract_strided_slice %276 {offsets = [0, 0], sizes = [8, 64], strides = [1, 1]} : vector<8x256xf32> to vector<8x64xf32>
    %278 = vector.extract_strided_slice %276 {offsets = [0, 64], sizes = [8, 64], strides = [1, 1]} : vector<8x256xf32> to vector<8x64xf32>
    %279 = vector.extract_strided_slice %276 {offsets = [0, 128], sizes = [8, 64], strides = [1, 1]} : vector<8x256xf32> to vector<8x64xf32>
    %280 = vector.extract_strided_slice %276 {offsets = [0, 192], sizes = [8, 64], strides = [1, 1]} : vector<8x256xf32> to vector<8x64xf32>
    %c0_131 = arith.constant 0 : index
    %c0_132 = arith.constant 0 : index
    %281 = vector.load %arg12[%c0_131, %c0_132] : memref<8x64xf32, #tpu.memory_space<vmem>>, vector<8x64xf32>
    %282 = arith.mulf %278, %281 : vector<8x64xf32>
    %283 = arith.mulf %277, %279 : vector<8x64xf32>
    %284 = arith.addf %282, %283 : vector<8x64xf32>
    %285 = math.tanh %284 : vector<8x64xf32>
    %286 = arith.mulf %280, %285 : vector<8x64xf32>
    %c0_133 = arith.constant 0 : index
    %c0_134 = arith.constant 0 : index
    %287 = vector.load %arg12[%c0_133, %c0_134] : memref<8x64xf32, #tpu.memory_space<vmem>>, vector<8x64xf32>
    tpu.vector_store %arg12[%c0_133, %c0_134], %284 {strides = array<i32>} : memref<8x64xf32, #tpu.memory_space<vmem>>, vector<8x64xf32>,
    %c0_135 = arith.constant 0 : index
    %c0_136 = arith.constant 0 : index
    %288 = vector.load %arg11[%c0_135, %c0_136] : memref<8x64xf32, #tpu.memory_space<vmem>>, vector<8x64xf32>
    tpu.vector_store %arg11[%c0_135, %c0_136], %286 {strides = array<i32>} : memref<8x64xf32, #tpu.memory_space<vmem>>, vector<8x64xf32>,
    %c7_i32_137 = arith.constant 7 : i32
    %289 = arith.subi %c7_i32_137, %c7_i32_124 : i32
    %c8_i32_138 = arith.constant 8 : i32
    %290 = arith.muli %289, %c8_i32_138 : i32
    %291 = tpu.assume_multiple %290, 8 : i32
    %292 = arith.index_cast %262 : i32 to index
    %c0_139 = arith.constant 0 : index
    %293 = vector.load %arg10[%292, %c0_139] : memref<64x128xf32, #tpu.memory_space<vmem>>, vector<8x64xf32>
    tpu.vector_store %arg10[%292, %c0_139], %286 {strides = array<i32>} : memref<64x128xf32, #tpu.memory_space<vmem>>, vector<8x64xf32>,
    %294 = arith.index_cast %291 : i32 to index
    %c64_140 = arith.constant 64 : index
    %295 = vector.load %arg10[%294, %c64_140] : memref<64x128xf32, #tpu.memory_space<vmem>>, vector<8x64xf32>
    tpu.vector_store %arg10[%294, %c64_140], %286 {strides = array<i32>} : memref<64x128xf32, #tpu.memory_space<vmem>>, vector<8x64xf32>,
    %c8_i32_141 = arith.constant 8 : i32
    %c0_142 = arith.constant 0 : index
    %c0_143 = arith.constant 0 : index
    %296 = vector.load %arg11[%c0_142, %c0_143] : memref<8x64xf32, #tpu.memory_space<vmem>>, vector<8x64xf32>
    %c0_144 = arith.constant 0 : index
    %c0_145 = arith.constant 0 : index
    %297 = vector.load %arg12[%c0_144, %c0_145] : memref<8x64xf32, #tpu.memory_space<vmem>>, vector<8x64xf32>
    %298 = vector.extract_strided_slice %296 {offsets = [0, 0], sizes = [8, 32], strides = [1, 1]} : vector<8x64xf32> to vector<8x32xf32>
    %c0_146 = arith.constant 0 : index
    %c0_147 = arith.constant 0 : index
    %c0_148 = arith.constant 0 : index
    %299 = vector.load %arg7[%c0_146, %c0_147, %c0_148] : memref<4x8x32xf32, #tpu.memory_space<vmem>>, vector<1x8x32xf32>
    %300 = vector.shape_cast %299 : vector<1x8x32xf32> to vector<8x32xf32>
    %301 = vector.shape_cast %298 : vector<8x32xf32> to vector<1x8x32xf32>
    tpu.vector_store %arg7[%c0_146, %c0_147, %c0_148], %301 {strides = array<i32>} : memref<4x8x32xf32, #tpu.memory_space<vmem>>, vector<1x8x32xf32>,
    %302 = vector.extract_strided_slice %296 {offsets = [0, 32], sizes = [8, 32], strides = [1, 1]} : vector<8x64xf32> to vector<8x32xf32>
    %c1 = arith.constant 1 : index
    %c0_149 = arith.constant 0 : index
    %c0_150 = arith.constant 0 : index
    %303 = vector.load %arg7[%c1, %c0_149, %c0_150] : memref<4x8x32xf32, #tpu.memory_space<vmem>>, vector<1x8x32xf32>
    %304 = vector.shape_cast %303 : vector<1x8x32xf32> to vector<8x32xf32>
    %305 = vector.shape_cast %302 : vector<8x32xf32> to vector<1x8x32xf32>
    tpu.vector_store %arg7[%c1, %c0_149, %c0_150], %305 {strides = array<i32>} : memref<4x8x32xf32, #tpu.memory_space<vmem>>, vector<1x8x32xf32>,
    %306 = vector.extract_strided_slice %297 {offsets = [0, 0], sizes = [8, 32], strides = [1, 1]} : vector<8x64xf32> to vector<8x32xf32>
    %c0_151 = arith.constant 0 : index
    %c0_152 = arith.constant 0 : index
    %c0_153 = arith.constant 0 : index
    %307 = vector.load %arg8[%c0_151, %c0_152, %c0_153] : memref<4x8x32xf32, #tpu.memory_space<vmem>>, vector<1x8x32xf32>
    %308 = vector.shape_cast %307 : vector<1x8x32xf32> to vector<8x32xf32>
    %309 = vector.shape_cast %306 : vector<8x32xf32> to vector<1x8x32xf32>
    tpu.vector_store %arg8[%c0_151, %c0_152, %c0_153], %309 {strides = array<i32>} : memref<4x8x32xf32, #tpu.memory_space<vmem>>, vector<1x8x32xf32>,
    %310 = vector.extract_strided_slice %297 {offsets = [0, 32], sizes = [8, 32], strides = [1, 1]} : vector<8x64xf32> to vector<8x32xf32>
    %c1_154 = arith.constant 1 : index
    %c0_155 = arith.constant 0 : index
    %c0_156 = arith.constant 0 : index
    %311 = vector.load %arg8[%c1_154, %c0_155, %c0_156] : memref<4x8x32xf32, #tpu.memory_space<vmem>>, vector<1x8x32xf32>
    %312 = vector.shape_cast %311 : vector<1x8x32xf32> to vector<8x32xf32>
    %313 = vector.shape_cast %310 : vector<8x32xf32> to vector<1x8x32xf32>
    tpu.vector_store %arg8[%c1_154, %c0_155, %c0_156], %313 {strides = array<i32>} : memref<4x8x32xf32, #tpu.memory_space<vmem>>, vector<1x8x32xf32>,
    %c0_157 = arith.constant 0 : index
    %c0_158 = arith.constant 0 : index
    %314 = vector.load %arg10[%c0_157, %c0_158] : memref<64x128xf32, #tpu.memory_space<vmem>>, vector<64x128xf32>
    %c0_159 = arith.constant 0 : index
    %c0_160 = arith.constant 0 : index
    %315 = vector.load %arg4[%c0_159, %c0_160] : memref<128x256xf32, #tpu.memory_space<vmem>>, vector<128x256xf32>
    %cst_161 = arith.constant dense<0.000000e+00> : vector<64x256xf32>
    %316 = tpu.matmul %314, %315, %cst_161 {dimension_numbers = #tpu.dot_dimension_numbers<[1], [0], [0], [1], [0, 0, 1, 1], [], []>} : vector<64x128xf32>, vector<128x256xf32>, vector<64x256xf32> -> vector<64x256xf32>
    %c0_162 = arith.constant 0 : index
    %c0_163 = arith.constant 0 : index
    %317 = vector.load %arg9[%c0_162, %c0_163] : memref<64x256xf32, #tpu.memory_space<vmem>>, vector<64x256xf32>
    tpu.vector_store %arg9[%c0_162, %c0_163], %316 {strides = array<i32>} : memref<64x256xf32, #tpu.memory_space<vmem>>, vector<64x256xf32>,
    %c0_164 = arith.constant 0 : index
    %c0_165 = arith.constant 0 : index
    %318 = vector.load %arg5[%c0_164, %c0_165] : memref<64x256xf32, #tpu.memory_space<vmem>>, vector<64x256xf32>
    %c0_166 = arith.constant 0 : index
    %c0_167 = arith.constant 0 : index
    %319 = vector.load %arg6[%c0_166, %c0_167] : memref<1x256xf32, #tpu.memory_space<vmem>>, vector<1x256xf32>
    %cst_168 = arith.constant 0.000000e+00 : f32
    %320 = vector.broadcast %cst_168 : f32 to vector<8x64xf32>
    %c0_169 = arith.constant 0 : index
    %c0_170 = arith.constant 0 : index
    %321 = vector.load %arg11[%c0_169, %c0_170] : memref<8x64xf32, #tpu.memory_space<vmem>>, vector<8x64xf32>
    tpu.vector_store %arg11[%c0_169, %c0_170], %320 {strides = array<i32>} : memref<8x64xf32, #tpu.memory_space<vmem>>, vector<8x64xf32>,
    %cst_171 = arith.constant 0.000000e+00 : f32
    %322 = vector.broadcast %cst_171 : f32 to vector<8x64xf32>
    %c0_172 = arith.constant 0 : index
    %c0_173 = arith.constant 0 : index
    %323 = vector.load %arg12[%c0_172, %c0_173] : memref<8x64xf32, #tpu.memory_space<vmem>>, vector<8x64xf32>
    tpu.vector_store %arg12[%c0_172, %c0_173], %322 {strides = array<i32>} : memref<8x64xf32, #tpu.memory_space<vmem>>, vector<8x64xf32>,
    %c0_i32_174 = arith.constant 0 : i32
    %c8_i32_175 = arith.constant 8 : i32
    %324 = arith.muli %c0_i32_174, %c8_i32_175 : i32
    %325 = tpu.assume_multiple %324, 8 : i32
    %326 = arith.index_cast %325 : i32 to index
    %c0_176 = arith.constant 0 : index
    %327 = vector.load %arg9[%326, %c0_176] : memref<64x256xf32, #tpu.memory_space<vmem>>, vector<8x256xf32>
    %c0_177 = arith.constant 0 : index
    %c0_178 = arith.constant 0 : index
    %328 = vector.load %arg11[%c0_177, %c0_178] : memref<8x64xf32, #tpu.memory_space<vmem>>, vector<8x64xf32>
    %cst_179 = arith.constant dense<0.000000e+00> : vector<8x256xf32>
    %329 = tpu.matmul %328, %318, %cst_179 {dimension_numbers = #tpu.dot_dimension_numbers<[1], [0], [0], [1], [0, 0, 1, 1], [], []>} : vector<8x64xf32>, vector<64x256xf32>, vector<8x256xf32> -> vector<8x256xf32>
    %330 = arith.addf %327, %329 : vector<8x256xf32>
    %331 = vector.broadcast %319 : vector<1x256xf32> to vector<8x256xf32>
    %332 = arith.addf %330, %331 : vector<8x256xf32>
    %333 = math.tanh %332 : vector<8x256xf32>
    %334 = arith.negf %332 : vector<8x256xf32>
    %335 = math.exp %334 : vector<8x256xf32>
    %cst_180 = arith.constant 1.000000e+00 : f32
    %336 = vector.broadcast %cst_180 : f32 to vector<8x256xf32>
    %337 = arith.addf %336, %335 : vector<8x256xf32>
    %338 = arith.divf %336, %337 : vector<8x256xf32>
    %339 = arith.select %5, %333, %338 : vector<8x256xi1>, vector<8x256xf32>
    %340 = vector.extract_strided_slice %339 {offsets = [0, 0], sizes = [8, 64], strides = [1, 1]} : vector<8x256xf32> to vector<8x64xf32>
    %341 = vector.extract_strided_slice %339 {offsets = [0, 64], sizes = [8, 64], strides = [1, 1]} : vector<8x256xf32> to vector<8x64xf32>
    %342 = vector.extract_strided_slice %339 {offsets = [0, 128], sizes = [8, 64], strides = [1, 1]} : vector<8x256xf32> to vector<8x64xf32>
    %343 = vector.extract_strided_slice %339 {offsets = [0, 192], sizes = [8, 64], strides = [1, 1]} : vector<8x256xf32> to vector<8x64xf32>
    %c0_181 = arith.constant 0 : index
    %c0_182 = arith.constant 0 : index
    %344 = vector.load %arg12[%c0_181, %c0_182] : memref<8x64xf32, #tpu.memory_space<vmem>>, vector<8x64xf32>
    %345 = arith.mulf %341, %344 : vector<8x64xf32>
    %346 = arith.mulf %340, %342 : vector<8x64xf32>
    %347 = arith.addf %345, %346 : vector<8x64xf32>
    %348 = math.tanh %347 : vector<8x64xf32>
    %349 = arith.mulf %343, %348 : vector<8x64xf32>
    %c0_183 = arith.constant 0 : index
    %c0_184 = arith.constant 0 : index
    %350 = vector.load %arg12[%c0_183, %c0_184] : memref<8x64xf32, #tpu.memory_space<vmem>>, vector<8x64xf32>
    tpu.vector_store %arg12[%c0_183, %c0_184], %347 {strides = array<i32>} : memref<8x64xf32, #tpu.memory_space<vmem>>, vector<8x64xf32>,
    %c0_185 = arith.constant 0 : index
    %c0_186 = arith.constant 0 : index
    %351 = vector.load %arg11[%c0_185, %c0_186] : memref<8x64xf32, #tpu.memory_space<vmem>>, vector<8x64xf32>
    tpu.vector_store %arg11[%c0_185, %c0_186], %349 {strides = array<i32>} : memref<8x64xf32, #tpu.memory_space<vmem>>, vector<8x64xf32>,
    %c1_i32_187 = arith.constant 1 : i32
    %c8_i32_188 = arith.constant 8 : i32
    %352 = arith.muli %c1_i32_187, %c8_i32_188 : i32
    %353 = tpu.assume_multiple %352, 8 : i32
    %354 = arith.index_cast %353 : i32 to index
    %c0_189 = arith.constant 0 : index
    %355 = vector.load %arg9[%354, %c0_189] : memref<64x256xf32, #tpu.memory_space<vmem>>, vector<8x256xf32>
    %c0_190 = arith.constant 0 : index
    %c0_191 = arith.constant 0 : index
    %356 = vector.load %arg11[%c0_190, %c0_191] : memref<8x64xf32, #tpu.memory_space<vmem>>, vector<8x64xf32>
    %cst_192 = arith.constant dense<0.000000e+00> : vector<8x256xf32>
    %357 = tpu.matmul %356, %318, %cst_192 {dimension_numbers = #tpu.dot_dimension_numbers<[1], [0], [0], [1], [0, 0, 1, 1], [], []>} : vector<8x64xf32>, vector<64x256xf32>, vector<8x256xf32> -> vector<8x256xf32>
    %358 = arith.addf %355, %357 : vector<8x256xf32>
    %359 = vector.broadcast %319 : vector<1x256xf32> to vector<8x256xf32>
    %360 = arith.addf %358, %359 : vector<8x256xf32>
    %361 = math.tanh %360 : vector<8x256xf32>
    %362 = arith.negf %360 : vector<8x256xf32>
    %363 = math.exp %362 : vector<8x256xf32>
    %cst_193 = arith.constant 1.000000e+00 : f32
    %364 = vector.broadcast %cst_193 : f32 to vector<8x256xf32>
    %365 = arith.addf %364, %363 : vector<8x256xf32>
    %366 = arith.divf %364, %365 : vector<8x256xf32>
    %367 = arith.select %5, %361, %366 : vector<8x256xi1>, vector<8x256xf32>
    %368 = vector.extract_strided_slice %367 {offsets = [0, 0], sizes = [8, 64], strides = [1, 1]} : vector<8x256xf32> to vector<8x64xf32>
    %369 = vector.extract_strided_slice %367 {offsets = [0, 64], sizes = [8, 64], strides = [1, 1]} : vector<8x256xf32> to vector<8x64xf32>
    %370 = vector.extract_strided_slice %367 {offsets = [0, 128], sizes = [8, 64], strides = [1, 1]} : vector<8x256xf32> to vector<8x64xf32>
    %371 = vector.extract_strided_slice %367 {offsets = [0, 192], sizes = [8, 64], strides = [1, 1]} : vector<8x256xf32> to vector<8x64xf32>
    %c0_194 = arith.constant 0 : index
    %c0_195 = arith.constant 0 : index
    %372 = vector.load %arg12[%c0_194, %c0_195] : memref<8x64xf32, #tpu.memory_space<vmem>>, vector<8x64xf32>
    %373 = arith.mulf %369, %372 : vector<8x64xf32>
    %374 = arith.mulf %368, %370 : vector<8x64xf32>
    %375 = arith.addf %373, %374 : vector<8x64xf32>
    %376 = math.tanh %375 : vector<8x64xf32>
    %377 = arith.mulf %371, %376 : vector<8x64xf32>
    %c0_196 = arith.constant 0 : index
    %c0_197 = arith.constant 0 : index
    %378 = vector.load %arg12[%c0_196, %c0_197] : memref<8x64xf32, #tpu.memory_space<vmem>>, vector<8x64xf32>
    tpu.vector_store %arg12[%c0_196, %c0_197], %375 {strides = array<i32>} : memref<8x64xf32, #tpu.memory_space<vmem>>, vector<8x64xf32>,
    %c0_198 = arith.constant 0 : index
    %c0_199 = arith.constant 0 : index
    %379 = vector.load %arg11[%c0_198, %c0_199] : memref<8x64xf32, #tpu.memory_space<vmem>>, vector<8x64xf32>
    tpu.vector_store %arg11[%c0_198, %c0_199], %377 {strides = array<i32>} : memref<8x64xf32, #tpu.memory_space<vmem>>, vector<8x64xf32>,
    %c2_i32_200 = arith.constant 2 : i32
    %c8_i32_201 = arith.constant 8 : i32
    %380 = arith.muli %c2_i32_200, %c8_i32_201 : i32
    %381 = tpu.assume_multiple %380, 8 : i32
    %382 = arith.index_cast %381 : i32 to index
    %c0_202 = arith.constant 0 : index
    %383 = vector.load %arg9[%382, %c0_202] : memref<64x256xf32, #tpu.memory_space<vmem>>, vector<8x256xf32>
    %c0_203 = arith.constant 0 : index
    %c0_204 = arith.constant 0 : index
    %384 = vector.load %arg11[%c0_203, %c0_204] : memref<8x64xf32, #tpu.memory_space<vmem>>, vector<8x64xf32>
    %cst_205 = arith.constant dense<0.000000e+00> : vector<8x256xf32>
    %385 = tpu.matmul %384, %318, %cst_205 {dimension_numbers = #tpu.dot_dimension_numbers<[1], [0], [0], [1], [0, 0, 1, 1], [], []>} : vector<8x64xf32>, vector<64x256xf32>, vector<8x256xf32> -> vector<8x256xf32>
    %386 = arith.addf %383, %385 : vector<8x256xf32>
    %387 = vector.broadcast %319 : vector<1x256xf32> to vector<8x256xf32>
    %388 = arith.addf %386, %387 : vector<8x256xf32>
    %389 = math.tanh %388 : vector<8x256xf32>
    %390 = arith.negf %388 : vector<8x256xf32>
    %391 = math.exp %390 : vector<8x256xf32>
    %cst_206 = arith.constant 1.000000e+00 : f32
    %392 = vector.broadcast %cst_206 : f32 to vector<8x256xf32>
    %393 = arith.addf %392, %391 : vector<8x256xf32>
    %394 = arith.divf %392, %393 : vector<8x256xf32>
    %395 = arith.select %5, %389, %394 : vector<8x256xi1>, vector<8x256xf32>
    %396 = vector.extract_strided_slice %395 {offsets = [0, 0], sizes = [8, 64], strides = [1, 1]} : vector<8x256xf32> to vector<8x64xf32>
    %397 = vector.extract_strided_slice %395 {offsets = [0, 64], sizes = [8, 64], strides = [1, 1]} : vector<8x256xf32> to vector<8x64xf32>
    %398 = vector.extract_strided_slice %395 {offsets = [0, 128], sizes = [8, 64], strides = [1, 1]} : vector<8x256xf32> to vector<8x64xf32>
    %399 = vector.extract_strided_slice %395 {offsets = [0, 192], sizes = [8, 64], strides = [1, 1]} : vector<8x256xf32> to vector<8x64xf32>
    %c0_207 = arith.constant 0 : index
    %c0_208 = arith.constant 0 : index
    %400 = vector.load %arg12[%c0_207, %c0_208] : memref<8x64xf32, #tpu.memory_space<vmem>>, vector<8x64xf32>
    %401 = arith.mulf %397, %400 : vector<8x64xf32>
    %402 = arith.mulf %396, %398 : vector<8x64xf32>
    %403 = arith.addf %401, %402 : vector<8x64xf32>
    %404 = math.tanh %403 : vector<8x64xf32>
    %405 = arith.mulf %399, %404 : vector<8x64xf32>
    %c0_209 = arith.constant 0 : index
    %c0_210 = arith.constant 0 : index
    %406 = vector.load %arg12[%c0_209, %c0_210] : memref<8x64xf32, #tpu.memory_space<vmem>>, vector<8x64xf32>
    tpu.vector_store %arg12[%c0_209, %c0_210], %403 {strides = array<i32>} : memref<8x64xf32, #tpu.memory_space<vmem>>, vector<8x64xf32>,
    %c0_211 = arith.constant 0 : index
    %c0_212 = arith.constant 0 : index
    %407 = vector.load %arg11[%c0_211, %c0_212] : memref<8x64xf32, #tpu.memory_space<vmem>>, vector<8x64xf32>
    tpu.vector_store %arg11[%c0_211, %c0_212], %405 {strides = array<i32>} : memref<8x64xf32, #tpu.memory_space<vmem>>, vector<8x64xf32>,
    %c3_i32_213 = arith.constant 3 : i32
    %c8_i32_214 = arith.constant 8 : i32
    %408 = arith.muli %c3_i32_213, %c8_i32_214 : i32
    %409 = tpu.assume_multiple %408, 8 : i32
    %410 = arith.index_cast %409 : i32 to index
    %c0_215 = arith.constant 0 : index
    %411 = vector.load %arg9[%410, %c0_215] : memref<64x256xf32, #tpu.memory_space<vmem>>, vector<8x256xf32>
    %c0_216 = arith.constant 0 : index
    %c0_217 = arith.constant 0 : index
    %412 = vector.load %arg11[%c0_216, %c0_217] : memref<8x64xf32, #tpu.memory_space<vmem>>, vector<8x64xf32>
    %cst_218 = arith.constant dense<0.000000e+00> : vector<8x256xf32>
    %413 = tpu.matmul %412, %318, %cst_218 {dimension_numbers = #tpu.dot_dimension_numbers<[1], [0], [0], [1], [0, 0, 1, 1], [], []>} : vector<8x64xf32>, vector<64x256xf32>, vector<8x256xf32> -> vector<8x256xf32>
    %414 = arith.addf %411, %413 : vector<8x256xf32>
    %415 = vector.broadcast %319 : vector<1x256xf32> to vector<8x256xf32>
    %416 = arith.addf %414, %415 : vector<8x256xf32>
    %417 = math.tanh %416 : vector<8x256xf32>
    %418 = arith.negf %416 : vector<8x256xf32>
    %419 = math.exp %418 : vector<8x256xf32>
    %cst_219 = arith.constant 1.000000e+00 : f32
    %420 = vector.broadcast %cst_219 : f32 to vector<8x256xf32>
    %421 = arith.addf %420, %419 : vector<8x256xf32>
    %422 = arith.divf %420, %421 : vector<8x256xf32>
    %423 = arith.select %5, %417, %422 : vector<8x256xi1>, vector<8x256xf32>
    %424 = vector.extract_strided_slice %423 {offsets = [0, 0], sizes = [8, 64], strides = [1, 1]} : vector<8x256xf32> to vector<8x64xf32>
    %425 = vector.extract_strided_slice %423 {offsets = [0, 64], sizes = [8, 64], strides = [1, 1]} : vector<8x256xf32> to vector<8x64xf32>
    %426 = vector.extract_strided_slice %423 {offsets = [0, 128], sizes = [8, 64], strides = [1, 1]} : vector<8x256xf32> to vector<8x64xf32>
    %427 = vector.extract_strided_slice %423 {offsets = [0, 192], sizes = [8, 64], strides = [1, 1]} : vector<8x256xf32> to vector<8x64xf32>
    %c0_220 = arith.constant 0 : index
    %c0_221 = arith.constant 0 : index
    %428 = vector.load %arg12[%c0_220, %c0_221] : memref<8x64xf32, #tpu.memory_space<vmem>>, vector<8x64xf32>
    %429 = arith.mulf %425, %428 : vector<8x64xf32>
    %430 = arith.mulf %424, %426 : vector<8x64xf32>
    %431 = arith.addf %429, %430 : vector<8x64xf32>
    %432 = math.tanh %431 : vector<8x64xf32>
    %433 = arith.mulf %427, %432 : vector<8x64xf32>
    %c0_222 = arith.constant 0 : index
    %c0_223 = arith.constant 0 : index
    %434 = vector.load %arg12[%c0_222, %c0_223] : memref<8x64xf32, #tpu.memory_space<vmem>>, vector<8x64xf32>
    tpu.vector_store %arg12[%c0_222, %c0_223], %431 {strides = array<i32>} : memref<8x64xf32, #tpu.memory_space<vmem>>, vector<8x64xf32>,
    %c0_224 = arith.constant 0 : index
    %c0_225 = arith.constant 0 : index
    %435 = vector.load %arg11[%c0_224, %c0_225] : memref<8x64xf32, #tpu.memory_space<vmem>>, vector<8x64xf32>
    tpu.vector_store %arg11[%c0_224, %c0_225], %433 {strides = array<i32>} : memref<8x64xf32, #tpu.memory_space<vmem>>, vector<8x64xf32>,
    %c4_i32_226 = arith.constant 4 : i32
    %c8_i32_227 = arith.constant 8 : i32
    %436 = arith.muli %c4_i32_226, %c8_i32_227 : i32
    %437 = tpu.assume_multiple %436, 8 : i32
    %438 = arith.index_cast %437 : i32 to index
    %c0_228 = arith.constant 0 : index
    %439 = vector.load %arg9[%438, %c0_228] : memref<64x256xf32, #tpu.memory_space<vmem>>, vector<8x256xf32>
    %c0_229 = arith.constant 0 : index
    %c0_230 = arith.constant 0 : index
    %440 = vector.load %arg11[%c0_229, %c0_230] : memref<8x64xf32, #tpu.memory_space<vmem>>, vector<8x64xf32>
    %cst_231 = arith.constant dense<0.000000e+00> : vector<8x256xf32>
    %441 = tpu.matmul %440, %318, %cst_231 {dimension_numbers = #tpu.dot_dimension_numbers<[1], [0], [0], [1], [0, 0, 1, 1], [], []>} : vector<8x64xf32>, vector<64x256xf32>, vector<8x256xf32> -> vector<8x256xf32>
    %442 = arith.addf %439, %441 : vector<8x256xf32>
    %443 = vector.broadcast %319 : vector<1x256xf32> to vector<8x256xf32>
    %444 = arith.addf %442, %443 : vector<8x256xf32>
    %445 = math.tanh %444 : vector<8x256xf32>
    %446 = arith.negf %444 : vector<8x256xf32>
    %447 = math.exp %446 : vector<8x256xf32>
    %cst_232 = arith.constant 1.000000e+00 : f32
    %448 = vector.broadcast %cst_232 : f32 to vector<8x256xf32>
    %449 = arith.addf %448, %447 : vector<8x256xf32>
    %450 = arith.divf %448, %449 : vector<8x256xf32>
    %451 = arith.select %5, %445, %450 : vector<8x256xi1>, vector<8x256xf32>
    %452 = vector.extract_strided_slice %451 {offsets = [0, 0], sizes = [8, 64], strides = [1, 1]} : vector<8x256xf32> to vector<8x64xf32>
    %453 = vector.extract_strided_slice %451 {offsets = [0, 64], sizes = [8, 64], strides = [1, 1]} : vector<8x256xf32> to vector<8x64xf32>
    %454 = vector.extract_strided_slice %451 {offsets = [0, 128], sizes = [8, 64], strides = [1, 1]} : vector<8x256xf32> to vector<8x64xf32>
    %455 = vector.extract_strided_slice %451 {offsets = [0, 192], sizes = [8, 64], strides = [1, 1]} : vector<8x256xf32> to vector<8x64xf32>
    %c0_233 = arith.constant 0 : index
    %c0_234 = arith.constant 0 : index
    %456 = vector.load %arg12[%c0_233, %c0_234] : memref<8x64xf32, #tpu.memory_space<vmem>>, vector<8x64xf32>
    %457 = arith.mulf %453, %456 : vector<8x64xf32>
    %458 = arith.mulf %452, %454 : vector<8x64xf32>
    %459 = arith.addf %457, %458 : vector<8x64xf32>
    %460 = math.tanh %459 : vector<8x64xf32>
    %461 = arith.mulf %455, %460 : vector<8x64xf32>
    %c0_235 = arith.constant 0 : index
    %c0_236 = arith.constant 0 : index
    %462 = vector.load %arg12[%c0_235, %c0_236] : memref<8x64xf32, #tpu.memory_space<vmem>>, vector<8x64xf32>
    tpu.vector_store %arg12[%c0_235, %c0_236], %459 {strides = array<i32>} : memref<8x64xf32, #tpu.memory_space<vmem>>, vector<8x64xf32>,
    %c0_237 = arith.constant 0 : index
    %c0_238 = arith.constant 0 : index
    %463 = vector.load %arg11[%c0_237, %c0_238] : memref<8x64xf32, #tpu.memory_space<vmem>>, vector<8x64xf32>
    tpu.vector_store %arg11[%c0_237, %c0_238], %461 {strides = array<i32>} : memref<8x64xf32, #tpu.memory_space<vmem>>, vector<8x64xf32>,
    %c5_i32_239 = arith.constant 5 : i32
    %c8_i32_240 = arith.constant 8 : i32
    %464 = arith.muli %c5_i32_239, %c8_i32_240 : i32
    %465 = tpu.assume_multiple %464, 8 : i32
    %466 = arith.index_cast %465 : i32 to index
    %c0_241 = arith.constant 0 : index
    %467 = vector.load %arg9[%466, %c0_241] : memref<64x256xf32, #tpu.memory_space<vmem>>, vector<8x256xf32>
    %c0_242 = arith.constant 0 : index
    %c0_243 = arith.constant 0 : index
    %468 = vector.load %arg11[%c0_242, %c0_243] : memref<8x64xf32, #tpu.memory_space<vmem>>, vector<8x64xf32>
    %cst_244 = arith.constant dense<0.000000e+00> : vector<8x256xf32>
    %469 = tpu.matmul %468, %318, %cst_244 {dimension_numbers = #tpu.dot_dimension_numbers<[1], [0], [0], [1], [0, 0, 1, 1], [], []>} : vector<8x64xf32>, vector<64x256xf32>, vector<8x256xf32> -> vector<8x256xf32>
    %470 = arith.addf %467, %469 : vector<8x256xf32>
    %471 = vector.broadcast %319 : vector<1x256xf32> to vector<8x256xf32>
    %472 = arith.addf %470, %471 : vector<8x256xf32>
    %473 = math.tanh %472 : vector<8x256xf32>
    %474 = arith.negf %472 : vector<8x256xf32>
    %475 = math.exp %474 : vector<8x256xf32>
    %cst_245 = arith.constant 1.000000e+00 : f32
    %476 = vector.broadcast %cst_245 : f32 to vector<8x256xf32>
    %477 = arith.addf %476, %475 : vector<8x256xf32>
    %478 = arith.divf %476, %477 : vector<8x256xf32>
    %479 = arith.select %5, %473, %478 : vector<8x256xi1>, vector<8x256xf32>
    %480 = vector.extract_strided_slice %479 {offsets = [0, 0], sizes = [8, 64], strides = [1, 1]} : vector<8x256xf32> to vector<8x64xf32>
    %481 = vector.extract_strided_slice %479 {offsets = [0, 64], sizes = [8, 64], strides = [1, 1]} : vector<8x256xf32> to vector<8x64xf32>
    %482 = vector.extract_strided_slice %479 {offsets = [0, 128], sizes = [8, 64], strides = [1, 1]} : vector<8x256xf32> to vector<8x64xf32>
    %483 = vector.extract_strided_slice %479 {offsets = [0, 192], sizes = [8, 64], strides = [1, 1]} : vector<8x256xf32> to vector<8x64xf32>
    %c0_246 = arith.constant 0 : index
    %c0_247 = arith.constant 0 : index
    %484 = vector.load %arg12[%c0_246, %c0_247] : memref<8x64xf32, #tpu.memory_space<vmem>>, vector<8x64xf32>
    %485 = arith.mulf %481, %484 : vector<8x64xf32>
    %486 = arith.mulf %480, %482 : vector<8x64xf32>
    %487 = arith.addf %485, %486 : vector<8x64xf32>
    %488 = math.tanh %487 : vector<8x64xf32>
    %489 = arith.mulf %483, %488 : vector<8x64xf32>
    %c0_248 = arith.constant 0 : index
    %c0_249 = arith.constant 0 : index
    %490 = vector.load %arg12[%c0_248, %c0_249] : memref<8x64xf32, #tpu.memory_space<vmem>>, vector<8x64xf32>
    tpu.vector_store %arg12[%c0_248, %c0_249], %487 {strides = array<i32>} : memref<8x64xf32, #tpu.memory_space<vmem>>, vector<8x64xf32>,
    %c0_250 = arith.constant 0 : index
    %c0_251 = arith.constant 0 : index
    %491 = vector.load %arg11[%c0_250, %c0_251] : memref<8x64xf32, #tpu.memory_space<vmem>>, vector<8x64xf32>
    tpu.vector_store %arg11[%c0_250, %c0_251], %489 {strides = array<i32>} : memref<8x64xf32, #tpu.memory_space<vmem>>, vector<8x64xf32>,
    %c6_i32_252 = arith.constant 6 : i32
    %c8_i32_253 = arith.constant 8 : i32
    %492 = arith.muli %c6_i32_252, %c8_i32_253 : i32
    %493 = tpu.assume_multiple %492, 8 : i32
    %494 = arith.index_cast %493 : i32 to index
    %c0_254 = arith.constant 0 : index
    %495 = vector.load %arg9[%494, %c0_254] : memref<64x256xf32, #tpu.memory_space<vmem>>, vector<8x256xf32>
    %c0_255 = arith.constant 0 : index
    %c0_256 = arith.constant 0 : index
    %496 = vector.load %arg11[%c0_255, %c0_256] : memref<8x64xf32, #tpu.memory_space<vmem>>, vector<8x64xf32>
    %cst_257 = arith.constant dense<0.000000e+00> : vector<8x256xf32>
    %497 = tpu.matmul %496, %318, %cst_257 {dimension_numbers = #tpu.dot_dimension_numbers<[1], [0], [0], [1], [0, 0, 1, 1], [], []>} : vector<8x64xf32>, vector<64x256xf32>, vector<8x256xf32> -> vector<8x256xf32>
    %498 = arith.addf %495, %497 : vector<8x256xf32>
    %499 = vector.broadcast %319 : vector<1x256xf32> to vector<8x256xf32>
    %500 = arith.addf %498, %499 : vector<8x256xf32>
    %501 = math.tanh %500 : vector<8x256xf32>
    %502 = arith.negf %500 : vector<8x256xf32>
    %503 = math.exp %502 : vector<8x256xf32>
    %cst_258 = arith.constant 1.000000e+00 : f32
    %504 = vector.broadcast %cst_258 : f32 to vector<8x256xf32>
    %505 = arith.addf %504, %503 : vector<8x256xf32>
    %506 = arith.divf %504, %505 : vector<8x256xf32>
    %507 = arith.select %5, %501, %506 : vector<8x256xi1>, vector<8x256xf32>
    %508 = vector.extract_strided_slice %507 {offsets = [0, 0], sizes = [8, 64], strides = [1, 1]} : vector<8x256xf32> to vector<8x64xf32>
    %509 = vector.extract_strided_slice %507 {offsets = [0, 64], sizes = [8, 64], strides = [1, 1]} : vector<8x256xf32> to vector<8x64xf32>
    %510 = vector.extract_strided_slice %507 {offsets = [0, 128], sizes = [8, 64], strides = [1, 1]} : vector<8x256xf32> to vector<8x64xf32>
    %511 = vector.extract_strided_slice %507 {offsets = [0, 192], sizes = [8, 64], strides = [1, 1]} : vector<8x256xf32> to vector<8x64xf32>
    %c0_259 = arith.constant 0 : index
    %c0_260 = arith.constant 0 : index
    %512 = vector.load %arg12[%c0_259, %c0_260] : memref<8x64xf32, #tpu.memory_space<vmem>>, vector<8x64xf32>
    %513 = arith.mulf %509, %512 : vector<8x64xf32>
    %514 = arith.mulf %508, %510 : vector<8x64xf32>
    %515 = arith.addf %513, %514 : vector<8x64xf32>
    %516 = math.tanh %515 : vector<8x64xf32>
    %517 = arith.mulf %511, %516 : vector<8x64xf32>
    %c0_261 = arith.constant 0 : index
    %c0_262 = arith.constant 0 : index
    %518 = vector.load %arg12[%c0_261, %c0_262] : memref<8x64xf32, #tpu.memory_space<vmem>>, vector<8x64xf32>
    tpu.vector_store %arg12[%c0_261, %c0_262], %515 {strides = array<i32>} : memref<8x64xf32, #tpu.memory_space<vmem>>, vector<8x64xf32>,
    %c0_263 = arith.constant 0 : index
    %c0_264 = arith.constant 0 : index
    %519 = vector.load %arg11[%c0_263, %c0_264] : memref<8x64xf32, #tpu.memory_space<vmem>>, vector<8x64xf32>
    tpu.vector_store %arg11[%c0_263, %c0_264], %517 {strides = array<i32>} : memref<8x64xf32, #tpu.memory_space<vmem>>, vector<8x64xf32>,
    %c7_i32_265 = arith.constant 7 : i32
    %c8_i32_266 = arith.constant 8 : i32
    %520 = arith.muli %c7_i32_265, %c8_i32_266 : i32
    %521 = tpu.assume_multiple %520, 8 : i32
    %522 = arith.index_cast %521 : i32 to index
    %c0_267 = arith.constant 0 : index
    %523 = vector.load %arg9[%522, %c0_267] : memref<64x256xf32, #tpu.memory_space<vmem>>, vector<8x256xf32>
    %c0_268 = arith.constant 0 : index
    %c0_269 = arith.constant 0 : index
    %524 = vector.load %arg11[%c0_268, %c0_269] : memref<8x64xf32, #tpu.memory_space<vmem>>, vector<8x64xf32>
    %cst_270 = arith.constant dense<0.000000e+00> : vector<8x256xf32>
    %525 = tpu.matmul %524, %318, %cst_270 {dimension_numbers = #tpu.dot_dimension_numbers<[1], [0], [0], [1], [0, 0, 1, 1], [], []>} : vector<8x64xf32>, vector<64x256xf32>, vector<8x256xf32> -> vector<8x256xf32>
    %526 = arith.addf %523, %525 : vector<8x256xf32>
    %527 = vector.broadcast %319 : vector<1x256xf32> to vector<8x256xf32>
    %528 = arith.addf %526, %527 : vector<8x256xf32>
    %529 = math.tanh %528 : vector<8x256xf32>
    %530 = arith.negf %528 : vector<8x256xf32>
    %531 = math.exp %530 : vector<8x256xf32>
    %cst_271 = arith.constant 1.000000e+00 : f32
    %532 = vector.broadcast %cst_271 : f32 to vector<8x256xf32>
    %533 = arith.addf %532, %531 : vector<8x256xf32>
    %534 = arith.divf %532, %533 : vector<8x256xf32>
    %535 = arith.select %5, %529, %534 : vector<8x256xi1>, vector<8x256xf32>
    %536 = vector.extract_strided_slice %535 {offsets = [0, 0], sizes = [8, 64], strides = [1, 1]} : vector<8x256xf32> to vector<8x64xf32>
    %537 = vector.extract_strided_slice %535 {offsets = [0, 64], sizes = [8, 64], strides = [1, 1]} : vector<8x256xf32> to vector<8x64xf32>
    %538 = vector.extract_strided_slice %535 {offsets = [0, 128], sizes = [8, 64], strides = [1, 1]} : vector<8x256xf32> to vector<8x64xf32>
    %539 = vector.extract_strided_slice %535 {offsets = [0, 192], sizes = [8, 64], strides = [1, 1]} : vector<8x256xf32> to vector<8x64xf32>
    %c0_272 = arith.constant 0 : index
    %c0_273 = arith.constant 0 : index
    %540 = vector.load %arg12[%c0_272, %c0_273] : memref<8x64xf32, #tpu.memory_space<vmem>>, vector<8x64xf32>
    %541 = arith.mulf %537, %540 : vector<8x64xf32>
    %542 = arith.mulf %536, %538 : vector<8x64xf32>
    %543 = arith.addf %541, %542 : vector<8x64xf32>
    %544 = math.tanh %543 : vector<8x64xf32>
    %545 = arith.mulf %539, %544 : vector<8x64xf32>
    %c0_274 = arith.constant 0 : index
    %c0_275 = arith.constant 0 : index
    %546 = vector.load %arg12[%c0_274, %c0_275] : memref<8x64xf32, #tpu.memory_space<vmem>>, vector<8x64xf32>
    tpu.vector_store %arg12[%c0_274, %c0_275], %543 {strides = array<i32>} : memref<8x64xf32, #tpu.memory_space<vmem>>, vector<8x64xf32>,
    %c0_276 = arith.constant 0 : index
    %c0_277 = arith.constant 0 : index
    %547 = vector.load %arg11[%c0_276, %c0_277] : memref<8x64xf32, #tpu.memory_space<vmem>>, vector<8x64xf32>
    tpu.vector_store %arg11[%c0_276, %c0_277], %545 {strides = array<i32>} : memref<8x64xf32, #tpu.memory_space<vmem>>, vector<8x64xf32>,
    %c8_i32_278 = arith.constant 8 : i32
    %c0_279 = arith.constant 0 : index
    %c0_280 = arith.constant 0 : index
    %548 = vector.load %arg11[%c0_279, %c0_280] : memref<8x64xf32, #tpu.memory_space<vmem>>, vector<8x64xf32>
    %c0_281 = arith.constant 0 : index
    %c0_282 = arith.constant 0 : index
    %549 = vector.load %arg12[%c0_281, %c0_282] : memref<8x64xf32, #tpu.memory_space<vmem>>, vector<8x64xf32>
    %550 = vector.extract_strided_slice %548 {offsets = [0, 0], sizes = [8, 32], strides = [1, 1]} : vector<8x64xf32> to vector<8x32xf32>
    %c2 = arith.constant 2 : index
    %c0_283 = arith.constant 0 : index
    %c0_284 = arith.constant 0 : index
    %551 = vector.load %arg7[%c2, %c0_283, %c0_284] : memref<4x8x32xf32, #tpu.memory_space<vmem>>, vector<1x8x32xf32>
    %552 = vector.shape_cast %551 : vector<1x8x32xf32> to vector<8x32xf32>
    %553 = vector.shape_cast %550 : vector<8x32xf32> to vector<1x8x32xf32>
    tpu.vector_store %arg7[%c2, %c0_283, %c0_284], %553 {strides = array<i32>} : memref<4x8x32xf32, #tpu.memory_space<vmem>>, vector<1x8x32xf32>,
    %554 = vector.extract_strided_slice %548 {offsets = [0, 32], sizes = [8, 32], strides = [1, 1]} : vector<8x64xf32> to vector<8x32xf32>
    %c3 = arith.constant 3 : index
    %c0_285 = arith.constant 0 : index
    %c0_286 = arith.constant 0 : index
    %555 = vector.load %arg7[%c3, %c0_285, %c0_286] : memref<4x8x32xf32, #tpu.memory_space<vmem>>, vector<1x8x32xf32>
    %556 = vector.shape_cast %555 : vector<1x8x32xf32> to vector<8x32xf32>
    %557 = vector.shape_cast %554 : vector<8x32xf32> to vector<1x8x32xf32>
    tpu.vector_store %arg7[%c3, %c0_285, %c0_286], %557 {strides = array<i32>} : memref<4x8x32xf32, #tpu.memory_space<vmem>>, vector<1x8x32xf32>,
    %558 = vector.extract_strided_slice %549 {offsets = [0, 0], sizes = [8, 32], strides = [1, 1]} : vector<8x64xf32> to vector<8x32xf32>
    %c2_287 = arith.constant 2 : index
    %c0_288 = arith.constant 0 : index
    %c0_289 = arith.constant 0 : index
    %559 = vector.load %arg8[%c2_287, %c0_288, %c0_289] : memref<4x8x32xf32, #tpu.memory_space<vmem>>, vector<1x8x32xf32>
    %560 = vector.shape_cast %559 : vector<1x8x32xf32> to vector<8x32xf32>
    %561 = vector.shape_cast %558 : vector<8x32xf32> to vector<1x8x32xf32>
    tpu.vector_store %arg8[%c2_287, %c0_288, %c0_289], %561 {strides = array<i32>} : memref<4x8x32xf32, #tpu.memory_space<vmem>>, vector<1x8x32xf32>,
    %562 = vector.extract_strided_slice %549 {offsets = [0, 32], sizes = [8, 32], strides = [1, 1]} : vector<8x64xf32> to vector<8x32xf32>
    %c3_290 = arith.constant 3 : index
    %c0_291 = arith.constant 0 : index
    %c0_292 = arith.constant 0 : index
    %563 = vector.load %arg8[%c3_290, %c0_291, %c0_292] : memref<4x8x32xf32, #tpu.memory_space<vmem>>, vector<1x8x32xf32>
    %564 = vector.shape_cast %563 : vector<1x8x32xf32> to vector<8x32xf32>
    %565 = vector.shape_cast %562 : vector<8x32xf32> to vector<1x8x32xf32>
    tpu.vector_store %arg8[%c3_290, %c0_291, %c0_292], %565 {strides = array<i32>} : memref<4x8x32xf32, #tpu.memory_space<vmem>>, vector<1x8x32xf32>,
    return
  }
}

</mosaic_0001>

<bundles_post_ra>
// kernel: encoder_forward.1
= control target key start
LH: loop header
LB: loop body
LE: loop exit
PB: predicated region body
PF: predicated region fallthrough
CT: control target
= control target key end

     0   :  { %vm195_vm0 = vcmask 523264   ;;  %v2600_v3 = vmov 0.0   ;;  %vm55_vm1 = vcmask 326656   ;;  %v28_v47 = vlaneseq  ;;  %s3533_s2 = inlined_call_operand.vmem [shape: f32[64,256], index: 2, kind: input, shape index: {}]   ;;  %s3534_s1 = inlined_call_operand.vmem [shape: f32[40,256], index: 1, kind: input, shape index: {}]   ;;  %s3535_s0 = inlined_call_operand.vmem [shape: f32[64,40], index: 0, kind: input, shape index: {}]   ;;  %s3536_s3 = inlined_call_operand.vmem [shape: f32[1,256], index: 3, kind: input, shape index: {}]   ;;  %s3537_s4 = inlined_call_operand.vmem [shape: f32[128,256], index: 4, kind: input, shape index: {}]   ;;  %s3538_s5 = inlined_call_operand.vmem [shape: f32[64,256], index: 5, kind: input, shape index: {}]   ;;  %s3539_s8 = inlined_call_operand.vmem [shape: f32[4,8,32], index: 8, kind: output, shape index: {1}]   ;;  %s3540_s7 = inlined_call_operand.vmem [shape: f32[4,8,32], index: 7, kind: output, shape index: {0}]   ;;  %s3541_s6 = inlined_call_operand.vmem [shape: f32[1,256], index: 6, kind: input, shape index: {}]  }
   0x1   :  { %v2651_v0 = vld [vmem:[%s3533_s2 + $0x70] sm:$0xff]  ;;  %v2656_v1 = vld [vmem:[%s3533_s2 + $0x78] sm:$0xff]  ;;  %v2661_v2 = vld [vmem:[%s3533_s2 + $0x60] sm:$0xff]  ;;  %196 = vst.msk [vmem:[#allocation4] sm:$0xff] %vm195_vm0, %v2600_v3  ;;  %vm324_vm11 = vcmask 1048064  }
   0x2   :  { %215 = vmatpush.msra.mxu2 %v2651_v0  ;;  %235 = vmatpush.msra.mxu3 %v2656_v1  ;;  %v2670_v4 = vld [vmem:[%s3533_s2 + $0x68] sm:$0xff]  ;;  %197 = vst.msk [vmem:[#allocation5] sm:$0xff] %vm195_vm0, %v2600_v3  ;;  %v2677_v5 = vld [vmem:[%s3533_s2 + $0x50] sm:$0xff]  ;;  %v2682_v6 = vld [vmem:[%s3533_s2 + $0x58] sm:$0xff]  ;;  %v29_v49 = vand.u32 127, %v28_v47 }
   0x3   :  { %v2689_v7 = vld [vmem:[%s3533_s2 + $0x40] sm:$0xff]  ;;  %v2694_v8 = vld [vmem:[%s3533_s2 + $0x48] sm:$0xff]  ;;  %v51_v11 = vld [vmem:[%s3534_s1 + $0x30] sm:$0xff] }
   0x4   :  { %216 = vmatpush.msra.mxu2 %v2661_v2  ;;  %236 = vmatpush.msra.mxu3 %v2670_v4  ;;  %v53_v9 = vld [vmem:[%s3534_s1 + $0x40] sm:$0xff]  ;;  %v54_v10 = vld [vmem:[%s3534_s1 + $0x48] sm:$0xff]  ;;  %v52_v12 = vld [vmem:[%s3534_s1 + $0x38] sm:$0xff]  ;;  %v2859_v54 = vadd.s32 128, %v29_v49 }
   0x5   :  { %v2713_v13 = vld [vmem:[%s3533_s2 + $0x30] sm:$0xff]  ;;  %v2718_v14 = vld [vmem:[%s3533_s2 + $0x38] sm:$0xff]  ;;  %91 = vmatpush.msra.mxu0 %v53_v9  ;;  %132 = vmatpush.msra.mxu1 %v54_v10  ;;  %v49_v15 = vld [vmem:[%s3534_s1 + $0x20] sm:$0xff] }
   0x6   :  { %217 = vmatpush.msra.mxu2 %v2677_v5  ;;  %237 = vmatpush.msra.mxu3 %v2682_v6  ;;  %v50_v16 = vld [vmem:[%s3534_s1 + $0x28] sm:$0xff]  ;;  %v2731_v17 = vld [vmem:[%s3533_s2 + $0x20] sm:$0xff]  ;;  %v47_v19 = vld [vmem:[%s3534_s1 + $0x10] sm:$0xff]  ;;  %vm34_vm7 = vcmp.lt.s32.totalorder %v2859_v54, 192 }
   0x7   :  { %v2736_v18 = vld [vmem:[%s3533_s2 + $0x28] sm:$0xff]  ;;  %92 = vmatpush.msra.mxu0 %v51_v11  ;;  %133 = vmatpush.msra.mxu1 %v52_v12  ;;  %v48_v20 = vld [vmem:[%s3534_s1 + $0x18] sm:$0xff]  ;;  %v2749_v21 = vld [vmem:[%s3533_s2 + $0x10] sm:$0xff] }
   0x8   :  { %218 = vmatpush.msra.mxu2 %v2689_v7  ;;  %238 = vmatpush.msra.mxu3 %v2694_v8  ;;  %v2754_v22 = vld [vmem:[%s3533_s2 + $0x18] sm:$0xff]  ;;  %v45_v23 = vld [vmem:[%s3534_s1] sm:$0xff]  ;;  %v46_v24 = vld [vmem:[%s3534_s1 + $0x8] sm:$0xff] }
   0x9   :  { %93 = vmatpush.msra.mxu0 %v49_v15  ;;  %134 = vmatpush.msra.mxu1 %v50_v16  ;;  %v2767_v25 = vld [vmem:[%s3533_s2] sm:$0xff]  ;;  %v2772_v26 = vld [vmem:[%s3533_s2 + $0x8] sm:$0xff]  ;;  %s2601_s2 = smov 64  }
   0xa   :  { %219 = vmatpush.msra.mxu2 %v2713_v13  ;;  %239 = vmatpush.msra.mxu3 %v2718_v14  ;;  %v203_v27 = vld [vmem:[#allocation4] sm:$0xff]  ;;  %v298_v29 = vld [vmem:[#allocation5] sm:$0xff] }
   0xb   :  { %94 = vmatpush.msra.mxu0 %v47_v19  ;;  %135 = vmatpush.msra.mxu1 %v48_v20  ;;  %v37_v28 = vld [vmem:[%s3535_s0] sm:$0xff] }
   0xc   :  { %220 = vmatpush.msra.mxu2 %v2731_v17  ;;  %240 = vmatpush.msra.mxu3 %v2736_v18  ;;  %v194_v30 = vld [vmem:[%s3536_s3] sm:$0x3] }
   0xd   :  { %95 = vmatpush.msra.mxu0 %v45_v23  ;;  %136 = vmatpush.msra.mxu1 %v46_v24  ;;  %v2853_v33 = vperm.slane %v194_v30, 0  ;;  %v2855_v34 = vperm.slane %v194_v30, 1 }
   0xe   :  { %221 = vmatpush.msra.mxu2 %v2749_v21  ;;  %241 = vmatpush.msra.mxu3 %v2754_v22 }
   0xf   :  { %2319 = vmatmul.msk.f32.vlgmr.msra.gmra.mxu0 %vm55_vm1, %v37_v28  ;;  %2327 = vmatmul.msk.f32.vlgmr.msra.gmra.mxu1 %vm55_vm1, %v37_v28 }
  0x10   :  { %222 = vmatpush.msra.mxu2 %v2767_v25  ;;  %242 = vmatpush.msra.mxu3 %v2772_v26 }
  0x11   :  { %2335 = vmatmul.msk.f32.vlgmr.msra.gmra.mxu2 %vm195_vm0, %v203_v27  ;;  %2336 = vmatmul.msk.f32.vlgmr.msra.gmra.mxu3 %vm195_vm0, %v203_v27 }
  0x12   :  { %300 = vrot.lane.b32.xlu0 %v298_v29, %s2601_s2  ;;  %343 = vmatpush.msrb.mxu2 %v2651_v0 }
  0x13   :  { %363 = vmatpush.msrb.mxu3 %v2656_v1  ;;  %732 = vmatpush.msrb.mxu1 %v2656_v1 }
  0x14   :  { %344 = vmatpush.msrb.mxu2 %v2661_v2  ;;  %712 = vmatpush.msrb.mxu0 %v2651_v0 }
  0x15   :  { %364 = vmatpush.msrb.mxu3 %v2670_v4  ;;  %733 = vmatpush.msrb.mxu1 %v2670_v4 }
  0x16   :  { %345 = vmatpush.msrb.mxu2 %v2677_v5  ;;  %713 = vmatpush.msrb.mxu0 %v2661_v2 }
  0x17   :  { %365 = vmatpush.msrb.mxu3 %v2682_v6  ;;  %734 = vmatpush.msrb.mxu1 %v2682_v6 }
  0x18   :  { %346 = vmatpush.msrb.mxu2 %v2689_v7  ;;  %714 = vmatpush.msrb.mxu0 %v2677_v5 }
  0x19   :  { %366 = vmatpush.msrb.mxu3 %v2694_v8  ;;  %735 = vmatpush.msrb.mxu1 %v2694_v8 }
  0x1a   :  { %347 = vmatpush.msrb.mxu2 %v2713_v13  ;;  %715 = vmatpush.msrb.mxu0 %v2689_v7 }
  0x1b   :  { %367 = vmatpush.msrb.mxu3 %v2718_v14  ;;  %736 = vmatpush.msrb.mxu1 %v2718_v14 }
  0x1c   :  { %348 = vmatpush.msrb.mxu2 %v2731_v17  ;;  %716 = vmatpush.msrb.mxu0 %v2713_v13 }
  0x1d   :  { %368 = vmatpush.msrb.mxu3 %v2736_v18  ;;  %737 = vmatpush.msrb.mxu1 %v2736_v18 }
  0x1e   :  { %349 = vmatpush.msrb.mxu2 %v2749_v21  ;;  %717 = vmatpush.msrb.mxu0 %v2731_v17 }
  0x1f   :  { %369 = vmatpush.msrb.mxu3 %v2754_v22  ;;  %738 = vmatpush.msrb.mxu1 %v2754_v22 }
  0x20   :  { %350 = vmatpush.msrb.mxu2 %v2767_v25  ;;  %718 = vmatpush.msrb.mxu0 %v2749_v21 }
  0x21   :  { %370 = vmatpush.msrb.mxu3 %v2772_v26  ;;  %739 = vmatpush.msrb.mxu1 %v2772_v26 }
  0x22   :  { %466 = vmatpush.msra.mxu2 %v2651_v0  ;;  %719 = vmatpush.msrb.mxu0 %v2767_v25 }
  0x23   :  { %486 = vmatpush.msra.mxu3 %v2656_v1  ;;  %974 = vmatpush.msra.mxu1 %v2656_v1 }
  0x24   :  { %467 = vmatpush.msra.mxu2 %v2661_v2  ;;  %954 = vmatpush.msra.mxu0 %v2651_v0 }
  0x25   :  { %487 = vmatpush.msra.mxu3 %v2670_v4  ;;  %975 = vmatpush.msra.mxu1 %v2670_v4 }
  0x26   :  { %468 = vmatpush.msra.mxu2 %v2677_v5  ;;  %955 = vmatpush.msra.mxu0 %v2661_v2 }
  0x27   :  { %488 = vmatpush.msra.mxu3 %v2682_v6  ;;  %976 = vmatpush.msra.mxu1 %v2682_v6 }
  0x28   :  { %469 = vmatpush.msra.mxu2 %v2689_v7  ;;  %956 = vmatpush.msra.mxu0 %v2677_v5 }
  0x29   :  { %489 = vmatpush.msra.mxu3 %v2694_v8  ;;  %977 = vmatpush.msra.mxu1 %v2694_v8 }
  0x2a   :  { %470 = vmatpush.msra.mxu2 %v2713_v13  ;;  %957 = vmatpush.msra.mxu0 %v2689_v7 }
  0x2b   :  { %490 = vmatpush.msra.mxu3 %v2718_v14  ;;  %978 = vmatpush.msra.mxu1 %v2718_v14 }
  0x2c   :  { %471 = vmatpush.msra.mxu2 %v2731_v17  ;;  %958 = vmatpush.msra.mxu0 %v2713_v13 }
  0x2d   :  { %491 = vmatpush.msra.mxu3 %v2736_v18  ;;  %979 = vmatpush.msra.mxu1 %v2736_v18 }
  0x2e   :  { %472 = vmatpush.msra.mxu2 %v2749_v21  ;;  %959 = vmatpush.msra.mxu0 %v2731_v17 }
  0x2f   :  { %492 = vmatpush.msra.mxu3 %v2754_v22  ;;  %980 = vmatpush.msra.mxu1 %v2754_v22 }
  0x30   :  { %473 = vmatpush.msra.mxu2 %v2767_v25  ;;  %960 = vmatpush.msra.mxu0 %v2749_v21 }
  0x31   :  { %493 = vmatpush.msra.mxu3 %v2772_v26  ;;  %981 = vmatpush.msra.mxu1 %v2772_v26 }
  0x32   :  { %961 = vmatpush.msra.mxu0 %v2767_v25 }
  0x84   :  { %v301_v24 = vpop.permute.xlu0 %300 }
  0x8c   :  { %v97_v31 = vpop.f32.mrf.mxu0  ;;  %v138_v32 = vpop.f32.mrf.mxu1 }
  0x94   :  { %v224_v35 = vpop.f32.mrf.mxu2  ;;  %v244_v36 = vpop.f32.mrf.mxu3 }
  0x95   :  { %v247_v37 = vadd.f32 %v224_v35, %v97_v31  ;;  %v248_v38 = vadd.f32 %v244_v36, %v138_v32  ;;  %v38_v32 = vld [vmem:[%s3535_s0 + $0x8] sm:$0xff] }
  0x96   :  { %2320 = vmatmul.msk.f32.gmra.mxu0 %vm55_vm1, %v38_v32  ;;  %2328 = vmatmul.msk.f32.gmra.mxu1 %vm55_vm1, %v38_v32 }
  0x97   :  { %v254_v39 = vadd.f32 %v2853_v33, %v247_v37  ;;  %v255_v40 = vadd.f32 %v2855_v34, %v248_v38 }
  0x99   :  { %v2337_v41 = vmul.f32 -1.442695, %v254_v39  ;;  %v2338_v42 = vmul.f32 -1.442695, %v255_v40 }
  0x9b   :  { %2408 = vpow2.f32 %v2337_v41 }
  0x9c   :  { %2410 = vpow2.f32 %v2338_v42 }
  0xa1   :  { %v2409_v43 = vpop.eup %2408 }
  0xa2   :  { %v2411_v44 = vpop.eup %2410  ;;  %v264_v45 = vadd.f32 1.0, %v2409_v43 }
  0xa3   :  { %v265_v46 = vadd.f32 1.0, %v2411_v44 }
  0xa4   :  { %2412 = vrcp.f32 %v264_v45  ;;  %v277_v55 = vand.u32 2147483648, %v264_v45  ;;  %v275_v58 = vand.u32 2147483647, %v264_v45  ;;  %vm271_vm4 = vweird.f32 %v264_v45 }
  0xa5   :  { %2414 = vrcp.f32 %v265_v46  ;;  %v292_v59 = vand.u32 2147483648, %v265_v46  ;;  %v290_v61 = vand.u32 2147483647, %v265_v46  ;;  %vm286_vm6 = vweird.f32 %v265_v46 }
  0xa6   :  { %2416 = vtanh.f32 %v255_v40  ;;  %v278_v63 = vor.u32 1.1754944e-38, %v277_v55  ;;  %vm276_vm8 = vcmp.eq.f32.partialorder %v275_v58, 8.507059e+37 }
  0xa7   :  { %v293_v11 = vor.u32 1.1754944e-38, %v292_v59  ;;  %vm291_vm10 = vcmp.eq.f32.partialorder %v290_v61, 8.507059e+37 }
  0xaa   :  { %v2413_v48 = vpop.eup %2412 }
  0xab   :  { %v2415_v50 = vpop.eup %2414  ;;  %v267_v51 = vmul.f32 %v2413_v48, %v264_v45  ;;  %vm272_vm2 = vweird.f32 %v2413_v48 }
  0xac   :  { %v282_v52 = vmul.f32 %v2415_v50, %v265_v46  ;;  %vm287_vm3 = vweird.f32 %v2415_v50  ;;  %vm273_vm5 = vmor %vm271_vm4, %vm272_vm2  ;;  %v2417_v12 = vpop.eup %2416 }
  0xad   :  { %v268_v53 = vsub.f32 1.0, %v267_v51  ;;  %vm288_vm9 = vmor %vm286_vm6, %vm287_vm3 }
  0xae   :  { %v283_v56 = vsub.f32 1.0, %v282_v52 }
  0xaf   :  { %v269_v57 = vmul.f32 %v2413_v48, %v268_v53 }
  0xb0   :  { %v284_v60 = vmul.f32 %v2415_v50, %v283_v56 }
  0xb1   :  { %v270_v62 = vadd.f32 %v2413_v48, %v269_v57 }
  0xb2   :  { %v285_v9 = vadd.f32 %v2415_v50, %v284_v60 }
  0xb3   :  { %v274_v10 = vsel %vm273_vm5, %v2413_v48, %v270_v62 }
  0xb4   :  { %v279_v15 = vsel %vm276_vm8, %v278_v63, %v274_v10  ;;  %v289_v16 = vsel %vm288_vm9, %v2415_v50, %v285_v9 }
  0xb5   :  { %v294_v19 = vsel %vm291_vm10, %v293_v11, %v289_v16  ;;  %v303_v27 = vmul.f32 %v301_v24, %v279_v15 }
  0xb6   :  { %v297_v20 = vsel %vm34_vm7, %v2417_v12, %v294_v19 }
  0xb7   :  { %v304_v23 = vmul.f32 %v297_v20, %v279_v15 }
  0xb9   :  { %306 = vrot.lane.b32.xlu0 %v304_v23, %s2601_s2 }
 0x113   :  { %v100_v39 = vpop.f32.mrf.mxu0  ;;  %v141_v40 = vpop.f32.mrf.mxu1 }
 0x12b   :  { %v307_v28 = vpop.permute.xlu0 %306 }
 0x12c   :  { %v309_v29 = vadd.f32 %v307_v28, %v303_v27 }
 0x12e   :  { %2418 = vtanh.f32 %v309_v29 }
 0x134   :  { %v2419_v30 = vpop.eup %2418 }
 0x135   :  { %v311_v31 = vmul.f32 %v2419_v30, %v297_v20 }
 0x137   :  { %318 = vrot.lane.b32.xlu1 %v311_v31, %s2601_s2  ;;  %325 = vst.msk [vmem:[#allocation3 + $0x38] sm:$0xff] %vm324_vm11, %v311_v31 }
 0x13f   :  { %313 = vrot.lane.b32.xlu1 %v309_v29, %s2601_s2 }
 0x1a9   :  { %v319_v35 = vpop.permute.xlu1 %318 }
 0x1aa   :  { %321 = vst.msk [vmem:[#allocation4] sm:$0xff] %vm195_vm0, %v319_v35 }
 0x1ab   :  { %322 = vst.msk [vmem:[#allocation3] sm:$0xff] %vm195_vm0, %v319_v35 }
 0x1b1   :  { %v314_v36 = vpop.permute.xlu1 %313  ;;  %v331_v37 = vld [vmem:[#allocation4] sm:$0xff] }
 0x1b2   :  { %316 = vst.msk [vmem:[#allocation5] sm:$0xff] %vm195_vm0, %v314_v36  ;;  %2339 = vmatmul.msk.f32.vlgmr.msrb.gmra.mxu2 %vm195_vm0, %v331_v37  ;;  %2340 = vmatmul.msk.f32.vlgmr.msrb.gmra.mxu3 %vm195_vm0, %v331_v37 }
 0x1b3   :  { %589 = vmatpush.msrb.mxu2 %v2651_v0  ;;  %609 = vmatpush.msrb.mxu3 %v2656_v1 }
 0x1b5   :  { %590 = vmatpush.msrb.mxu2 %v2661_v2  ;;  %610 = vmatpush.msrb.mxu3 %v2670_v4 }
 0x1b7   :  { %591 = vmatpush.msrb.mxu2 %v2677_v5  ;;  %611 = vmatpush.msrb.mxu3 %v2682_v6 }
 0x1b9   :  { %v421_v38 = vld [vmem:[#allocation5] sm:$0xff]  ;;  %592 = vmatpush.msrb.mxu2 %v2689_v7  ;;  %612 = vmatpush.msrb.mxu3 %v2694_v8 }
 0x1ba   :  { %423 = vrot.lane.b32.xlu2 %v421_v38, %s2601_s2  ;;  %v39_v38 = vld [vmem:[%s3535_s0 + $0x10] sm:$0xff] }
 0x1bb   :  { %593 = vmatpush.msrb.mxu2 %v2713_v13  ;;  %613 = vmatpush.msrb.mxu3 %v2718_v14 }
 0x1bc   :  { %2321 = vmatmul.msk.f32.gmra.mxu0 %vm55_vm1, %v39_v38  ;;  %2329 = vmatmul.msk.f32.gmra.mxu1 %vm55_vm1, %v39_v38 }
 0x1bd   :  { %594 = vmatpush.msrb.mxu2 %v2731_v17  ;;  %614 = vmatpush.msrb.mxu3 %v2736_v18 }
 0x1bf   :  { %595 = vmatpush.msrb.mxu2 %v2749_v21  ;;  %615 = vmatpush.msrb.mxu3 %v2754_v22 }
 0x1c1   :  { %596 = vmatpush.msrb.mxu2 %v2767_v25  ;;  %616 = vmatpush.msrb.mxu3 %v2772_v26 }
 0x214   :  { %v424_v30 = vpop.permute.xlu2 %423 }
 0x235   :  { %v352_v41 = vpop.f32.mrf.mxu2  ;;  %v372_v42 = vpop.f32.mrf.mxu3 }
 0x236   :  { %v375_v43 = vadd.f32 %v352_v41, %v100_v39  ;;  %v376_v44 = vadd.f32 %v372_v42, %v141_v40 }
 0x238   :  { %v377_v45 = vadd.f32 %v375_v43, %v2853_v33  ;;  %v378_v46 = vadd.f32 %v376_v44, %v2855_v34 }
 0x239   :  { %v103_v43 = vpop.f32.mrf.mxu0  ;;  %v144_v44 = vpop.f32.mrf.mxu1 }
 0x23a   :  { %v2341_v47 = vmul.f32 -1.442695, %v377_v45  ;;  %v2342_v48 = vmul.f32 -1.442695, %v378_v46 }
 0x23c   :  { %2420 = vpow2.f32 %v2341_v47 }
 0x23d   :  { %2422 = vpow2.f32 %v2342_v48 }
 0x242   :  { %v2421_v49 = vpop.eup %2420 }
 0x243   :  { %v2423_v50 = vpop.eup %2422  ;;  %v387_v51 = vadd.f32 1.0, %v2421_v49 }
 0x244   :  { %v388_v52 = vadd.f32 1.0, %v2423_v50 }
 0x245   :  { %2424 = vrcp.f32 %v387_v51  ;;  %v400_v59 = vand.u32 2147483648, %v387_v51  ;;  %v398_v62 = vand.u32 2147483647, %v387_v51  ;;  %vm394_vm14 = vweird.f32 %v387_v51 }
 0x246   :  { %2426 = vrcp.f32 %v388_v52  ;;  %v415_v63 = vand.u32 2147483648, %v388_v52  ;;  %v413_v10 = vand.u32 2147483647, %v388_v52  ;;  %vm409_vm2 = vweird.f32 %v388_v52 }
 0x247   :  { %2428 = vtanh.f32 %v378_v46  ;;  %v401_v12 = vor.u32 1.1754944e-38, %v400_v59  ;;  %vm399_vm3 = vcmp.eq.f32.partialorder %v398_v62, 8.507059e+37 }
 0x248   :  { %v416_v19 = vor.u32 1.1754944e-38, %v415_v63  ;;  %vm414_vm5 = vcmp.eq.f32.partialorder %v413_v10, 8.507059e+37 }
 0x24b   :  { %v2425_v53 = vpop.eup %2424 }
 0x24c   :  { %v2427_v55 = vpop.eup %2426  ;;  %v390_v56 = vmul.f32 %v2425_v53, %v387_v51  ;;  %vm395_vm12 = vweird.f32 %v2425_v53 }
 0x24d   :  { %v405_v57 = vmul.f32 %v2427_v55, %v388_v52  ;;  %vm410_vm13 = vweird.f32 %v2427_v55  ;;  %vm396_vm15 = vmor %vm394_vm14, %vm395_vm12  ;;  %v2429_v20 = vpop.eup %2428 }
 0x24e   :  { %v391_v58 = vsub.f32 1.0, %v390_v56  ;;  %vm411_vm4 = vmor %vm409_vm2, %vm410_vm13 }
 0x24f   :  { %v406_v60 = vsub.f32 1.0, %v405_v57 }
 0x250   :  { %v392_v61 = vmul.f32 %v2425_v53, %v391_v58 }
 0x251   :  { %v407_v9 = vmul.f32 %v2427_v55, %v406_v60 }
 0x252   :  { %v393_v11 = vadd.f32 %v2425_v53, %v392_v61 }
 0x253   :  { %v408_v15 = vadd.f32 %v2427_v55, %v407_v9 }
 0x254   :  { %v397_v16 = vsel %vm396_vm15, %v2425_v53, %v393_v11 }
 0x255   :  { %v402_v23 = vsel %vm399_vm3, %v401_v12, %v397_v16  ;;  %v412_v24 = vsel %vm411_vm4, %v2427_v55, %v408_v15 }
 0x256   :  { %v417_v27 = vsel %vm414_vm5, %v416_v19, %v412_v24  ;;  %v426_v31 = vmul.f32 %v424_v30, %v402_v23 }
 0x257   :  { %v420_v28 = vsel %vm34_vm7, %v2429_v20, %v417_v27 }
 0x258   :  { %v427_v29 = vmul.f32 %v420_v28, %v402_v23 }
 0x25a   :  { %429 = vrot.lane.b32.xlu2 %v427_v29, %s2601_s2 }
 0x2b4   :  { %v430_v32 = vpop.permute.xlu2 %429 }
 0x2b5   :  { %v432_v35 = vadd.f32 %v430_v32, %v426_v31 }
 0x2b7   :  { %2430 = vtanh.f32 %v432_v35  ;;  %436 = vrot.lane.b32.xlu1 %v432_v35, %s2601_s2 }
 0x2bd   :  { %v2431_v36 = vpop.eup %2430 }
 0x2be   :  { %v434_v37 = vmul.f32 %v2431_v36, %v420_v28 }
 0x2c0   :  { %441 = vrot.lane.b32.xlu0 %v434_v37, %s2601_s2  ;;  %448 = vst.msk [vmem:[#allocation3 + $0x30] sm:$0xff] %vm324_vm11, %v434_v37 }
 0x329   :  { %v437_v39 = vpop.permute.xlu1 %436 }
 0x32a   :  { %439 = vst.msk [vmem:[#allocation5] sm:$0xff] %vm195_vm0, %v437_v39 }
 0x331   :  { %v544_v40 = vld [vmem:[#allocation5] sm:$0xff] }
 0x332   :  { %546 = vrot.lane.b32.xlu2 %v544_v40, %s2601_s2  ;;  %v442_v41 = vpop.permute.xlu0 %441 }
 0x333   :  { %444 = vst.msk [vmem:[#allocation4] sm:$0xff] %vm195_vm0, %v442_v41 }
 0x334   :  { %446 = vst.msk [vmem:[#allocation3 + $0x8] sm:$0xff] %vm195_vm0, %v442_v41 }
 0x33a   :  { %v454_v42 = vld [vmem:[#allocation4] sm:$0xff] }
 0x33b   :  { %2343 = vmatmul.msk.f32.vlgmr.msra.gmra.mxu2 %vm195_vm0, %v454_v42  ;;  %2344 = vmatmul.msk.f32.vlgmr.msra.gmra.mxu3 %vm195_vm0, %v454_v42 }
 0x33c   :  { %833 = vmatpush.msra.mxu2 %v2651_v0  ;;  %853 = vmatpush.msra.mxu3 %v2656_v1 }
 0x33e   :  { %834 = vmatpush.msra.mxu2 %v2661_v2  ;;  %854 = vmatpush.msra.mxu3 %v2670_v4 }
 0x340   :  { %835 = vmatpush.msra.mxu2 %v2677_v5  ;;  %855 = vmatpush.msra.mxu3 %v2682_v6 }
 0x342   :  { %836 = vmatpush.msra.mxu2 %v2689_v7  ;;  %856 = vmatpush.msra.mxu3 %v2694_v8 }
 0x344   :  { %837 = vmatpush.msra.mxu2 %v2713_v13  ;;  %857 = vmatpush.msra.mxu3 %v2718_v14 }
 0x346   :  { %838 = vmatpush.msra.mxu2 %v2731_v17  ;;  %858 = vmatpush.msra.mxu3 %v2736_v18 }
 0x348   :  { %839 = vmatpush.msra.mxu2 %v2749_v21  ;;  %859 = vmatpush.msra.mxu3 %v2754_v22 }
 0x34a   :  { %840 = vmatpush.msra.mxu2 %v2767_v25  ;;  %860 = vmatpush.msra.mxu3 %v2772_v26 }
 0x38c   :  { %v547_v36 = vpop.permute.xlu2 %546 }
 0x3be   :  { %v475_v45 = vpop.f32.mrf.mxu2  ;;  %v495_v46 = vpop.f32.mrf.mxu3 }
 0x3bf   :  { %v498_v47 = vadd.f32 %v475_v45, %v103_v43  ;;  %v499_v48 = vadd.f32 %v495_v46, %v144_v44  ;;  %v40_v44 = vld [vmem:[%s3535_s0 + $0x18] sm:$0xff] }
 0x3c0   :  { %2322 = vmatmul.msk.f32.gmra.mxu0 %vm55_vm1, %v40_v44  ;;  %2330 = vmatmul.msk.f32.gmra.mxu1 %vm55_vm1, %v40_v44 }
 0x3c1   :  { %v500_v49 = vadd.f32 %v498_v47, %v2853_v33  ;;  %v501_v50 = vadd.f32 %v499_v48, %v2855_v34 }
 0x3c3   :  { %v2345_v51 = vmul.f32 -1.442695, %v500_v49  ;;  %v2346_v52 = vmul.f32 -1.442695, %v501_v50 }
 0x3c5   :  { %2432 = vpow2.f32 %v2345_v51 }
 0x3c6   :  { %2434 = vpow2.f32 %v2346_v52 }
 0x3cb   :  { %v2433_v53 = vpop.eup %2432 }
 0x3cc   :  { %v2435_v55 = vpop.eup %2434  ;;  %v510_v56 = vadd.f32 1.0, %v2433_v53 }
 0x3cd   :  { %v511_v57 = vadd.f32 1.0, %v2435_v55 }
 0x3ce   :  { %2436 = vrcp.f32 %v510_v56  ;;  %v523_v63 = vand.u32 2147483648, %v510_v56  ;;  %v521_v11 = vand.u32 2147483647, %v510_v56  ;;  %vm517_vm9 = vweird.f32 %v510_v56 }
 0x3cf   :  { %2438 = vrcp.f32 %v511_v57  ;;  %v538_v12 = vand.u32 2147483648, %v511_v57  ;;  %v536_v16 = vand.u32 2147483647, %v511_v57  ;;  %vm532_vm12 = vweird.f32 %v511_v57 }
 0x3d0   :  { %2440 = vtanh.f32 %v501_v50  ;;  %v524_v20 = vor.u32 1.1754944e-38, %v523_v63  ;;  %vm522_vm13 = vcmp.eq.f32.partialorder %v521_v11, 8.507059e+37 }
 0x3d1   :  { %v539_v27 = vor.u32 1.1754944e-38, %v538_v12  ;;  %vm537_vm15 = vcmp.eq.f32.partialorder %v536_v16, 8.507059e+37  ;;  %v41_v16 = vld [vmem:[%s3535_s0 + $0x20] sm:$0xff] }
 0x3d2   :  { %2323 = vmatmul.msk.f32.gmra.mxu0 %vm55_vm1, %v41_v16  ;;  %2331 = vmatmul.msk.f32.gmra.mxu1 %vm55_vm1, %v41_v16 }
 0x3d4   :  { %v2437_v58 = vpop.eup %2436 }
 0x3d5   :  { %v2439_v59 = vpop.eup %2438  ;;  %v513_v60 = vmul.f32 %v2437_v58, %v510_v56  ;;  %vm518_vm6 = vweird.f32 %v2437_v58 }
 0x3d6   :  { %v528_v61 = vmul.f32 %v2439_v59, %v511_v57  ;;  %vm533_vm8 = vweird.f32 %v2439_v59  ;;  %vm519_vm10 = vmor %vm517_vm9, %vm518_vm6  ;;  %v2441_v28 = vpop.eup %2440 }
 0x3d7   :  { %v514_v62 = vsub.f32 1.0, %v513_v60  ;;  %vm534_vm14 = vmor %vm532_vm12, %vm533_vm8 }
 0x3d8   :  { %v529_v9 = vsub.f32 1.0, %v528_v61 }
 0x3d9   :  { %v515_v10 = vmul.f32 %v2437_v58, %v514_v62 }
 0x3da   :  { %v530_v15 = vmul.f32 %v2439_v59, %v529_v9 }
 0x3db   :  { %v516_v19 = vadd.f32 %v2437_v58, %v515_v10 }
 0x3dc   :  { %v531_v23 = vadd.f32 %v2439_v59, %v530_v15 }
 0x3dd   :  { %v520_v24 = vsel %vm519_vm10, %v2437_v58, %v516_v19  ;;  %v42_v19 = vld [vmem:[%s3535_s0 + $0x28] sm:$0xff] }
 0x3de   :  { %v525_v29 = vsel %vm522_vm13, %v524_v20, %v520_v24  ;;  %v535_v30 = vsel %vm534_vm14, %v2439_v59, %v531_v23  ;;  %2324 = vmatmul.msk.f32.gmra.mxu0 %vm55_vm1, %v42_v19  ;;  %2332 = vmatmul.msk.f32.gmra.mxu1 %vm55_vm1, %v42_v19  ;;  %v43_v20 = vld [vmem:[%s3535_s0 + $0x30] sm:$0xff] }
 0x3df   :  { %v540_v31 = vsel %vm537_vm15, %v539_v27, %v535_v30  ;;  %v549_v37 = vmul.f32 %v547_v36, %v525_v29 }
 0x3e0   :  { %v543_v32 = vsel %vm34_vm7, %v2441_v28, %v540_v31  ;;  %v44_v31 = vld [vmem:[%s3535_s0 + $0x38] sm:$0xff] }
 0x3e1   :  { %v550_v35 = vmul.f32 %v543_v32, %v525_v29 }
 0x3e3   :  { %552 = vrot.lane.b32.xlu0 %v550_v35, %s2601_s2 }
 0x3e6   :  { %2325 = vmatmul.msk.f32.gmra.mxu0 %vm55_vm1, %v43_v20  ;;  %2333 = vmatmul.msk.f32.gmra.mxu1 %vm55_vm1, %v43_v20 }
 0x3ee   :  { %2326 = vmatmul.msk.f32.gmra.mxu0 %vm55_vm1, %v44_v31  ;;  %2334 = vmatmul.msk.f32.gmra.mxu1 %vm55_vm1, %v44_v31 }
 0x455   :  { %v553_v38 = vpop.permute.xlu0 %552 }
 0x456   :  { %v555_v39 = vadd.f32 %v553_v38, %v549_v37 }
 0x458   :  { %2442 = vtanh.f32 %v555_v39  ;;  %559 = vrot.lane.b32.xlu2 %v555_v39, %s2601_s2 }
 0x45e   :  { %v2443_v40 = vpop.eup %2442 }
 0x45f   :  { %v557_v41 = vmul.f32 %v2443_v40, %v543_v32 }
 0x461   :  { %564 = vrot.lane.b32.xlu1 %v557_v41, %s2601_s2  ;;  %571 = vst.msk [vmem:[#allocation3 + $0x28] sm:$0xff] %vm324_vm11, %v557_v41 }
 0x4b2   :  { %v560_v42 = vpop.permute.xlu2 %559 }
 0x4b3   :  { %562 = vst.msk [vmem:[#allocation5] sm:$0xff] %vm195_vm0, %v560_v42 }
 0x4ba   :  { %v667_v43 = vld [vmem:[#allocation5] sm:$0xff] }
 0x4bb   :  { %669 = vrot.lane.b32.xlu0 %v667_v43, %s2601_s2 }
 0x4d3   :  { %v565_v45 = vpop.permute.xlu1 %564 }
 0x4d4   :  { %567 = vst.msk [vmem:[#allocation4] sm:$0xff] %vm195_vm0, %v565_v45 }
 0x4d5   :  { %569 = vst.msk [vmem:[#allocation3 + $0x10] sm:$0xff] %vm195_vm0, %v565_v45 }
 0x4db   :  { %v577_v46 = vld [vmem:[#allocation4] sm:$0xff] }
 0x4dc   :  { %2347 = vmatmul.msk.f32.vlgmr.msrb.gmra.mxu2 %vm195_vm0, %v577_v46  ;;  %2348 = vmatmul.msk.f32.vlgmr.msrb.gmra.mxu3 %vm195_vm0, %v577_v46 }
 0x4dd   :  { %1075 = vmatpush.msrb.mxu2 %v2651_v0  ;;  %1095 = vmatpush.msrb.mxu3 %v2656_v1  ;;  %v106_v0 = vpop.f32.mrf.mxu0  ;;  %v147_v1 = vpop.f32.mrf.mxu1 }
 0x4df   :  { %1076 = vmatpush.msrb.mxu2 %v2661_v2  ;;  %1096 = vmatpush.msrb.mxu3 %v2670_v4 }
 0x4e1   :  { %1077 = vmatpush.msrb.mxu2 %v2677_v5  ;;  %1097 = vmatpush.msrb.mxu3 %v2682_v6 }
 0x4e3   :  { %1078 = vmatpush.msrb.mxu2 %v2689_v7  ;;  %1098 = vmatpush.msrb.mxu3 %v2694_v8 }
 0x4e5   :  { %1079 = vmatpush.msrb.mxu2 %v2713_v13  ;;  %1099 = vmatpush.msrb.mxu3 %v2718_v14  ;;  %v109_v38 = vpop.f32.mrf.mxu0  ;;  %v150_v39 = vpop.f32.mrf.mxu1 }
 0x4e7   :  { %1080 = vmatpush.msrb.mxu2 %v2731_v17  ;;  %1100 = vmatpush.msrb.mxu3 %v2736_v18 }
 0x4e9   :  { %1081 = vmatpush.msrb.mxu2 %v2749_v21  ;;  %1101 = vmatpush.msrb.mxu3 %v2754_v22 }
 0x4eb   :  { %1082 = vmatpush.msrb.mxu2 %v2767_v25  ;;  %1102 = vmatpush.msrb.mxu3 %v2772_v26 }
 0x4ed   :  { %v2999_v40 = vpop.f32.mrf.mxu0  ;;  %v3001_v41 = vpop.f32.mrf.mxu1 }
 0x4f5   :  { %v3003_v42 = vpop.f32.mrf.mxu0  ;;  %v3005_v43 = vpop.f32.mrf.mxu1 }
 0x4fd   :  { %v3007_v44 = vpop.f32.mrf.mxu0  ;;  %v3009_v45 = vpop.f32.mrf.mxu1 }
 0x52d   :  { %v670_v23 = vpop.permute.xlu0 %669 }
 0x55f   :  { %v598_v2 = vpop.f32.mrf.mxu2  ;;  %v618_v4 = vpop.f32.mrf.mxu3 }
 0x560   :  { %v621_v5 = vadd.f32 %v598_v2, %v106_v0  ;;  %v622_v6 = vadd.f32 %v618_v4, %v147_v1 }
 0x562   :  { %v623_v7 = vadd.f32 %v621_v5, %v2853_v33  ;;  %v624_v8 = vadd.f32 %v622_v6, %v2855_v34 }
 0x564   :  { %v2349_v13 = vmul.f32 -1.442695, %v623_v7  ;;  %v2350_v14 = vmul.f32 -1.442695, %v624_v8 }
 0x566   :  { %2444 = vpow2.f32 %v2349_v13 }
 0x567   :  { %2446 = vpow2.f32 %v2350_v14 }
 0x56c   :  { %v2445_v17 = vpop.eup %2444 }
 0x56d   :  { %v2447_v18 = vpop.eup %2446  ;;  %v633_v21 = vadd.f32 1.0, %v2445_v17 }
 0x56e   :  { %v634_v22 = vadd.f32 1.0, %v2447_v18 }
 0x56f   :  { %2448 = vrcp.f32 %v633_v21  ;;  %v646_v50 = vand.u32 2147483648, %v633_v21  ;;  %v644_v53 = vand.u32 2147483647, %v633_v21  ;;  %vm640_vm4 = vweird.f32 %v633_v21 }
 0x570   :  { %2450 = vrcp.f32 %v634_v22  ;;  %v661_v55 = vand.u32 2147483648, %v634_v22  ;;  %v659_v57 = vand.u32 2147483647, %v634_v22  ;;  %vm655_vm6 = vweird.f32 %v634_v22 }
 0x571   :  { %2452 = vtanh.f32 %v624_v8  ;;  %v647_v59 = vor.u32 1.1754944e-38, %v646_v50  ;;  %vm645_vm8 = vcmp.eq.f32.partialorder %v644_v53, 8.507059e+37 }
 0x572   :  { %v662_v62 = vor.u32 1.1754944e-38, %v661_v55  ;;  %vm660_vm10 = vcmp.eq.f32.partialorder %v659_v57, 8.507059e+37 }
 0x575   :  { %v2449_v25 = vpop.eup %2448 }
 0x576   :  { %v2451_v26 = vpop.eup %2450  ;;  %v636_v47 = vmul.f32 %v2449_v25, %v633_v21  ;;  %vm641_vm2 = vweird.f32 %v2449_v25 }
 0x577   :  { %v651_v48 = vmul.f32 %v2451_v26, %v634_v22  ;;  %vm656_vm3 = vweird.f32 %v2451_v26  ;;  %vm642_vm5 = vmor %vm640_vm4, %vm641_vm2  ;;  %v2453_v63 = vpop.eup %2452 }
 0x578   :  { %v637_v49 = vsub.f32 1.0, %v636_v47  ;;  %vm657_vm9 = vmor %vm655_vm6, %vm656_vm3 }
 0x579   :  { %v652_v51 = vsub.f32 1.0, %v651_v48 }
 0x57a   :  { %v638_v52 = vmul.f32 %v2449_v25, %v637_v49 }
 0x57b   :  { %v653_v56 = vmul.f32 %v2451_v26, %v652_v51 }
 0x57c   :  { %v639_v58 = vadd.f32 %v2449_v25, %v638_v52 }
 0x57d   :  { %v654_v60 = vadd.f32 %v2451_v26, %v653_v56 }
 0x57e   :  { %v643_v61 = vsel %vm642_vm5, %v2449_v25, %v639_v58 }
 0x57f   :  { %v648_v9 = vsel %vm645_vm8, %v647_v59, %v643_v61  ;;  %v658_v10 = vsel %vm657_vm9, %v2451_v26, %v654_v60 }
 0x580   :  { %v663_v11 = vsel %vm660_vm10, %v662_v62, %v658_v10  ;;  %v672_v24 = vmul.f32 %v670_v23, %v648_v9 }
 0x581   :  { %v666_v12 = vsel %vm34_vm7, %v2453_v63, %v663_v11 }
 0x582   :  { %v673_v15 = vmul.f32 %v666_v12, %v648_v9 }
 0x584   :  { %675 = vrot.lane.b32.xlu1 %v673_v15, %s2601_s2 }
 0x5f6   :  { %v676_v27 = vpop.permute.xlu1 %675 }
 0x5f7   :  { %v678_v28 = vadd.f32 %v676_v27, %v672_v24 }
 0x5f9   :  { %2454 = vtanh.f32 %v678_v28  ;;  %682 = vrot.lane.b32.xlu0 %v678_v28, %s2601_s2 }
 0x5ff   :  { %v2455_v29 = vpop.eup %2454 }
 0x600   :  { %v680_v30 = vmul.f32 %v2455_v29, %v666_v12 }
 0x602   :  { %687 = vrot.lane.b32.xlu2 %v680_v30, %s2601_s2  ;;  %694 = vst.msk [vmem:[#allocation3 + $0x20] sm:$0xff] %vm324_vm11, %v680_v30 }
 0x65c   :  { %v688_v32 = vpop.permute.xlu2 %687 }
 0x65d   :  { %690 = vst.msk [vmem:[#allocation4] sm:$0xff] %vm195_vm0, %v688_v32 }
 0x65e   :  { %692 = vst.msk [vmem:[#allocation3 + $0x18] sm:$0xff] %vm195_vm0, %v688_v32 }
 0x664   :  { %v700_v35 = vld [vmem:[#allocation4] sm:$0xff] }
 0x665   :  { %2351 = vmatmul.msk.f32.vlgmr.msrb.gmra.mxu0 %vm195_vm0, %v700_v35  ;;  %2352 = vmatmul.msk.f32.vlgmr.msrb.gmra.mxu1 %vm195_vm0, %v700_v35 }
 0x66b   :  { %v683_v36 = vpop.permute.xlu0 %682 }
 0x66c   :  { %685 = vst.msk [vmem:[#allocation5] sm:$0xff] %vm195_vm0, %v683_v36 }
 0x673   :  { %v790_v37 = vld [vmem:[#allocation5] sm:$0xff] }
 0x674   :  { %792 = vrot.lane.b32.xlu1 %v790_v37, %s2601_s2 }
 0x6e2   :  { %v721_v46 = vpop.f32.mrf.mxu0  ;;  %v741_v0 = vpop.f32.mrf.mxu1 }
 0x6e3   :  { %v744_v1 = vadd.f32 %v721_v46, %v109_v38  ;;  %v745_v2 = vadd.f32 %v741_v0, %v150_v39 }
 0x6e5   :  { %v746_v4 = vadd.f32 %v744_v1, %v2853_v33  ;;  %v747_v5 = vadd.f32 %v745_v2, %v2855_v34 }
 0x6e6   :  { %v793_v11 = vpop.permute.xlu1 %792 }
 0x6e7   :  { %v2353_v6 = vmul.f32 -1.442695, %v746_v4  ;;  %v2354_v7 = vmul.f32 -1.442695, %v747_v5 }
 0x6e9   :  { %2456 = vpow2.f32 %v2353_v6 }
 0x6ea   :  { %2458 = vpow2.f32 %v2354_v7 }
 0x6ef   :  { %v2457_v8 = vpop.eup %2456 }
 0x6f0   :  { %v2459_v13 = vpop.eup %2458  ;;  %v756_v14 = vadd.f32 1.0, %v2457_v8 }
 0x6f1   :  { %v757_v17 = vadd.f32 1.0, %v2459_v13 }
 0x6f2   :  { %2460 = vrcp.f32 %v756_v14  ;;  %v769_v47 = vand.u32 2147483648, %v756_v14  ;;  %v767_v50 = vand.u32 2147483647, %v756_v14  ;;  %vm763_vm13 = vweird.f32 %v756_v14 }
 0x6f3   :  { %2462 = vrcp.f32 %v757_v17  ;;  %v784_v51 = vand.u32 2147483648, %v757_v17  ;;  %v782_v53 = vand.u32 2147483647, %v757_v17  ;;  %vm778_vm15 = vweird.f32 %v757_v17 }
 0x6f4   :  { %2464 = vtanh.f32 %v747_v5  ;;  %v770_v56 = vor.u32 1.1754944e-38, %v769_v47  ;;  %vm768_vm2 = vcmp.eq.f32.partialorder %v767_v50, 8.507059e+37 }
 0x6f5   :  { %v785_v59 = vor.u32 1.1754944e-38, %v784_v51  ;;  %vm783_vm4 = vcmp.eq.f32.partialorder %v782_v53, 8.507059e+37 }
 0x6f8   :  { %v2461_v18 = vpop.eup %2460 }
 0x6f9   :  { %v2463_v21 = vpop.eup %2462  ;;  %v759_v22 = vmul.f32 %v2461_v18, %v756_v14  ;;  %vm764_vm1 = vweird.f32 %v2461_v18 }
 0x6fa   :  { %v774_v25 = vmul.f32 %v2463_v21, %v757_v17  ;;  %vm779_vm12 = vweird.f32 %v2463_v21  ;;  %vm765_vm14 = vmor %vm763_vm13, %vm764_vm1  ;;  %v2465_v60 = vpop.eup %2464 }
 0x6fb   :  { %v760_v26 = vsub.f32 1.0, %v759_v22  ;;  %vm780_vm3 = vmor %vm778_vm15, %vm779_vm12 }
 0x6fc   :  { %v775_v48 = vsub.f32 1.0, %v774_v25 }
 0x6fd   :  { %v761_v49 = vmul.f32 %v2461_v18, %v760_v26 }
 0x6fe   :  { %v776_v52 = vmul.f32 %v2463_v21, %v775_v48 }
 0x6ff   :  { %v762_v55 = vadd.f32 %v2461_v18, %v761_v49 }
 0x700   :  { %v777_v57 = vadd.f32 %v2463_v21, %v776_v52 }
 0x701   :  { %v766_v58 = vsel %vm765_vm14, %v2461_v18, %v762_v55 }
 0x702   :  { %v771_v61 = vsel %vm768_vm2, %v770_v56, %v766_v58  ;;  %v781_v62 = vsel %vm780_vm3, %v2463_v21, %v777_v57 }
 0x703   :  { %v786_v63 = vsel %vm783_vm4, %v785_v59, %v781_v62  ;;  %v795_v12 = vmul.f32 %v793_v11, %v771_v61 }
 0x704   :  { %v789_v9 = vsel %vm34_vm7, %v2465_v60, %v786_v63 }
 0x705   :  { %v796_v10 = vmul.f32 %v789_v9, %v771_v61 }
 0x707   :  { %798 = vrot.lane.b32.xlu2 %v796_v10, %s2601_s2 }
 0x761   :  { %v799_v15 = vpop.permute.xlu2 %798 }
 0x762   :  { %v801_v16 = vadd.f32 %v799_v15, %v795_v12 }
 0x764   :  { %2466 = vtanh.f32 %v801_v16  ;;  %805 = vrot.lane.b32.xlu1 %v801_v16, %s2601_s2 }
 0x76a   :  { %v2467_v19 = vpop.eup %2466 }
 0x76b   :  { %v803_v20 = vmul.f32 %v2467_v19, %v789_v9 }
 0x76d   :  { %810 = vrot.lane.b32.xlu0 %v803_v20, %s2601_s2  ;;  %815 = vst.msk [vmem:[#allocation3 + $0x18] sm:$0xff] %vm324_vm11, %v803_v20 }
 0x7d6   :  { %v806_v23 = vpop.permute.xlu1 %805 }
 0x7d7   :  { %808 = vst.msk [vmem:[#allocation5] sm:$0xff] %vm195_vm0, %v806_v23 }
 0x7de   :  { %v911_v24 = vld [vmem:[#allocation5] sm:$0xff] }
 0x7df   :  { %913 = vrot.lane.b32.xlu2 %v911_v24, %s2601_s2  ;;  %v811_v27 = vpop.permute.xlu0 %810 }
 0x7e0   :  { %813 = vst.msk [vmem:[#allocation4] sm:$0xff] %vm195_vm0, %v811_v27 }
 0x7e1   :  { %814 = vst.msk [vmem:[#allocation3 + $0x20] sm:$0xff] %vm195_vm0, %v811_v27 }
 0x7e7   :  { %v821_v28 = vld [vmem:[#allocation4] sm:$0xff] }
 0x7e8   :  { %2355 = vmatmul.msk.f32.vlgmr.msra.gmra.mxu2 %vm195_vm0, %v821_v28  ;;  %2356 = vmatmul.msk.f32.vlgmr.msra.gmra.mxu3 %vm195_vm0, %v821_v28 }
 0x839   :  { %v914_v55 = vpop.permute.xlu2 %913 }
 0x86b   :  { %v842_v29 = vpop.f32.mrf.mxu2  ;;  %v862_v30 = vpop.f32.mrf.mxu3 }
 0x86c   :  { %v865_v31 = vadd.f32 %v842_v29, %v2999_v40  ;;  %v866_v32 = vadd.f32 %v862_v30, %v3001_v41 }
 0x86e   :  { %v867_v35 = vadd.f32 %v865_v31, %v2853_v33  ;;  %v868_v36 = vadd.f32 %v866_v32, %v2855_v34 }
 0x870   :  { %v2357_v37 = vmul.f32 -1.442695, %v867_v35  ;;  %v2358_v38 = vmul.f32 -1.442695, %v868_v36 }
 0x872   :  { %2468 = vpow2.f32 %v2357_v37 }
 0x873   :  { %2470 = vpow2.f32 %v2358_v38 }
 0x878   :  { %v2469_v39 = vpop.eup %2468 }
 0x879   :  { %v2471_v46 = vpop.eup %2470  ;;  %v877_v0 = vadd.f32 1.0, %v2469_v39 }
 0x87a   :  { %v878_v1 = vadd.f32 1.0, %v2471_v46 }
 0x87b   :  { %2472 = vrcp.f32 %v877_v0  ;;  %v890_v41 = vand.u32 2147483648, %v877_v0  ;;  %v888_v13 = vand.u32 2147483647, %v877_v0  ;;  %vm884_vm8 = vweird.f32 %v877_v0 }
 0x87c   :  { %2474 = vrcp.f32 %v878_v1  ;;  %v905_v14 = vand.u32 2147483648, %v878_v1  ;;  %v903_v18 = vand.u32 2147483647, %v878_v1  ;;  %vm899_vm10 = vweird.f32 %v878_v1 }
 0x87d   :  { %2476 = vtanh.f32 %v868_v36  ;;  %v891_v22 = vor.u32 1.1754944e-38, %v890_v41  ;;  %vm889_vm1 = vcmp.eq.f32.partialorder %v888_v13, 8.507059e+37 }
 0x87e   :  { %v906_v47 = vor.u32 1.1754944e-38, %v905_v14  ;;  %vm904_vm13 = vcmp.eq.f32.partialorder %v903_v18, 8.507059e+37 }
 0x881   :  { %v2473_v2 = vpop.eup %2472 }
 0x882   :  { %v2475_v4 = vpop.eup %2474  ;;  %v880_v5 = vmul.f32 %v2473_v2, %v877_v0  ;;  %vm885_vm5 = vweird.f32 %v2473_v2 }
 0x883   :  { %v895_v40 = vmul.f32 %v2475_v4, %v878_v1  ;;  %vm900_vm6 = vweird.f32 %v2475_v4  ;;  %vm886_vm9 = vmor %vm884_vm8, %vm885_vm5  ;;  %v2477_v48 = vpop.eup %2476 }
 0x884   :  { %v881_v6 = vsub.f32 1.0, %v880_v5  ;;  %vm901_vm12 = vmor %vm899_vm10, %vm900_vm6 }
 0x885   :  { %v896_v7 = vsub.f32 1.0, %v895_v40 }
 0x886   :  { %v882_v8 = vmul.f32 %v2473_v2, %v881_v6 }
 0x887   :  { %v897_v17 = vmul.f32 %v2475_v4, %v896_v7 }
 0x888   :  { %v883_v21 = vadd.f32 %v2473_v2, %v882_v8 }
 0x889   :  { %v898_v25 = vadd.f32 %v2475_v4, %v897_v17 }
 0x88a   :  { %v887_v26 = vsel %vm886_vm9, %v2473_v2, %v883_v21 }
 0x88b   :  { %v892_v49 = vsel %vm889_vm1, %v891_v22, %v887_v26  ;;  %v902_v50 = vsel %vm901_vm12, %v2475_v4, %v898_v25 }
 0x88c   :  { %v907_v51 = vsel %vm904_vm13, %v906_v47, %v902_v50  ;;  %v916_v56 = vmul.f32 %v914_v55, %v892_v49 }
 0x88d   :  { %v910_v52 = vsel %vm34_vm7, %v2477_v48, %v907_v51 }
 0x88e   :  { %v917_v53 = vmul.f32 %v910_v52, %v892_v49 }
 0x890   :  { %919 = vrot.lane.b32.xlu0 %v917_v53, %s2601_s2 }
 0x902   :  { %v920_v57 = vpop.permute.xlu0 %919 }
 0x903   :  { %v922_v58 = vadd.f32 %v920_v57, %v916_v56 }
 0x905   :  { %2478 = vtanh.f32 %v922_v58  ;;  %926 = vrot.lane.b32.xlu2 %v922_v58, %s2601_s2 }
 0x90b   :  { %v2479_v59 = vpop.eup %2478 }
 0x90c   :  { %v924_v60 = vmul.f32 %v2479_v59, %v910_v52 }
 0x90e   :  { %931 = vrot.lane.b32.xlu1 %v924_v60, %s2601_s2  ;;  %936 = vst.msk [vmem:[#allocation3 + $0x10] sm:$0xff] %vm324_vm11, %v924_v60  ;;  %v1234_v60 = vld [vmem:[%s3537_s4 + $0xf0] sm:$0xff] }
 0x90f   :  { %1236 = vmatpush.msrb.mxu0 %v1234_v60 }
 0x95f   :  { %v927_v61 = vpop.permute.xlu2 %926 }
 0x960   :  { %929 = vst.msk [vmem:[#allocation5] sm:$0xff] %vm195_vm0, %v927_v61  ;;  %v1235_v61 = vld [vmem:[%s3537_s4 + $0xf8] sm:$0xff] }
 0x961   :  { %1277 = vmatpush.msrb.mxu1 %v1235_v61 }
 0x967   :  { %v1032_v62 = vld [vmem:[#allocation5] sm:$0xff] }
 0x968   :  { %1034 = vrot.lane.b32.xlu0 %v1032_v62, %s2601_s2  ;;  %v1228_v62 = vld [vmem:[%s3537_s4 + $0xc0] sm:$0xff] }
 0x980   :  { %v932_v63 = vpop.permute.xlu1 %931 }
 0x981   :  { %934 = vst.msk [vmem:[#allocation4] sm:$0xff] %vm195_vm0, %v932_v63 }
 0x982   :  { %935 = vst.msk [vmem:[#allocation3 + $0x28] sm:$0xff] %vm195_vm0, %v932_v63  ;;  %v1229_v63 = vld [vmem:[%s3537_s4 + $0xc8] sm:$0xff] }
 0x988   :  { %v942_v9 = vld [vmem:[#allocation4] sm:$0xff] }
 0x989   :  { %2359 = vmatmul.msk.f32.vlgmr.msra.gmra.mxu0 %vm195_vm0, %v942_v9  ;;  %2360 = vmatmul.msk.f32.vlgmr.msra.gmra.mxu1 %vm195_vm0, %v942_v9  ;;  %v1226_v9 = vld [vmem:[%s3537_s4 + $0xb0] sm:$0xff] }
 0x9da   :  { %v1035_v17 = vpop.permute.xlu0 %1034 }
 0xa06   :  { %v963_v10 = vpop.f32.mrf.mxu0  ;;  %v983_v11 = vpop.f32.mrf.mxu1 }
 0xa07   :  { %v986_v12 = vadd.f32 %v963_v10, %v3003_v42  ;;  %v987_v15 = vadd.f32 %v983_v11, %v3005_v43  ;;  %v1227_v10 = vld [vmem:[%s3537_s4 + $0xb8] sm:$0xff] }
 0xa09   :  { %v988_v16 = vadd.f32 %v986_v12, %v2853_v33  ;;  %v989_v19 = vadd.f32 %v987_v15, %v2855_v34  ;;  %v1224_v12 = vld [vmem:[%s3537_s4 + $0xa0] sm:$0xff]  ;;  %v1225_v15 = vld [vmem:[%s3537_s4 + $0xa8] sm:$0xff] }
 0xa0b   :  { %v2361_v20 = vmul.f32 -1.442695, %v988_v16  ;;  %v2362_v23 = vmul.f32 -1.442695, %v989_v19 }
 0xa0d   :  { %2480 = vpow2.f32 %v2361_v20 }
 0xa0e   :  { %2482 = vpow2.f32 %v2362_v23 }
 0xa13   :  { %v2481_v24 = vpop.eup %2480 }
 0xa14   :  { %v2483_v27 = vpop.eup %2482  ;;  %v998_v28 = vadd.f32 1.0, %v2481_v24 }
 0xa15   :  { %v999_v29 = vadd.f32 1.0, %v2483_v27 }
 0xa16   :  { %2484 = vrcp.f32 %v998_v28  ;;  %v1011_v43 = vand.u32 2147483648, %v998_v28  ;;  %v1009_v38 = vand.u32 2147483647, %v998_v28  ;;  %vm1005_vm2 = vweird.f32 %v998_v28 }
 0xa17   :  { %2486 = vrcp.f32 %v999_v29  ;;  %v1026_v39 = vand.u32 2147483648, %v999_v29  ;;  %v1024_v0 = vand.u32 2147483647, %v999_v29  ;;  %vm1020_vm4 = vweird.f32 %v999_v29 }
 0xa18   :  { %2488 = vtanh.f32 %v989_v19  ;;  %v1012_v2 = vor.u32 1.1754944e-38, %v1011_v43  ;;  %vm1010_vm5 = vcmp.eq.f32.partialorder %v1009_v38, 8.507059e+37 }
 0xa19   :  { %v1027_v40 = vor.u32 1.1754944e-38, %v1026_v39  ;;  %vm1025_vm8 = vcmp.eq.f32.partialorder %v1024_v0, 8.507059e+37 }
 0xa1c   :  { %v2485_v30 = vpop.eup %2484 }
 0xa1d   :  { %v2487_v31 = vpop.eup %2486  ;;  %v1001_v32 = vmul.f32 %v2485_v30, %v998_v28  ;;  %vm1006_vm14 = vweird.f32 %v2485_v30 }
 0xa1e   :  { %v1016_v42 = vmul.f32 %v2487_v31, %v999_v29  ;;  %vm1021_vm15 = vweird.f32 %v2487_v31  ;;  %vm1007_vm3 = vmor %vm1005_vm2, %vm1006_vm14  ;;  %v2489_v6 = vpop.eup %2488 }
 0xa1f   :  { %v1002_v35 = vsub.f32 1.0, %v1001_v32  ;;  %vm1022_vm6 = vmor %vm1020_vm4, %vm1021_vm15 }
 0xa20   :  { %v1017_v36 = vsub.f32 1.0, %v1016_v42 }
 0xa21   :  { %v1003_v37 = vmul.f32 %v2485_v30, %v1002_v35 }
 0xa22   :  { %v1018_v46 = vmul.f32 %v2487_v31, %v1017_v36 }
 0xa23   :  { %v1004_v1 = vadd.f32 %v2485_v30, %v1003_v37 }
 0xa24   :  { %v1019_v4 = vadd.f32 %v2487_v31, %v1018_v46 }
 0xa25   :  { %v1008_v5 = vsel %vm1007_vm3, %v2485_v30, %v1004_v1 }
 0xa26   :  { %v1013_v41 = vsel %vm1010_vm5, %v1012_v2, %v1008_v5  ;;  %v1023_v7 = vsel %vm1022_vm6, %v2487_v31, %v1019_v4 }
 0xa27   :  { %v1028_v8 = vsel %vm1025_vm8, %v1027_v40, %v1023_v7  ;;  %v1037_v18 = vmul.f32 %v1035_v17, %v1013_v41  ;;  %v1223_v7 = vld [vmem:[%s3537_s4 + $0x98] sm:$0xff] }
 0xa28   :  { %v1031_v13 = vsel %vm34_vm7, %v2489_v6, %v1028_v8  ;;  %v1220_v8 = vld [vmem:[%s3537_s4 + $0x80] sm:$0xff]  ;;  %v1219_v17 = vld [vmem:[%s3537_s4 + $0x78] sm:$0xff] }
 0xa29   :  { %v1038_v14 = vmul.f32 %v1031_v13, %v1013_v41  ;;  %v1222_v41 = vld [vmem:[%s3537_s4 + $0x90] sm:$0xff] }
 0xa2b   :  { %1040 = vrot.lane.b32.xlu1 %v1038_v14, %s2601_s2  ;;  %v1218_v14 = vld [vmem:[%s3537_s4 + $0x70] sm:$0xff] }
 0xa9d   :  { %v1041_v21 = vpop.permute.xlu1 %1040 }
 0xa9e   :  { %v1043_v22 = vadd.f32 %v1041_v21, %v1037_v18  ;;  %v1216_v18 = vld [vmem:[%s3537_s4 + $0x60] sm:$0xff]  ;;  %v1217_v21 = vld [vmem:[%s3537_s4 + $0x68] sm:$0xff] }
 0xaa0   :  { %2490 = vtanh.f32 %v1043_v22  ;;  %1047 = vrot.lane.b32.xlu0 %v1043_v22, %s2601_s2  ;;  %v1214_v22 = vld [vmem:[%s3537_s4 + $0x50] sm:$0xff] }
 0xaa6   :  { %v2491_v25 = vpop.eup %2490 }
 0xaa7   :  { %v1045_v26 = vmul.f32 %v2491_v25, %v1031_v13  ;;  %v1221_v13 = vld [vmem:[%s3537_s4 + $0x88] sm:$0xff]  ;;  %v1215_v25 = vld [vmem:[%s3537_s4 + $0x58] sm:$0xff] }
 0xaa9   :  { %1052 = vrot.lane.b32.xlu2 %v1045_v26, %s2601_s2  ;;  %1057 = vst.msk [vmem:[#allocation3 + $0x8] sm:$0xff] %vm324_vm11, %v1045_v26  ;;  %v1212_v26 = vld [vmem:[%s3537_s4 + $0x40] sm:$0xff] }
 0xb03   :  { %v1053_v47 = vpop.permute.xlu2 %1052 }
 0xb04   :  { %1055 = vst.msk [vmem:[#allocation4] sm:$0xff] %vm195_vm0, %v1053_v47 }
 0xb05   :  { %1056 = vst.msk [vmem:[#allocation3 + $0x30] sm:$0xff] %vm195_vm0, %v1053_v47  ;;  %v1213_v47 = vld [vmem:[%s3537_s4 + $0x48] sm:$0xff] }
 0xb0b   :  { %v1063_v48 = vld [vmem:[#allocation4] sm:$0xff] }
 0xb0c   :  { %2363 = vmatmul.msk.f32.vlgmr.msrb.gmra.mxu2 %vm195_vm0, %v1063_v48  ;;  %2364 = vmatmul.msk.f32.vlgmr.msrb.gmra.mxu3 %vm195_vm0, %v1063_v48  ;;  %v1210_v48 = vld [vmem:[%s3537_s4 + $0x30] sm:$0xff] }
 0xb12   :  { %v1048_v49 = vpop.permute.xlu0 %1047 }
 0xb13   :  { %1050 = vst.msk [vmem:[#allocation5] sm:$0xff] %vm195_vm0, %v1048_v49  ;;  %v1211_v49 = vld [vmem:[%s3537_s4 + $0x38] sm:$0xff] }
 0xb1a   :  { %v1153_v50 = vld [vmem:[#allocation5] sm:$0xff] }
 0xb1b   :  { %1155 = vrot.lane.b32.xlu1 %v1153_v50, %s2601_s2  ;;  %v1208_v50 = vld [vmem:[%s3537_s4 + $0x20] sm:$0xff] }
 0xb8f   :  { %v1084_v51 = vpop.f32.mrf.mxu2  ;;  %v1104_v52 = vpop.f32.mrf.mxu3 }
 0xb90   :  { %v1107_v53 = vadd.f32 %v1084_v51, %v3007_v44  ;;  %v1108_v55 = vadd.f32 %v1104_v52, %v3009_v45  ;;  %v1232_v44 = vld [vmem:[%s3537_s4 + $0xe0] sm:$0xff]  ;;  %v1231_v45 = vld [vmem:[%s3537_s4 + $0xd8] sm:$0xff]  ;;  %v1209_v51 = vld [vmem:[%s3537_s4 + $0x28] sm:$0xff] }
 0xb91   :  { %1237 = vmatpush.msrb.mxu0 %v1232_v44  ;;  %v1206_v52 = vld [vmem:[%s3537_s4 + $0x10] sm:$0xff] }
 0xb92   :  { %v1109_v56 = vadd.f32 %v1107_v53, %v2853_v33  ;;  %v1110_v57 = vadd.f32 %v1108_v55, %v2855_v34  ;;  %v1233_v33 = vld [vmem:[%s3537_s4 + $0xe8] sm:$0xff]  ;;  %v1230_v34 = vld [vmem:[%s3537_s4 + $0xd0] sm:$0xff]  ;;  %v1207_v53 = vld [vmem:[%s3537_s4 + $0x18] sm:$0xff] }
 0xb93   :  { %1278 = vmatpush.msrb.mxu1 %v1233_v33  ;;  %1238 = vmatpush.msrb.mxu0 %v1230_v34  ;;  %v1204_v55 = vld [vmem:[%s3537_s4] sm:$0xff]  ;;  %v1197_v34 = vld [vmem:[#allocation3 + $0x8] sm:$0xff] }
 0xb94   :  { %v2365_v58 = vmul.f32 -1.442695, %v1109_v56  ;;  %v2366_v59 = vmul.f32 -1.442695, %v1110_v57  ;;  %v1205_v56 = vld [vmem:[%s3537_s4 + $0x8] sm:$0xff] }
 0xb95   :  { %1279 = vmatpush.msrb.mxu1 %v1231_v45  ;;  %1239 = vmatpush.msrb.mxu0 %v1228_v62  ;;  %v1198_v45 = vld [vmem:[#allocation3 + $0x10] sm:$0xff]  ;;  %v1199_v62 = vld [vmem:[#allocation3 + $0x18] sm:$0xff] }
 0xb96   :  { %2492 = vpow2.f32 %v2365_v58 }
 0xb97   :  { %2494 = vpow2.f32 %v2366_v59  ;;  %1280 = vmatpush.msrb.mxu1 %v1229_v63  ;;  %1240 = vmatpush.msrb.mxu0 %v1226_v9  ;;  %v1200_v63 = vld [vmem:[#allocation3 + $0x20] sm:$0xff]  ;;  %v1201_v9 = vld [vmem:[#allocation3 + $0x28] sm:$0xff] }
 0xb99   :  { %1281 = vmatpush.msrb.mxu1 %v1227_v10  ;;  %1241 = vmatpush.msrb.mxu0 %v1224_v12  ;;  %v1202_v10 = vld [vmem:[#allocation3 + $0x30] sm:$0xff]  ;;  %v3171_v12 = vld [vmem:[%s3538_s5 + $0x78] sm:$0xff] }
 0xb9a   :  { %1387 = vmatpush.msra.mxu3 %v3171_v12 }
 0xb9b   :  { %1282 = vmatpush.msrb.mxu1 %v1225_v15  ;;  %1242 = vmatpush.msrb.mxu0 %v1222_v41  ;;  %v3178_v15 = vld [vmem:[%s3538_s5 + $0x60] sm:$0xff] }
 0xb9c   :  { %v2493_v11 = vpop.eup %2492 }
 0xb9d   :  { %v2495_v16 = vpop.eup %2494  ;;  %v1119_v19 = vadd.f32 1.0, %v2493_v11  ;;  %1283 = vmatpush.msrb.mxu1 %v1223_v7  ;;  %1243 = vmatpush.msrb.mxu0 %v1220_v8  ;;  %v3166_v11 = vld [vmem:[%s3538_s5 + $0x70] sm:$0xff] }
 0xb9e   :  { %v1120_v20 = vadd.f32 1.0, %v2495_v16  ;;  %1367 = vmatpush.msra.mxu2 %v3166_v11  ;;  %v3183_v16 = vld [vmem:[%s3538_s5 + $0x68] sm:$0xff] }
 0xb9f   :  { %2496 = vrcp.f32 %v1119_v19  ;;  %v1132_v30 = vand.u32 2147483648, %v1119_v19  ;;  %v1130_v42 = vand.u32 2147483647, %v1119_v19  ;;  %vm1126_vm1 = vweird.f32 %v1119_v19  ;;  %1284 = vmatpush.msrb.mxu1 %v1221_v13  ;;  %1244 = vmatpush.msrb.mxu0 %v1218_v14 }
 0xba0   :  { %2498 = vrcp.f32 %v1120_v20  ;;  %v1147_v35 = vand.u32 2147483648, %v1120_v20  ;;  %v1145_v36 = vand.u32 2147483647, %v1120_v20  ;;  %vm1141_vm13 = vweird.f32 %v1120_v20  ;;  %1368 = vmatpush.msra.mxu2 %v3178_v15  ;;  %1388 = vmatpush.msra.mxu3 %v3183_v16 }
 0xba1   :  { %2500 = vtanh.f32 %v1110_v57  ;;  %v1133_v38 = vor.u32 1.1754944e-38, %v1132_v30  ;;  %vm1131_vm14 = vcmp.eq.f32.partialorder %v1130_v42, 8.507059e+37  ;;  %1285 = vmatpush.msrb.mxu1 %v1219_v17  ;;  %1245 = vmatpush.msrb.mxu0 %v1216_v18  ;;  %v1156_v57 = vpop.permute.xlu1 %1155  ;;  %v3239_v30 = vld [vmem:[%s3538_s5 + $0x28] sm:$0xff]  ;;  %v3258_v42 = vld [vmem:[%s3538_s5] sm:$0xff] }
 0xba2   :  { %v1148_v0 = vor.u32 1.1754944e-38, %v1147_v35  ;;  %vm1146_vm2 = vcmp.eq.f32.partialorder %v1145_v36, 8.507059e+37  ;;  %v3263_v35 = vld [vmem:[%s3538_s5 + $0x8] sm:$0xff] }
 0xba3   :  { %1286 = vmatpush.msrb.mxu1 %v1217_v21  ;;  %1246 = vmatpush.msrb.mxu0 %v1214_v22 }
 0xba5   :  { %v2497_v23 = vpop.eup %2496  ;;  %1287 = vmatpush.msrb.mxu1 %v1215_v25  ;;  %1247 = vmatpush.msrb.mxu0 %v1212_v26 }
 0xba6   :  { %v2499_v24 = vpop.eup %2498  ;;  %v1122_v27 = vmul.f32 %v2497_v23, %v1119_v19  ;;  %vm1127_vm9 = vweird.f32 %v2497_v23  ;;  %v3192_v19 = vld [vmem:[%s3538_s5 + $0x50] sm:$0xff] }
 0xba7   :  { %v1137_v28 = vmul.f32 %v2499_v24, %v1120_v20  ;;  %vm1142_vm10 = vweird.f32 %v2499_v24  ;;  %vm1128_vm12 = vmor %vm1126_vm1, %vm1127_vm9  ;;  %v2501_v1 = vpop.eup %2500  ;;  %1288 = vmatpush.msrb.mxu1 %v1213_v47  ;;  %1248 = vmatpush.msrb.mxu0 %v1210_v48  ;;  %v3197_v20 = vld [vmem:[%s3538_s5 + $0x58] sm:$0xff] }
 0xba8   :  { %v1123_v29 = vsub.f32 1.0, %v1122_v27  ;;  %vm1143_vm15 = vmor %vm1141_vm13, %vm1142_vm10  ;;  %1369 = vmatpush.msra.mxu2 %v3192_v19  ;;  %1389 = vmatpush.msra.mxu3 %v3197_v20  ;;  %v3220_v27 = vld [vmem:[%s3538_s5 + $0x30] sm:$0xff] }
 0xba9   :  { %v1138_v31 = vsub.f32 1.0, %v1137_v28  ;;  %1289 = vmatpush.msrb.mxu1 %v1211_v49  ;;  %1249 = vmatpush.msrb.mxu0 %v1208_v50  ;;  %v3225_v28 = vld [vmem:[%s3538_s5 + $0x38] sm:$0xff] }
 0xbaa   :  { %v1124_v32 = vmul.f32 %v2497_v23, %v1123_v29  ;;  %v3230_v29 = vld [vmem:[%s3538_s5 + $0x20] sm:$0xff] }
 0xbab   :  { %v1139_v43 = vmul.f32 %v2499_v24, %v1138_v31  ;;  %1290 = vmatpush.msrb.mxu1 %v1209_v51  ;;  %1250 = vmatpush.msrb.mxu0 %v1206_v52  ;;  %v3244_v31 = vld [vmem:[%s3538_s5 + $0x10] sm:$0xff] }
 0xbac   :  { %v1125_v37 = vadd.f32 %v2497_v23, %v1124_v32  ;;  %v3249_v32 = vld [vmem:[%s3538_s5 + $0x18] sm:$0xff] }
 0xbad   :  { %v1140_v39 = vadd.f32 %v2499_v24, %v1139_v43  ;;  %1291 = vmatpush.msrb.mxu1 %v1207_v53  ;;  %1251 = vmatpush.msrb.mxu0 %v1204_v55 }
 0xbae   :  { %v1129_v46 = vsel %vm1128_vm12, %v2497_v23, %v1125_v37  ;;  %v3206_v23 = vld [vmem:[%s3538_s5 + $0x40] sm:$0xff] }
 0xbaf   :  { %v1134_v2 = vsel %vm1131_vm14, %v1133_v38, %v1129_v46  ;;  %v1144_v4 = vsel %vm1143_vm15, %v2499_v24, %v1140_v39  ;;  %1292 = vmatpush.msrb.mxu1 %v1205_v56  ;;  %1952 = vmatpush.msra.mxu0 %v3166_v11  ;;  %v3211_v24 = vld [vmem:[%s3538_s5 + $0x48] sm:$0xff] }
 0xbb0   :  { %v1149_v5 = vsel %vm1146_vm2, %v1148_v0, %v1144_v4  ;;  %v1158_v58 = vmul.f32 %v1156_v57, %v1134_v2  ;;  %1370 = vmatpush.msra.mxu2 %v3206_v23  ;;  %1390 = vmatpush.msra.mxu3 %v3211_v24  ;;  %v1350_v0 = vld [vmem:[%s3541_s6] sm:$0x3]  ;;  %s2602_s6 = smov 96  }
 0xbb1   :  { %v1152_v40 = vsel %vm34_vm7, %v2501_v1, %v1149_v5  ;;  %1972 = vmatpush.msra.mxu1 %v3171_v12  ;;  %1953 = vmatpush.msra.mxu0 %v3178_v15  ;;  %v3350_v4 = vperm.slane %v1350_v0, 0  ;;  %v3352_v5 = vperm.slane %v1350_v0, 1 }
 0xbb2   :  { %v1159_v6 = vmul.f32 %v1152_v40, %v1134_v2  ;;  %1371 = vmatpush.msra.mxu2 %v3220_v27  ;;  %1391 = vmatpush.msra.mxu3 %v3225_v28 }
 0xbb3   :  { %1973 = vmatpush.msra.mxu1 %v3183_v16  ;;  %1954 = vmatpush.msra.mxu0 %v3192_v19 }
 0xbb4   :  { %1161 = vrot.lane.b32.xlu2 %v1159_v6, %s2601_s2  ;;  %1372 = vmatpush.msra.mxu2 %v3230_v29 }
 0xbb5   :  { %1974 = vmatpush.msra.mxu1 %v3197_v20  ;;  %1955 = vmatpush.msra.mxu0 %v3206_v23 }
 0xbb6   :  { %1392 = vmatpush.msra.mxu3 %v3239_v30  ;;  %1373 = vmatpush.msra.mxu2 %v3244_v31 }
 0xbb7   :  { %1975 = vmatpush.msra.mxu1 %v3211_v24  ;;  %1956 = vmatpush.msra.mxu0 %v3220_v27 }
 0xbb8   :  { %1393 = vmatpush.msra.mxu3 %v3249_v32  ;;  %1374 = vmatpush.msra.mxu2 %v3258_v42 }
 0xbb9   :  { %1976 = vmatpush.msra.mxu1 %v3225_v28  ;;  %1957 = vmatpush.msra.mxu0 %v3230_v29 }
 0xbba   :  { %1394 = vmatpush.msra.mxu3 %v3263_v35  ;;  %1488 = vmatpush.msrb.mxu2 %v3166_v11 }
 0xbbb   :  { %1977 = vmatpush.msra.mxu1 %v3239_v30  ;;  %1958 = vmatpush.msra.mxu0 %v3244_v31 }
 0xbbc   :  { %1508 = vmatpush.msrb.mxu3 %v3171_v12  ;;  %1489 = vmatpush.msrb.mxu2 %v3178_v15 }
 0xbbd   :  { %1978 = vmatpush.msra.mxu1 %v3249_v32  ;;  %1959 = vmatpush.msra.mxu0 %v3258_v42 }
 0xbbe   :  { %1509 = vmatpush.msrb.mxu3 %v3183_v16  ;;  %1490 = vmatpush.msrb.mxu2 %v3192_v19 }
 0xbbf   :  { %1979 = vmatpush.msra.mxu1 %v3263_v35 }
 0xbc0   :  { %1510 = vmatpush.msrb.mxu3 %v3197_v20  ;;  %1491 = vmatpush.msrb.mxu2 %v3206_v23 }
 0xbc2   :  { %1511 = vmatpush.msrb.mxu3 %v3211_v24  ;;  %1492 = vmatpush.msrb.mxu2 %v3220_v27 }
 0xbc4   :  { %1512 = vmatpush.msrb.mxu3 %v3225_v28  ;;  %1493 = vmatpush.msrb.mxu2 %v3230_v29 }
 0xbc6   :  { %1513 = vmatpush.msrb.mxu3 %v3239_v30  ;;  %1494 = vmatpush.msrb.mxu2 %v3244_v31 }
 0xbc8   :  { %1514 = vmatpush.msrb.mxu3 %v3249_v32  ;;  %1495 = vmatpush.msrb.mxu2 %v3258_v42 }
 0xbca   :  { %1515 = vmatpush.msrb.mxu3 %v3263_v35 }
 0xc0e   :  { %v1162_v59 = vpop.permute.xlu2 %1161 }
 0xc0f   :  { %v1164_v60 = vadd.f32 %v1162_v59, %v1158_v58 }
 0xc11   :  { %2502 = vtanh.f32 %v1164_v60  ;;  %1168 = vrot.lane.b32.xlu1 %v1164_v60, %s2601_s2 }
 0xc17   :  { %v2503_v61 = vpop.eup %2502 }
 0xc18   :  { %v1166_v44 = vmul.f32 %v2503_v61, %v1152_v40 }
 0xc1a   :  { %1173 = vrot.lane.b32.xlu0 %v1166_v44, %s2601_s2  ;;  %1178 = vst.msk [vmem:[#allocation3] sm:$0xff] %vm324_vm11, %v1166_v44  ;;  %vm1181_vm11 = vcmask 261120  }
 0xc21   :  { %v1196_v33 = vld [vmem:[#allocation3] sm:$0xff] }
 0xc22   :  { %1252 = vmatmul.f32.vlgmr.msrb.gmra.mxu0 %v1196_v33  ;;  %1293 = vmatmul.f32.vlgmr.msrb.gmra.mxu1 %v1196_v33 }
 0xc23   :  { %2184 = vmatpush.msrb.mxu0 %v3166_v11  ;;  %2204 = vmatpush.msrb.mxu1 %v3171_v12 }
 0xc25   :  { %2185 = vmatpush.msrb.mxu0 %v3178_v15  ;;  %2205 = vmatpush.msrb.mxu1 %v3183_v16 }
 0xc27   :  { %2186 = vmatpush.msrb.mxu0 %v3192_v19  ;;  %2206 = vmatpush.msrb.mxu1 %v3197_v20 }
 0xc29   :  { %2187 = vmatpush.msrb.mxu0 %v3206_v23  ;;  %2207 = vmatpush.msrb.mxu1 %v3211_v24 }
 0xc2a   :  { %1255 = vmatmul.f32.gmra.mxu0 %v1197_v34  ;;  %1296 = vmatmul.f32.gmra.mxu1 %v1197_v34 }
 0xc2b   :  { %2188 = vmatpush.msrb.mxu0 %v3220_v27  ;;  %2208 = vmatpush.msrb.mxu1 %v3225_v28 }
 0xc2d   :  { %2189 = vmatpush.msrb.mxu0 %v3230_v29  ;;  %2209 = vmatpush.msrb.mxu1 %v3239_v30 }
 0xc2f   :  { %2190 = vmatpush.msrb.mxu0 %v3244_v31  ;;  %2210 = vmatpush.msrb.mxu1 %v3249_v32 }
 0xc31   :  { %2191 = vmatpush.msrb.mxu0 %v3258_v42  ;;  %2211 = vmatpush.msrb.mxu1 %v3263_v35 }
 0xc32   :  { %1258 = vmatmul.f32.gmra.mxu0 %v1198_v45  ;;  %1299 = vmatmul.f32.gmra.mxu1 %v1198_v45 }
 0xc3a   :  { %1261 = vmatmul.f32.gmra.mxu0 %v1199_v62  ;;  %1302 = vmatmul.f32.gmra.mxu1 %v1199_v62 }
 0xc42   :  { %1264 = vmatmul.f32.gmra.mxu0 %v1200_v63  ;;  %1305 = vmatmul.f32.gmra.mxu1 %v1200_v63 }
 0xc4a   :  { %1267 = vmatmul.f32.gmra.mxu0 %v1201_v9  ;;  %1308 = vmatmul.f32.gmra.mxu1 %v1201_v9 }
 0xc52   :  { %1270 = vmatmul.f32.gmra.mxu0 %v1202_v10  ;;  %1311 = vmatmul.f32.gmra.mxu1 %v1202_v10 }
 0xc83   :  { %v1169_v43 = vpop.permute.xlu1 %1168 }
 0xc84   :  { %1171 = vst.msk [vmem:[#allocation5] sm:$0xff] %vm195_vm0, %v1169_v43 }
 0xc8b   :  { %v3300_v36 = vld [vmem:[#allocation5] sm:$0xff] }
 0xc8c   :  { %1352 = vst.msk [vmem:[#allocation5] sm:$0xff] %vm195_vm0, %v2600_v3  ;;  %v1174_v37 = vpop.permute.xlu0 %1173 }
 0xc8d   :  { %1176 = vst.msk [vmem:[#allocation4] sm:$0xff] %vm195_vm0, %v1174_v37 }
 0xc8e   :  { %1177 = vst.msk [vmem:[#allocation3 + $0x38] sm:$0xff] %vm195_vm0, %v1174_v37 }
 0xc8f   :  { %1189 = vst.msk [vmem:[%s3539_s8] sm:$0xff] %vm1181_vm11, %v3300_v36 }
 0xc94   :  { %v3319_v38 = vld [vmem:[#allocation4] sm:$0xff] }
 0xc95   :  { %1351 = vst.msk [vmem:[#allocation4] sm:$0xff] %vm195_vm0, %v2600_v3  ;;  %v1203_v39 = vld [vmem:[#allocation3 + $0x38] sm:$0xff]  ;;  %v1450_v3 = vld [vmem:[#allocation5] sm:$0xff] }
 0xc96   :  { %1273 = vmatmul.f32.gmra.mxu0 %v1203_v39  ;;  %1314 = vmatmul.f32.gmra.mxu1 %v1203_v39  ;;  %1182 = vst.msk [vmem:[%s3540_s7] sm:$0xff] %vm1181_vm11, %v3319_v38 }
 0xc97   :  { %1452 = vrot.lane.b32.xlu2 %v1450_v3, %s2601_s2 }
 0xc9c   :  { %v1355_v46 = vld [vmem:[#allocation4] sm:$0xff] }
 0xc9d   :  { %2369 = vmatmul.msk.f32.vlgmr.msra.gmra.mxu2 %vm195_vm0, %v1355_v46  ;;  %2370 = vmatmul.msk.f32.vlgmr.msra.gmra.mxu3 %vm195_vm0, %v1355_v46 }
 0xc9e   :  { %1604 = vmatpush.msra.mxu2 %v3166_v11  ;;  %1624 = vmatpush.msra.mxu3 %v3171_v12 }
 0xc9f   :  { %v1253_v1 = vpop.f32.mrf.mxu0  ;;  %v1294_v2 = vpop.f32.mrf.mxu1 }
 0xca0   :  { %1605 = vmatpush.msra.mxu2 %v3178_v15  ;;  %1625 = vmatpush.msra.mxu3 %v3183_v16 }
 0xca2   :  { %1606 = vmatpush.msra.mxu2 %v3192_v19  ;;  %1626 = vmatpush.msra.mxu3 %v3197_v20 }
 0xca4   :  { %1607 = vmatpush.msra.mxu2 %v3206_v23  ;;  %1627 = vmatpush.msra.mxu3 %v3211_v24 }
 0xca6   :  { %1608 = vmatpush.msra.mxu2 %v3220_v27  ;;  %1628 = vmatpush.msra.mxu3 %v3225_v28 }
 0xca8   :  { %1609 = vmatpush.msra.mxu2 %v3230_v29  ;;  %1629 = vmatpush.msra.mxu3 %v3239_v30 }
 0xcaa   :  { %1610 = vmatpush.msra.mxu2 %v3244_v31  ;;  %1630 = vmatpush.msra.mxu3 %v3249_v32 }
 0xcac   :  { %1611 = vmatpush.msra.mxu2 %v3258_v42  ;;  %1631 = vmatpush.msra.mxu3 %v3263_v35 }
 0xcf1   :  { %v1453_v43 = vpop.permute.xlu2 %1452 }
 0xd20   :  { %v1376_v40 = vpop.f32.mrf.mxu2  ;;  %v1396_v6 = vpop.f32.mrf.mxu3 }
 0xd21   :  { %v1399_v41 = vadd.f32 %v1376_v40, %v1253_v1  ;;  %v1400_v7 = vadd.f32 %v1396_v6, %v1294_v2 }
 0xd23   :  { %v1406_v8 = vadd.f32 %v3350_v4, %v1399_v41  ;;  %v1407_v13 = vadd.f32 %v3352_v5, %v1400_v7  ;;  %v1256_v41 = vpop.f32.mrf.mxu0  ;;  %v1297_v7 = vpop.f32.mrf.mxu1 }
 0xd25   :  { %v2371_v14 = vmul.f32 -1.442695, %v1406_v8  ;;  %v2372_v17 = vmul.f32 -1.442695, %v1407_v13 }
 0xd27   :  { %2504 = vpow2.f32 %v2371_v14 }
 0xd28   :  { %2506 = vpow2.f32 %v2372_v17 }
 0xd2d   :  { %v2505_v18 = vpop.eup %2504 }
 0xd2e   :  { %v2507_v21 = vpop.eup %2506  ;;  %v1416_v22 = vadd.f32 1.0, %v2505_v18 }
 0xd2f   :  { %v1417_v25 = vadd.f32 1.0, %v2507_v21 }
 0xd30   :  { %2508 = vrcp.f32 %v1416_v22  ;;  %v1429_v51 = vand.u32 2147483648, %v1416_v22  ;;  %v1427_v55 = vand.u32 2147483647, %v1416_v22  ;;  %vm1423_vm5 = vweird.f32 %v1416_v22 }
 0xd31   :  { %2510 = vrcp.f32 %v1417_v25  ;;  %v1444_v56 = vand.u32 2147483648, %v1417_v25  ;;  %v1442_v58 = vand.u32 2147483647, %v1417_v25  ;;  %vm1438_vm8 = vweird.f32 %v1417_v25 }
 0xd32   :  { %2512 = vtanh.f32 %v1407_v13  ;;  %v1430_v60 = vor.u32 1.1754944e-38, %v1429_v51  ;;  %vm1428_vm9 = vcmp.eq.f32.partialorder %v1427_v55, 8.507059e+37 }
 0xd33   :  { %v1445_v33 = vor.u32 1.1754944e-38, %v1444_v56  ;;  %vm1443_vm1 = vcmp.eq.f32.partialorder %v1442_v58, 8.507059e+37 }
 0xd36   :  { %v2509_v26 = vpop.eup %2508 }
 0xd37   :  { %v2511_v47 = vpop.eup %2510  ;;  %v1419_v48 = vmul.f32 %v2509_v26, %v1416_v22  ;;  %vm1424_vm3 = vweird.f32 %v2509_v26 }
 0xd38   :  { %v1434_v49 = vmul.f32 %v2511_v47, %v1417_v25  ;;  %vm1439_vm4 = vweird.f32 %v2511_v47  ;;  %vm1425_vm6 = vmor %vm1423_vm5, %vm1424_vm3  ;;  %v2513_v34 = vpop.eup %2512 }
 0xd39   :  { %v1420_v50 = vsub.f32 1.0, %v1419_v48  ;;  %vm1440_vm10 = vmor %vm1438_vm8, %vm1439_vm4 }
 0xd3a   :  { %v1435_v52 = vsub.f32 1.0, %v1434_v49 }
 0xd3b   :  { %v1421_v53 = vmul.f32 %v2509_v26, %v1420_v50 }
 0xd3c   :  { %v1436_v57 = vmul.f32 %v2511_v47, %v1435_v52 }
 0xd3d   :  { %v1422_v59 = vadd.f32 %v2509_v26, %v1421_v53 }
 0xd3e   :  { %v1437_v61 = vadd.f32 %v2511_v47, %v1436_v57 }
 0xd3f   :  { %v1426_v44 = vsel %vm1425_vm6, %v2509_v26, %v1422_v59 }
 0xd40   :  { %v1431_v45 = vsel %vm1428_vm9, %v1430_v60, %v1426_v44  ;;  %v1441_v62 = vsel %vm1440_vm10, %v2511_v47, %v1437_v61 }
 0xd41   :  { %v1446_v63 = vsel %vm1443_vm1, %v1445_v33, %v1441_v62  ;;  %v1455_v37 = vmul.f32 %v1453_v43, %v1431_v45 }
 0xd42   :  { %v1449_v9 = vsel %vm34_vm7, %v2513_v34, %v1446_v63 }
 0xd43   :  { %v1456_v10 = vmul.f32 %v1449_v9, %v1431_v45 }
 0xd45   :  { %1458 = vrot.lane.b32.xlu0 %v1456_v10, %s2601_s2 }
 0xdb7   :  { %v1459_v39 = vpop.permute.xlu0 %1458 }
 0xdb8   :  { %v1461_v46 = vadd.f32 %v1459_v39, %v1455_v37 }
 0xdba   :  { %2514 = vtanh.f32 %v1461_v46  ;;  %1465 = vrot.lane.b32.xlu2 %v1461_v46, %s2601_s2 }
 0xdc0   :  { %v2515_v3 = vpop.eup %2514 }
 0xdc1   :  { %v1463_v0 = vmul.f32 %v2515_v3, %v1449_v9 }
 0xdc3   :  { %1470 = vrot.lane.b32.xlu1 %v1463_v0, %s2601_s2 }
 0xe14   :  { %v1466_v1 = vpop.permute.xlu2 %1465 }
 0xe15   :  { %1468 = vst.msk [vmem:[#allocation5] sm:$0xff] %vm195_vm0, %v1466_v1 }
 0xe1c   :  { %v1566_v2 = vld [vmem:[#allocation5] sm:$0xff] }
 0xe1d   :  { %1568 = vrot.lane.b32.xlu0 %v1566_v2, %s2601_s2 }
 0xe35   :  { %v1471_v40 = vpop.permute.xlu1 %1470 }
 0xe36   :  { %1473 = vst.msk [vmem:[#allocation4] sm:$0xff] %vm195_vm0, %v1471_v40 }
 0xe3d   :  { %v1476_v6 = vld [vmem:[#allocation4] sm:$0xff] }
 0xe3e   :  { %2373 = vmatmul.msk.f32.vlgmr.msrb.gmra.mxu2 %vm195_vm0, %v1476_v6  ;;  %2374 = vmatmul.msk.f32.vlgmr.msrb.gmra.mxu3 %vm195_vm0, %v1476_v6 }
 0xe3f   :  { %1720 = vmatpush.msrb.mxu2 %v3166_v11  ;;  %1740 = vmatpush.msrb.mxu3 %v3171_v12 }
 0xe41   :  { %1721 = vmatpush.msrb.mxu2 %v3178_v15  ;;  %1741 = vmatpush.msrb.mxu3 %v3183_v16 }
 0xe43   :  { %1722 = vmatpush.msrb.mxu2 %v3192_v19  ;;  %1742 = vmatpush.msrb.mxu3 %v3197_v20 }
 0xe45   :  { %1723 = vmatpush.msrb.mxu2 %v3206_v23  ;;  %1743 = vmatpush.msrb.mxu3 %v3211_v24 }
 0xe47   :  { %1724 = vmatpush.msrb.mxu2 %v3220_v27  ;;  %1744 = vmatpush.msrb.mxu3 %v3225_v28 }
 0xe49   :  { %1725 = vmatpush.msrb.mxu2 %v3230_v29  ;;  %1745 = vmatpush.msrb.mxu3 %v3239_v30 }
 0xe4b   :  { %1726 = vmatpush.msrb.mxu2 %v3244_v31  ;;  %1746 = vmatpush.msrb.mxu3 %v3249_v32 }
 0xe4d   :  { %1727 = vmatpush.msrb.mxu2 %v3258_v42  ;;  %1747 = vmatpush.msrb.mxu3 %v3263_v35 }
 0xe8f   :  { %v1569_v3 = vpop.permute.xlu0 %1568 }
 0xec1   :  { %v1497_v8 = vpop.f32.mrf.mxu2  ;;  %v1517_v13 = vpop.f32.mrf.mxu3 }
 0xec2   :  { %v1520_v14 = vadd.f32 %v1497_v8, %v1256_v41  ;;  %v1521_v17 = vadd.f32 %v1517_v13, %v1297_v7 }
 0xec4   :  { %v1522_v18 = vadd.f32 %v1520_v14, %v3350_v4  ;;  %v1523_v21 = vadd.f32 %v1521_v17, %v3352_v5  ;;  %v1259_v14 = vpop.f32.mrf.mxu0  ;;  %v1300_v17 = vpop.f32.mrf.mxu1 }
 0xec6   :  { %v2375_v22 = vmul.f32 -1.442695, %v1522_v18  ;;  %v2376_v25 = vmul.f32 -1.442695, %v1523_v21 }
 0xec8   :  { %2516 = vpow2.f32 %v2375_v22 }
 0xec9   :  { %2518 = vpow2.f32 %v2376_v25 }
 0xece   :  { %v2517_v26 = vpop.eup %2516 }
 0xecf   :  { %v2519_v47 = vpop.eup %2518  ;;  %v1532_v48 = vadd.f32 1.0, %v2517_v26 }
 0xed0   :  { %v1533_v49 = vadd.f32 1.0, %v2519_v47 }
 0xed1   :  { %2520 = vrcp.f32 %v1532_v48  ;;  %v1545_v56 = vand.u32 2147483648, %v1532_v48  ;;  %v1543_v59 = vand.u32 2147483647, %v1532_v48  ;;  %vm1539_vm14 = vweird.f32 %v1532_v48 }
 0xed2   :  { %2522 = vrcp.f32 %v1533_v49  ;;  %v1560_v60 = vand.u32 2147483648, %v1533_v49  ;;  %v1558_v44 = vand.u32 2147483647, %v1533_v49  ;;  %vm1554_vm2 = vweird.f32 %v1533_v49 }
 0xed3   :  { %2524 = vtanh.f32 %v1523_v21  ;;  %v1546_v34 = vor.u32 1.1754944e-38, %v1545_v56  ;;  %vm1544_vm3 = vcmp.eq.f32.partialorder %v1543_v59, 8.507059e+37 }
 0xed4   :  { %v1561_v63 = vor.u32 1.1754944e-38, %v1560_v60  ;;  %vm1559_vm5 = vcmp.eq.f32.partialorder %v1558_v44, 8.507059e+37 }
 0xed7   :  { %v2521_v50 = vpop.eup %2520 }
 0xed8   :  { %v2523_v51 = vpop.eup %2522  ;;  %v1535_v52 = vmul.f32 %v2521_v50, %v1532_v48  ;;  %vm1540_vm12 = vweird.f32 %v2521_v50 }
 0xed9   :  { %v1550_v53 = vmul.f32 %v2523_v51, %v1533_v49  ;;  %vm1555_vm13 = vweird.f32 %v2523_v51  ;;  %vm1541_vm15 = vmor %vm1539_vm14, %vm1540_vm12  ;;  %v2525_v9 = vpop.eup %2524 }
 0xeda   :  { %v1536_v55 = vsub.f32 1.0, %v1535_v52  ;;  %vm1556_vm4 = vmor %vm1554_vm2, %vm1555_vm13 }
 0xedb   :  { %v1551_v57 = vsub.f32 1.0, %v1550_v53 }
 0xedc   :  { %v1537_v58 = vmul.f32 %v2521_v50, %v1536_v55 }
 0xedd   :  { %v1552_v61 = vmul.f32 %v2523_v51, %v1551_v57 }
 0xede   :  { %v1538_v33 = vadd.f32 %v2521_v50, %v1537_v58 }
 0xedf   :  { %v1553_v45 = vadd.f32 %v2523_v51, %v1552_v61 }
 0xee0   :  { %v1542_v62 = vsel %vm1541_vm15, %v2521_v50, %v1538_v33 }
 0xee1   :  { %v1547_v10 = vsel %vm1544_vm3, %v1546_v34, %v1542_v62  ;;  %v1557_v43 = vsel %vm1556_vm4, %v2523_v51, %v1553_v45 }
 0xee2   :  { %v1562_v37 = vsel %vm1559_vm5, %v1561_v63, %v1557_v43  ;;  %v1571_v0 = vmul.f32 %v1569_v3, %v1547_v10 }
 0xee3   :  { %v1565_v39 = vsel %vm34_vm7, %v2525_v9, %v1562_v37 }
 0xee4   :  { %v1572_v46 = vmul.f32 %v1565_v39, %v1547_v10 }
 0xee6   :  { %1574 = vrot.lane.b32.xlu1 %v1572_v46, %s2601_s2 }
 0xf58   :  { %v1575_v1 = vpop.permute.xlu1 %1574 }
 0xf59   :  { %v1577_v2 = vadd.f32 %v1575_v1, %v1571_v0 }
 0xf5b   :  { %2526 = vtanh.f32 %v1577_v2  ;;  %1581 = vrot.lane.b32.xlu0 %v1577_v2, %s2601_s2 }
 0xf61   :  { %v2527_v40 = vpop.eup %2526 }
 0xf62   :  { %v1579_v6 = vmul.f32 %v2527_v40, %v1565_v39 }
 0xf64   :  { %1586 = vrot.lane.b32.xlu2 %v1579_v6, %s2601_s2 }
 0xfbe   :  { %v1587_v41 = vpop.permute.xlu2 %1586 }
 0xfbf   :  { %1589 = vst.msk [vmem:[#allocation4] sm:$0xff] %vm195_vm0, %v1587_v41 }
 0xfc6   :  { %v1592_v7 = vld [vmem:[#allocation4] sm:$0xff] }
 0xfc7   :  { %2377 = vmatmul.msk.f32.vlgmr.msra.gmra.mxu2 %vm195_vm0, %v1592_v7  ;;  %2378 = vmatmul.msk.f32.vlgmr.msra.gmra.mxu3 %vm195_vm0, %v1592_v7 }
 0xfc8   :  { %1836 = vmatpush.msra.mxu2 %v3166_v11  ;;  %1856 = vmatpush.msra.mxu3 %v3171_v12 }
 0xfca   :  { %1837 = vmatpush.msra.mxu2 %v3178_v15  ;;  %1857 = vmatpush.msra.mxu3 %v3183_v16 }
 0xfcc   :  { %1838 = vmatpush.msra.mxu2 %v3192_v19  ;;  %1858 = vmatpush.msra.mxu3 %v3197_v20 }
 0xfcd   :  { %v1582_v8 = vpop.permute.xlu0 %1581 }
 0xfce   :  { %1584 = vst.msk [vmem:[#allocation5] sm:$0xff] %vm195_vm0, %v1582_v8  ;;  %1839 = vmatpush.msra.mxu2 %v3206_v23  ;;  %1859 = vmatpush.msra.mxu3 %v3211_v24 }
 0xfd0   :  { %1840 = vmatpush.msra.mxu2 %v3220_v27  ;;  %1860 = vmatpush.msra.mxu3 %v3225_v28 }
 0xfd2   :  { %1841 = vmatpush.msra.mxu2 %v3230_v29  ;;  %1861 = vmatpush.msra.mxu3 %v3239_v30 }
 0xfd4   :  { %1842 = vmatpush.msra.mxu2 %v3244_v31  ;;  %1862 = vmatpush.msra.mxu3 %v3249_v32 }
 0xfd5   :  { %v1682_v13 = vld [vmem:[#allocation5] sm:$0xff] }
 0xfd6   :  { %1684 = vrot.lane.b32.xlu1 %v1682_v13, %s2601_s2  ;;  %1843 = vmatpush.msra.mxu2 %v3258_v42 }
 0xfd7   :  { %1863 = vmatpush.msra.mxu3 %v3263_v35 }
0x1048   :  { %v1685_v40 = vpop.permute.xlu1 %1684 }
0x104a   :  { %v1613_v18 = vpop.f32.mrf.mxu2  ;;  %v1633_v21 = vpop.f32.mrf.mxu3 }
0x104b   :  { %v1636_v22 = vadd.f32 %v1613_v18, %v1259_v14  ;;  %v1637_v25 = vadd.f32 %v1633_v21, %v1300_v17 }
0x104d   :  { %v1638_v26 = vadd.f32 %v1636_v22, %v3350_v4  ;;  %v1639_v47 = vadd.f32 %v1637_v25, %v3352_v5 }
0x104f   :  { %v2379_v48 = vmul.f32 -1.442695, %v1638_v26  ;;  %v2380_v49 = vmul.f32 -1.442695, %v1639_v47 }
0x1051   :  { %2528 = vpow2.f32 %v2379_v48 }
0x1052   :  { %2530 = vpow2.f32 %v2380_v49 }
0x1057   :  { %v2529_v50 = vpop.eup %2528 }
0x1058   :  { %v2531_v51 = vpop.eup %2530  ;;  %v1648_v52 = vadd.f32 1.0, %v2529_v50 }
0x1059   :  { %v1649_v53 = vadd.f32 1.0, %v2531_v51 }
0x105a   :  { %2532 = vrcp.f32 %v1648_v52  ;;  %v1661_v60 = vand.u32 2147483648, %v1648_v52  ;;  %v1659_v33 = vand.u32 2147483647, %v1648_v52  ;;  %vm1655_vm9 = vweird.f32 %v1648_v52 }
0x105b   :  { %2534 = vrcp.f32 %v1649_v53  ;;  %v1676_v34 = vand.u32 2147483648, %v1649_v53  ;;  %v1674_v62 = vand.u32 2147483647, %v1649_v53  ;;  %vm1670_vm1 = vweird.f32 %v1649_v53 }
0x105c   :  { %2536 = vtanh.f32 %v1639_v47  ;;  %v1662_v9 = vor.u32 1.1754944e-38, %v1661_v60  ;;  %vm1660_vm12 = vcmp.eq.f32.partialorder %v1659_v33, 8.507059e+37 }
0x105d   :  { %v1677_v37 = vor.u32 1.1754944e-38, %v1676_v34  ;;  %vm1675_vm14 = vcmp.eq.f32.partialorder %v1674_v62, 8.507059e+37 }
0x1060   :  { %v2533_v55 = vpop.eup %2532 }
0x1061   :  { %v2535_v56 = vpop.eup %2534  ;;  %v1651_v57 = vmul.f32 %v2533_v55, %v1648_v52  ;;  %vm1656_vm6 = vweird.f32 %v2533_v55 }
0x1062   :  { %v1666_v58 = vmul.f32 %v2535_v56, %v1649_v53  ;;  %vm1671_vm8 = vweird.f32 %v2535_v56  ;;  %vm1657_vm10 = vmor %vm1655_vm9, %vm1656_vm6  ;;  %v2537_v39 = vpop.eup %2536 }
0x1063   :  { %v1652_v59 = vsub.f32 1.0, %v1651_v57  ;;  %vm1672_vm13 = vmor %vm1670_vm1, %vm1671_vm8 }
0x1064   :  { %v1667_v61 = vsub.f32 1.0, %v1666_v58 }
0x1065   :  { %v1653_v44 = vmul.f32 %v2533_v55, %v1652_v59 }
0x1066   :  { %v1668_v45 = vmul.f32 %v2535_v56, %v1667_v61 }
0x1067   :  { %v1654_v63 = vadd.f32 %v2533_v55, %v1653_v44 }
0x1068   :  { %v1669_v10 = vadd.f32 %v2535_v56, %v1668_v45 }
0x1069   :  { %v1658_v43 = vsel %vm1657_vm10, %v2533_v55, %v1654_v63 }
0x106a   :  { %v1663_v46 = vsel %vm1660_vm12, %v1662_v9, %v1658_v43  ;;  %v1673_v3 = vsel %vm1672_vm13, %v2535_v56, %v1669_v10 }
0x106b   :  { %v1678_v0 = vsel %vm1675_vm14, %v1677_v37, %v1673_v3  ;;  %v1687_v6 = vmul.f32 %v1685_v40, %v1663_v46 }
0x106c   :  { %v1681_v1 = vsel %vm34_vm7, %v2537_v39, %v1678_v0 }
0x106d   :  { %v1688_v2 = vmul.f32 %v1681_v1, %v1663_v46 }
0x106f   :  { %1690 = vrot.lane.b32.xlu2 %v1688_v2, %s2601_s2 }
0x10c9   :  { %v1691_v41 = vpop.permute.xlu2 %1690 }
0x10ca   :  { %v1693_v7 = vadd.f32 %v1691_v41, %v1687_v6 }
0x10cc   :  { %2538 = vtanh.f32 %v1693_v7  ;;  %1697 = vrot.lane.b32.xlu1 %v1693_v7, %s2601_s2 }
0x10d2   :  { %v2539_v8 = vpop.eup %2538 }
0x10d3   :  { %v1695_v13 = vmul.f32 %v2539_v8, %v1681_v1 }
0x10d5   :  { %1702 = vrot.lane.b32.xlu0 %v1695_v13, %s2601_s2 }
0x113e   :  { %v1698_v14 = vpop.permute.xlu1 %1697 }
0x113f   :  { %1700 = vst.msk [vmem:[#allocation5] sm:$0xff] %vm195_vm0, %v1698_v14 }
0x1146   :  { %v1798_v17 = vld [vmem:[#allocation5] sm:$0xff] }
0x1147   :  { %1800 = vrot.lane.b32.xlu2 %v1798_v17, %s2601_s2  ;;  %v1703_v18 = vpop.permute.xlu0 %1702 }
0x1148   :  { %1705 = vst.msk [vmem:[#allocation4] sm:$0xff] %vm195_vm0, %v1703_v18 }
0x114f   :  { %v1708_v21 = vld [vmem:[#allocation4] sm:$0xff] }
0x1150   :  { %2381 = vmatmul.msk.f32.vlgmr.msrb.gmra.mxu2 %vm195_vm0, %v1708_v21  ;;  %2382 = vmatmul.msk.f32.vlgmr.msrb.gmra.mxu3 %vm195_vm0, %v1708_v21 }
0x1151   :  { %2068 = vmatpush.msrb.mxu2 %v3166_v11  ;;  %2088 = vmatpush.msrb.mxu3 %v3171_v12  ;;  %v1262_v11 = vpop.f32.mrf.mxu0  ;;  %v1303_v12 = vpop.f32.mrf.mxu1 }
0x1153   :  { %2069 = vmatpush.msrb.mxu2 %v3178_v15  ;;  %2089 = vmatpush.msrb.mxu3 %v3183_v16 }
0x1155   :  { %2070 = vmatpush.msrb.mxu2 %v3192_v19  ;;  %2090 = vmatpush.msrb.mxu3 %v3197_v20 }
0x1157   :  { %2071 = vmatpush.msrb.mxu2 %v3206_v23  ;;  %2091 = vmatpush.msrb.mxu3 %v3211_v24 }
0x1159   :  { %2072 = vmatpush.msrb.mxu2 %v3220_v27  ;;  %2092 = vmatpush.msrb.mxu3 %v3225_v28  ;;  %v1265_v1 = vpop.f32.mrf.mxu0  ;;  %v1306_v2 = vpop.f32.mrf.mxu1 }
0x115b   :  { %2073 = vmatpush.msrb.mxu2 %v3230_v29  ;;  %2093 = vmatpush.msrb.mxu3 %v3239_v30 }
0x115d   :  { %2074 = vmatpush.msrb.mxu2 %v3244_v31  ;;  %2094 = vmatpush.msrb.mxu3 %v3249_v32 }
0x115f   :  { %2075 = vmatpush.msrb.mxu2 %v3258_v42  ;;  %2095 = vmatpush.msrb.mxu3 %v3263_v35 }
0x11a1   :  { %v1801_v62 = vpop.permute.xlu2 %1800 }
0x11d3   :  { %v1729_v15 = vpop.f32.mrf.mxu2  ;;  %v1749_v16 = vpop.f32.mrf.mxu3 }
0x11d4   :  { %v1752_v19 = vadd.f32 %v1729_v15, %v1262_v11  ;;  %v1753_v20 = vadd.f32 %v1749_v16, %v1303_v12 }
0x11d6   :  { %v1754_v23 = vadd.f32 %v1752_v19, %v3350_v4  ;;  %v1755_v24 = vadd.f32 %v1753_v20, %v3352_v5 }
0x11d8   :  { %v2383_v27 = vmul.f32 -1.442695, %v1754_v23  ;;  %v2384_v28 = vmul.f32 -1.442695, %v1755_v24 }
0x11da   :  { %2540 = vpow2.f32 %v2383_v27 }
0x11db   :  { %2542 = vpow2.f32 %v2384_v28 }
0x11e0   :  { %v2541_v29 = vpop.eup %2540 }
0x11e1   :  { %v2543_v30 = vpop.eup %2542  ;;  %v1764_v31 = vadd.f32 1.0, %v2541_v29 }
0x11e2   :  { %v1765_v32 = vadd.f32 1.0, %v2543_v30 }
0x11e3   :  { %2544 = vrcp.f32 %v1764_v31  ;;  %v1777_v47 = vand.u32 2147483648, %v1764_v31  ;;  %v1775_v50 = vand.u32 2147483647, %v1764_v31  ;;  %vm1771_vm3 = vweird.f32 %v1764_v31 }
0x11e4   :  { %2546 = vrcp.f32 %v1765_v32  ;;  %v1792_v51 = vand.u32 2147483648, %v1765_v32  ;;  %v1790_v53 = vand.u32 2147483647, %v1765_v32  ;;  %vm1786_vm5 = vweird.f32 %v1765_v32 }
0x11e5   :  { %2548 = vtanh.f32 %v1755_v24  ;;  %v1778_v56 = vor.u32 1.1754944e-38, %v1777_v47  ;;  %vm1776_vm6 = vcmp.eq.f32.partialorder %v1775_v50, 8.507059e+37 }
0x11e6   :  { %v1793_v59 = vor.u32 1.1754944e-38, %v1792_v51  ;;  %vm1791_vm9 = vcmp.eq.f32.partialorder %v1790_v53, 8.507059e+37 }
0x11e9   :  { %v2545_v42 = vpop.eup %2544 }
0x11ea   :  { %v2547_v35 = vpop.eup %2546  ;;  %v1767_v22 = vmul.f32 %v2545_v42, %v1764_v31  ;;  %vm1772_vm15 = vweird.f32 %v2545_v42 }
0x11eb   :  { %v1782_v25 = vmul.f32 %v2547_v35, %v1765_v32  ;;  %vm1787_vm2 = vweird.f32 %v2547_v35  ;;  %vm1773_vm4 = vmor %vm1771_vm3, %vm1772_vm15  ;;  %v2549_v60 = vpop.eup %2548 }
0x11ec   :  { %v1768_v26 = vsub.f32 1.0, %v1767_v22  ;;  %vm1788_vm8 = vmor %vm1786_vm5, %vm1787_vm2 }
0x11ed   :  { %v1783_v48 = vsub.f32 1.0, %v1782_v25 }
0x11ee   :  { %v1769_v49 = vmul.f32 %v2545_v42, %v1768_v26 }
0x11ef   :  { %v1784_v52 = vmul.f32 %v2547_v35, %v1783_v48 }
0x11f0   :  { %v1770_v55 = vadd.f32 %v2545_v42, %v1769_v49 }
0x11f1   :  { %v1785_v57 = vadd.f32 %v2547_v35, %v1784_v52 }
0x11f2   :  { %v1774_v58 = vsel %vm1773_vm4, %v2545_v42, %v1770_v55 }
0x11f3   :  { %v1779_v61 = vsel %vm1776_vm6, %v1778_v56, %v1774_v58  ;;  %v1789_v44 = vsel %vm1788_vm8, %v2547_v35, %v1785_v57 }
0x11f4   :  { %v1794_v33 = vsel %vm1791_vm9, %v1793_v59, %v1789_v44  ;;  %v1803_v63 = vmul.f32 %v1801_v62, %v1779_v61 }
0x11f5   :  { %v1797_v34 = vsel %vm34_vm7, %v2549_v60, %v1794_v33 }
0x11f6   :  { %v1804_v45 = vmul.f32 %v1797_v34, %v1779_v61 }
0x11f8   :  { %1806 = vrot.lane.b32.xlu0 %v1804_v45, %s2601_s2  ;;  %v1309_v45 = vpop.f32.mrf.mxu1 }
0x126a   :  { %v1807_v9 = vpop.permute.xlu0 %1806 }
0x126b   :  { %v1809_v10 = vadd.f32 %v1807_v9, %v1803_v63  ;;  %v3464_v63 = vpop.f32.mrf.mxu1 }
0x126d   :  { %2550 = vtanh.f32 %v1809_v10  ;;  %1813 = vrot.lane.b32.xlu2 %v1809_v10, %s2601_s2 }
0x1273   :  { %v2551_v43 = vpop.eup %2550  ;;  %v3468_v10 = vpop.f32.mrf.mxu1 }
0x1274   :  { %v1811_v37 = vmul.f32 %v2551_v43, %v1797_v34  ;;  %v1268_v34 = vpop.f32.mrf.mxu0 }
0x1276   :  { %1818 = vrot.lane.b32.xlu1 %v1811_v37, %s2601_s2 }
0x127c   :  { %v3462_v62 = vpop.f32.mrf.mxu0 }
0x1284   :  { %v3466_v9 = vpop.f32.mrf.mxu0 }
0x12c7   :  { %v1814_v39 = vpop.permute.xlu2 %1813 }
0x12c8   :  { %1816 = vst.msk [vmem:[#allocation5] sm:$0xff] %vm195_vm0, %v1814_v39 }
0x12cf   :  { %v1914_v46 = vld [vmem:[#allocation5] sm:$0xff] }
0x12d0   :  { %1916 = vrot.lane.b32.xlu0 %v1914_v46, %s2601_s2 }
0x12e8   :  { %v1819_v3 = vpop.permute.xlu1 %1818 }
0x12e9   :  { %1821 = vst.msk [vmem:[#allocation4] sm:$0xff] %vm195_vm0, %v1819_v3 }
0x12f0   :  { %v1824_v0 = vld [vmem:[#allocation4] sm:$0xff] }
0x12f1   :  { %2385 = vmatmul.msk.f32.vlgmr.msra.gmra.mxu2 %vm195_vm0, %v1824_v0  ;;  %2386 = vmatmul.msk.f32.vlgmr.msra.gmra.mxu3 %vm195_vm0, %v1824_v0 }
0x1342   :  { %v1917_v53 = vpop.permute.xlu0 %1916 }
0x1374   :  { %v1845_v40 = vpop.f32.mrf.mxu2  ;;  %v1865_v6 = vpop.f32.mrf.mxu3 }
0x1375   :  { %v1868_v41 = vadd.f32 %v1845_v40, %v1265_v1  ;;  %v1869_v7 = vadd.f32 %v1865_v6, %v1306_v2 }
0x1377   :  { %v1870_v8 = vadd.f32 %v1868_v41, %v3350_v4  ;;  %v1871_v13 = vadd.f32 %v1869_v7, %v3352_v5 }
0x1379   :  { %v2387_v14 = vmul.f32 -1.442695, %v1870_v8  ;;  %v2388_v17 = vmul.f32 -1.442695, %v1871_v13 }
0x137b   :  { %2552 = vpow2.f32 %v2387_v14 }
0x137c   :  { %2554 = vpow2.f32 %v2388_v17 }
0x1381   :  { %v2553_v18 = vpop.eup %2552 }
0x1382   :  { %v2555_v21 = vpop.eup %2554  ;;  %v1880_v11 = vadd.f32 1.0, %v2553_v18 }
0x1383   :  { %v1881_v12 = vadd.f32 1.0, %v2555_v21 }
0x1384   :  { %2556 = vrcp.f32 %v1880_v11  ;;  %v1893_v24 = vand.u32 2147483648, %v1880_v11  ;;  %v1891_v29 = vand.u32 2147483647, %v1880_v11  ;;  %vm1887_vm12 = vweird.f32 %v1880_v11 }
0x1385   :  { %2558 = vrcp.f32 %v1881_v12  ;;  %v1908_v30 = vand.u32 2147483648, %v1881_v12  ;;  %v1906_v32 = vand.u32 2147483647, %v1881_v12  ;;  %vm1902_vm14 = vweird.f32 %v1881_v12 }
0x1386   :  { %2560 = vtanh.f32 %v1871_v13  ;;  %v1894_v35 = vor.u32 1.1754944e-38, %v1893_v24  ;;  %vm1892_vm15 = vcmp.eq.f32.partialorder %v1891_v29, 8.507059e+37 }
0x1387   :  { %v1909_v26 = vor.u32 1.1754944e-38, %v1908_v30  ;;  %vm1907_vm3 = vcmp.eq.f32.partialorder %v1906_v32, 8.507059e+37 }
0x138a   :  { %v2557_v15 = vpop.eup %2556 }
0x138b   :  { %v2559_v16 = vpop.eup %2558  ;;  %v1883_v19 = vmul.f32 %v2557_v15, %v1880_v11  ;;  %vm1888_vm10 = vweird.f32 %v2557_v15 }
0x138c   :  { %v1898_v20 = vmul.f32 %v2559_v16, %v1881_v12  ;;  %vm1903_vm1 = vweird.f32 %v2559_v16  ;;  %vm1889_vm13 = vmor %vm1887_vm12, %vm1888_vm10  ;;  %v2561_v47 = vpop.eup %2560 }
0x138d   :  { %v1884_v23 = vsub.f32 1.0, %v1883_v19  ;;  %vm1904_vm2 = vmor %vm1902_vm14, %vm1903_vm1 }
0x138e   :  { %v1899_v27 = vsub.f32 1.0, %v1898_v20 }
0x138f   :  { %v1885_v28 = vmul.f32 %v2557_v15, %v1884_v23 }
0x1390   :  { %v1900_v31 = vmul.f32 %v2559_v16, %v1899_v27 }
0x1391   :  { %v1886_v42 = vadd.f32 %v2557_v15, %v1885_v28 }
0x1392   :  { %v1901_v22 = vadd.f32 %v2559_v16, %v1900_v31 }
0x1393   :  { %v1890_v25 = vsel %vm1889_vm13, %v2557_v15, %v1886_v42 }
0x1394   :  { %v1895_v48 = vsel %vm1892_vm15, %v1894_v35, %v1890_v25  ;;  %v1905_v49 = vsel %vm1904_vm2, %v2559_v16, %v1901_v22 }
0x1395   :  { %v1910_v50 = vsel %vm1907_vm3, %v1909_v26, %v1905_v49  ;;  %v1919_v55 = vmul.f32 %v1917_v53, %v1895_v48 }
0x1396   :  { %v1913_v51 = vsel %vm34_vm7, %v2561_v47, %v1910_v50 }
0x1397   :  { %v1920_v52 = vmul.f32 %v1913_v51, %v1895_v48 }
0x1399   :  { %1922 = vrot.lane.b32.xlu1 %v1920_v52, %s2601_s2 }
0x140b   :  { %v1923_v56 = vpop.permute.xlu1 %1922 }
0x140c   :  { %v1925_v57 = vadd.f32 %v1923_v56, %v1919_v55 }
0x140e   :  { %2562 = vtanh.f32 %v1925_v57  ;;  %1929 = vrot.lane.b32.xlu0 %v1925_v57, %s2601_s2 }
0x1414   :  { %v2563_v58 = vpop.eup %2562 }
0x1415   :  { %v1927_v59 = vmul.f32 %v2563_v58, %v1913_v51 }
0x1417   :  { %1934 = vrot.lane.b32.xlu2 %v1927_v59, %s2601_s2 }
0x1471   :  { %v1935_v60 = vpop.permute.xlu2 %1934 }
0x1472   :  { %1937 = vst.msk [vmem:[#allocation4] sm:$0xff] %vm195_vm0, %v1935_v60 }
0x1479   :  { %v1940_v61 = vld [vmem:[#allocation4] sm:$0xff] }
0x147a   :  { %2389 = vmatmul.msk.f32.vlgmr.msra.gmra.mxu0 %vm195_vm0, %v1940_v61  ;;  %2390 = vmatmul.msk.f32.vlgmr.msra.gmra.mxu1 %vm195_vm0, %v1940_v61 }
0x1480   :  { %v1930_v44 = vpop.permute.xlu0 %1929 }
0x1481   :  { %1932 = vst.msk [vmem:[#allocation5] sm:$0xff] %vm195_vm0, %v1930_v44 }
0x1488   :  { %v2030_v33 = vld [vmem:[#allocation5] sm:$0xff] }
0x1489   :  { %2032 = vrot.lane.b32.xlu1 %v2030_v33, %s2601_s2 }
0x14f7   :  { %v1961_v43 = vpop.f32.mrf.mxu0  ;;  %v1981_v37 = vpop.f32.mrf.mxu1 }
0x14f8   :  { %v1984_v39 = vadd.f32 %v1961_v43, %v1268_v34  ;;  %v1985_v46 = vadd.f32 %v1981_v37, %v1309_v45 }
0x14fa   :  { %v1986_v3 = vadd.f32 %v1984_v39, %v3350_v4  ;;  %v1987_v0 = vadd.f32 %v1985_v46, %v3352_v5 }
0x14fb   :  { %v2033_v25 = vpop.permute.xlu1 %2032 }
0x14fc   :  { %v2391_v1 = vmul.f32 -1.442695, %v1986_v3  ;;  %v2392_v2 = vmul.f32 -1.442695, %v1987_v0 }
0x14fe   :  { %2564 = vpow2.f32 %v2391_v1 }
0x14ff   :  { %2566 = vpow2.f32 %v2392_v2 }
0x1504   :  { %v2565_v40 = vpop.eup %2564 }
0x1505   :  { %v2567_v6 = vpop.eup %2566  ;;  %v1996_v41 = vadd.f32 1.0, %v2565_v40 }
0x1506   :  { %v1997_v7 = vadd.f32 1.0, %v2567_v6 }
0x1507   :  { %2568 = vrcp.f32 %v1996_v41  ;;  %v2009_v21 = vand.u32 2147483648, %v1996_v41  ;;  %v2007_v15 = vand.u32 2147483647, %v1996_v41  ;;  %vm2003_vm6 = vweird.f32 %v1996_v41 }
0x1508   :  { %2570 = vrcp.f32 %v1997_v7  ;;  %v2024_v16 = vand.u32 2147483648, %v1997_v7  ;;  %v2022_v20 = vand.u32 2147483647, %v1997_v7  ;;  %vm2018_vm9 = vweird.f32 %v1997_v7 }
0x1509   :  { %2572 = vtanh.f32 %v1987_v0  ;;  %v2010_v24 = vor.u32 1.1754944e-38, %v2009_v21  ;;  %vm2008_vm10 = vcmp.eq.f32.partialorder %v2007_v15, 8.507059e+37 }
0x150a   :  { %v2025_v29 = vor.u32 1.1754944e-38, %v2024_v16  ;;  %vm2023_vm12 = vcmp.eq.f32.partialorder %v2022_v20, 8.507059e+37 }
0x150d   :  { %v2569_v8 = vpop.eup %2568 }
0x150e   :  { %v2571_v13 = vpop.eup %2570  ;;  %v1999_v14 = vmul.f32 %v2569_v8, %v1996_v41  ;;  %vm2004_vm4 = vweird.f32 %v2569_v8 }
0x150f   :  { %v2014_v17 = vmul.f32 %v2571_v13, %v1997_v7  ;;  %vm2019_vm5 = vweird.f32 %v2571_v13  ;;  %vm2005_vm8 = vmor %vm2003_vm6, %vm2004_vm4  ;;  %v2573_v30 = vpop.eup %2572 }
0x1510   :  { %v2000_v18 = vsub.f32 1.0, %v1999_v14  ;;  %vm2020_vm1 = vmor %vm2018_vm9, %vm2019_vm5 }
0x1511   :  { %v2015_v11 = vsub.f32 1.0, %v2014_v17 }
0x1512   :  { %v2001_v12 = vmul.f32 %v2569_v8, %v2000_v18 }
0x1513   :  { %v2016_v19 = vmul.f32 %v2571_v13, %v2015_v11 }
0x1514   :  { %v2002_v23 = vadd.f32 %v2569_v8, %v2001_v12 }
0x1515   :  { %v2017_v27 = vadd.f32 %v2571_v13, %v2016_v19 }
0x1516   :  { %v2006_v28 = vsel %vm2005_vm8, %v2569_v8, %v2002_v23 }
0x1517   :  { %v2011_v31 = vsel %vm2008_vm10, %v2010_v24, %v2006_v28  ;;  %v2021_v32 = vsel %vm2020_vm1, %v2571_v13, %v2017_v27 }
0x1518   :  { %v2026_v42 = vsel %vm2023_vm12, %v2025_v29, %v2021_v32  ;;  %v2035_v26 = vmul.f32 %v2033_v25, %v2011_v31 }
0x1519   :  { %v2029_v35 = vsel %vm34_vm7, %v2573_v30, %v2026_v42 }
0x151a   :  { %v2036_v22 = vmul.f32 %v2029_v35, %v2011_v31 }
0x151c   :  { %2038 = vrot.lane.b32.xlu2 %v2036_v22, %s2601_s2 }
0x1576   :  { %v2039_v47 = vpop.permute.xlu2 %2038 }
0x1577   :  { %v2041_v48 = vadd.f32 %v2039_v47, %v2035_v26 }
0x1579   :  { %2574 = vtanh.f32 %v2041_v48  ;;  %2045 = vrot.lane.b32.xlu1 %v2041_v48, %s2601_s2 }
0x157f   :  { %v2575_v49 = vpop.eup %2574 }
0x1580   :  { %v2043_v50 = vmul.f32 %v2575_v49, %v2029_v35 }
0x1582   :  { %2050 = vrot.lane.b32.xlu0 %v2043_v50, %s2601_s2 }
0x15eb   :  { %v2046_v51 = vpop.permute.xlu1 %2045 }
0x15ec   :  { %2048 = vst.msk [vmem:[#allocation5] sm:$0xff] %vm195_vm0, %v2046_v51 }
0x15f3   :  { %v2146_v52 = vld [vmem:[#allocation5] sm:$0xff] }
0x15f4   :  { %2148 = vrot.lane.b32.xlu2 %v2146_v52, %s2601_s2  ;;  %v2051_v53 = vpop.permute.xlu0 %2050 }
0x15f5   :  { %2053 = vst.msk [vmem:[#allocation4] sm:$0xff] %vm195_vm0, %v2051_v53 }
0x15fc   :  { %v2056_v55 = vld [vmem:[#allocation4] sm:$0xff] }
0x15fd   :  { %2393 = vmatmul.msk.f32.vlgmr.msrb.gmra.mxu2 %vm195_vm0, %v2056_v55  ;;  %2394 = vmatmul.msk.f32.vlgmr.msrb.gmra.mxu3 %vm195_vm0, %v2056_v55 }
0x164e   :  { %v2149_v20 = vpop.permute.xlu2 %2148 }
0x1680   :  { %v2077_v56 = vpop.f32.mrf.mxu2  ;;  %v2097_v57 = vpop.f32.mrf.mxu3 }
0x1681   :  { %v2100_v58 = vadd.f32 %v2077_v56, %v3462_v62  ;;  %v2101_v59 = vadd.f32 %v2097_v57, %v3464_v63 }
0x1683   :  { %v2102_v60 = vadd.f32 %v2100_v58, %v3350_v4  ;;  %v2103_v61 = vadd.f32 %v2101_v59, %v3352_v5 }
0x1685   :  { %v2395_v44 = vmul.f32 -1.442695, %v2102_v60  ;;  %v2396_v33 = vmul.f32 -1.442695, %v2103_v61 }
0x1687   :  { %2576 = vpow2.f32 %v2395_v44 }
0x1688   :  { %2578 = vpow2.f32 %v2396_v33 }
0x168d   :  { %v2577_v34 = vpop.eup %2576 }
0x168e   :  { %v2579_v45 = vpop.eup %2578  ;;  %v2112_v43 = vadd.f32 1.0, %v2577_v34 }
0x168f   :  { %v2113_v37 = vadd.f32 1.0, %v2579_v45 }
0x1690   :  { %2580 = vrcp.f32 %v2112_v43  ;;  %v2125_v63 = vand.u32 2147483648, %v2112_v43  ;;  %v2123_v40 = vand.u32 2147483647, %v2112_v43  ;;  %vm2119_vm15 = vweird.f32 %v2112_v43 }
0x1691   :  { %2582 = vrcp.f32 %v2113_v37  ;;  %v2140_v6 = vand.u32 2147483648, %v2113_v37  ;;  %v2138_v7 = vand.u32 2147483647, %v2113_v37  ;;  %vm2134_vm3 = vweird.f32 %v2113_v37 }
0x1692   :  { %2584 = vtanh.f32 %v2103_v61  ;;  %v2126_v13 = vor.u32 1.1754944e-38, %v2125_v63  ;;  %vm2124_vm4 = vcmp.eq.f32.partialorder %v2123_v40, 8.507059e+37 }
0x1693   :  { %v2141_v18 = vor.u32 1.1754944e-38, %v2140_v6  ;;  %vm2139_vm6 = vcmp.eq.f32.partialorder %v2138_v7, 8.507059e+37 }
0x1696   :  { %v2581_v39 = vpop.eup %2580 }
0x1697   :  { %v2583_v46 = vpop.eup %2582  ;;  %v2115_v3 = vmul.f32 %v2581_v39, %v2112_v43  ;;  %vm2120_vm13 = vweird.f32 %v2581_v39 }
0x1698   :  { %v2130_v62 = vmul.f32 %v2583_v46, %v2113_v37  ;;  %vm2135_vm14 = vweird.f32 %v2583_v46  ;;  %vm2121_vm2 = vmor %vm2119_vm15, %vm2120_vm13  ;;  %v2585_v21 = vpop.eup %2584 }
0x1699   :  { %v2116_v0 = vsub.f32 1.0, %v2115_v3  ;;  %vm2136_vm5 = vmor %vm2134_vm3, %vm2135_vm14 }
0x169a   :  { %v2131_v1 = vsub.f32 1.0, %v2130_v62 }
0x169b   :  { %v2117_v2 = vmul.f32 %v2581_v39, %v2116_v0 }
0x169c   :  { %v2132_v41 = vmul.f32 %v2583_v46, %v2131_v1 }
0x169d   :  { %v2118_v8 = vadd.f32 %v2581_v39, %v2117_v2 }
0x169e   :  { %v2133_v14 = vadd.f32 %v2583_v46, %v2132_v41 }
0x169f   :  { %v2122_v17 = vsel %vm2121_vm2, %v2581_v39, %v2118_v8 }
0x16a0   :  { %v2127_v11 = vsel %vm2124_vm4, %v2126_v13, %v2122_v17  ;;  %v2137_v12 = vsel %vm2136_vm5, %v2583_v46, %v2133_v14 }
0x16a1   :  { %v2142_v15 = vsel %vm2139_vm6, %v2141_v18, %v2137_v12  ;;  %v2151_v23 = vmul.f32 %v2149_v20, %v2127_v11 }
0x16a2   :  { %v2145_v16 = vsel %vm34_vm7, %v2585_v21, %v2142_v15 }
0x16a3   :  { %v2152_v19 = vmul.f32 %v2145_v16, %v2127_v11 }
0x16a5   :  { %2154 = vrot.lane.b32.xlu0 %v2152_v19, %s2601_s2 }
0x1717   :  { %v2155_v24 = vpop.permute.xlu0 %2154 }
0x1718   :  { %v2157_v27 = vadd.f32 %v2155_v24, %v2151_v23 }
0x171a   :  { %2586 = vtanh.f32 %v2157_v27  ;;  %2161 = vrot.lane.b32.xlu2 %v2157_v27, %s2601_s2 }
0x1720   :  { %v2587_v28 = vpop.eup %2586 }
0x1721   :  { %v2159_v29 = vmul.f32 %v2587_v28, %v2145_v16 }
0x1723   :  { %2166 = vrot.lane.b32.xlu1 %v2159_v29, %s2601_s2 }
0x1774   :  { %v2162_v30 = vpop.permute.xlu2 %2161 }
0x1775   :  { %2164 = vst.msk [vmem:[#allocation5] sm:$0xff] %vm195_vm0, %v2162_v30 }
0x177c   :  { %v2262_v31 = vld [vmem:[#allocation5] sm:$0xff] }
0x177d   :  { %2264 = vrot.lane.b32.xlu0 %v2262_v31, %s2601_s2 }
0x1795   :  { %v2167_v32 = vpop.permute.xlu1 %2166 }
0x1796   :  { %2169 = vst.msk [vmem:[#allocation4] sm:$0xff] %vm195_vm0, %v2167_v32 }
0x179d   :  { %v2172_v42 = vld [vmem:[#allocation4] sm:$0xff] }
0x179e   :  { %2397 = vmatmul.msk.f32.vlgmr.msrb.gmra.mxu0 %vm195_vm0, %v2172_v42  ;;  %2398 = vmatmul.msk.f32.vlgmr.msrb.gmra.mxu1 %vm195_vm0, %v2172_v42 }
0x17ef   :  { %v2265_v2 = vpop.permute.xlu0 %2264 }
0x181b   :  { %v2193_v35 = vpop.f32.mrf.mxu0  ;;  %v2213_v22 = vpop.f32.mrf.mxu1 }
0x181c   :  { %v2216_v25 = vadd.f32 %v2193_v35, %v3466_v9  ;;  %v2217_v26 = vadd.f32 %v2213_v22, %v3468_v10 }
0x181e   :  { %v2218_v47 = vadd.f32 %v2216_v25, %v3350_v4  ;;  %v2219_v48 = vadd.f32 %v2217_v26, %v3352_v5 }
0x1820   :  { %v2399_v49 = vmul.f32 -1.442695, %v2218_v47  ;;  %v2400_v50 = vmul.f32 -1.442695, %v2219_v48 }
0x1822   :  { %2588 = vpow2.f32 %v2399_v49 }
0x1823   :  { %2590 = vpow2.f32 %v2400_v50 }
0x1828   :  { %v2589_v51 = vpop.eup %2588 }
0x1829   :  { %v2591_v52 = vpop.eup %2590  ;;  %v2228_v53 = vadd.f32 1.0, %v2589_v51 }
0x182a   :  { %v2229_v55 = vadd.f32 1.0, %v2591_v52 }
0x182b   :  { %2592 = vrcp.f32 %v2228_v53  ;;  %v2241_v10 = vand.u32 2147483648, %v2228_v53  ;;  %v2239_v5 = vand.u32 2147483647, %v2228_v53  ;;  %vm2235_vm10 = vweird.f32 %v2228_v53 }
0x182c   :  { %2594 = vrcp.f32 %v2229_v55  ;;  %v2256_v61 = vand.u32 2147483648, %v2229_v55  ;;  %v2254_v33 = vand.u32 2147483647, %v2229_v55  ;;  %vm2250_vm12 = vweird.f32 %v2229_v55 }
0x182d   :  { %2596 = vtanh.f32 %v2219_v48  ;;  %v2242_v45 = vor.u32 1.1754944e-38, %v2241_v10  ;;  %vm2240_vm13 = vcmp.eq.f32.partialorder %v2239_v5, 8.507059e+37 }
0x182e   :  { %v2257_v39 = vor.u32 1.1754944e-38, %v2256_v61  ;;  %vm2255_vm15 = vcmp.eq.f32.partialorder %v2254_v33, 8.507059e+37 }
0x1831   :  { %v2593_v56 = vpop.eup %2592 }
0x1832   :  { %v2595_v57 = vpop.eup %2594  ;;  %v2231_v58 = vmul.f32 %v2593_v56, %v2228_v53  ;;  %vm2236_vm8 = vweird.f32 %v2593_v56 }
0x1833   :  { %v2246_v9 = vmul.f32 %v2595_v57, %v2229_v55  ;;  %vm2251_vm9 = vweird.f32 %v2595_v57  ;;  %vm2237_vm1 = vmor %vm2235_vm10, %vm2236_vm8  ;;  %v2597_v46 = vpop.eup %2596 }
0x1834   :  { %v2232_v59 = vsub.f32 1.0, %v2231_v58  ;;  %vm2252_vm14 = vmor %vm2250_vm12, %vm2251_vm9 }
0x1835   :  { %v2247_v4 = vsub.f32 1.0, %v2246_v9 }
0x1836   :  { %v2233_v60 = vmul.f32 %v2593_v56, %v2232_v59 }
0x1837   :  { %v2248_v44 = vmul.f32 %v2595_v57, %v2247_v4 }
0x1838   :  { %v2234_v34 = vadd.f32 %v2593_v56, %v2233_v60 }
0x1839   :  { %v2249_v43 = vadd.f32 %v2595_v57, %v2248_v44 }
0x183a   :  { %v2238_v37 = vsel %vm2237_vm1, %v2593_v56, %v2234_v34 }
0x183b   :  { %v2243_v3 = vsel %vm2240_vm13, %v2242_v45, %v2238_v37  ;;  %v2253_v62 = vsel %vm2252_vm14, %v2595_v57, %v2249_v43 }
0x183c   :  { %v2258_v0 = vsel %vm2255_vm15, %v2257_v39, %v2253_v62  ;;  %v2267_v40 = vmul.f32 %v2265_v2, %v2243_v3 }
0x183d   :  { %v2261_v63 = vsel %vm34_vm7, %v2597_v46, %v2258_v0 }
0x183e   :  { %v2268_v1 = vmul.f32 %v2261_v63, %v2243_v3 }
0x1840   :  { %2270 = vrot.lane.b32.xlu1 %v2268_v1, %s2601_s2 }
0x1848   :  { %1184 = vrot.lane.b32.xlu1 %v3319_v38, %s2602_s6 }
0x18b2   :  { %v2271_v6 = vpop.permute.xlu1 %2270 }
0x18b3   :  { %v2273_v41 = vadd.f32 %v2271_v6, %v2267_v40 }
0x18b5   :  { %2598 = vtanh.f32 %v2273_v41  ;;  %2277 = vrot.lane.b32.xlu2 %v2273_v41, %s2601_s2 }
0x18ba   :  { %v1185_v7 = vpop.permute.xlu1 %1184 }
0x18bb   :  { %v2599_v8 = vpop.eup %2598  ;;  %2367 = vst.msk [vmem:[%s3540_s7 + $0x8] sm:$0xff] %vm1181_vm11, %v1185_v7 }
0x18bc   :  { %v2275_v54 = vmul.f32 %v2599_v8, %v2261_v63 }
0x18bd   :  { %1191 = vrot.lane.b32.xlu2 %v3300_v36, %s2602_s6 }
0x18be   :  { %2282 = vrot.lane.b32.xlu0 %v2275_v54, %s2601_s2 }
0x190f   :  { %v2278_v38 = vpop.permute.xlu2 %2277 }
0x1910   :  { %2280 = vst.msk [vmem:[#allocation5] sm:$0xff] %vm195_vm0, %v2278_v38 }
0x1917   :  { %v1192_v13 = vpop.permute.xlu2 %1191  ;;  %v2287_v14 = vld [vmem:[#allocation5] sm:$0xff] }
0x1918   :  { %2368 = vst.msk [vmem:[%s3539_s8 + $0x8] sm:$0xff] %vm1181_vm11, %v1192_v13  ;;  %2299 = vrot.lane.b32.xlu1 %v2287_v14, %s2602_s6 }
0x1919   :  { %2403 = vst.msk [vmem:[%s3539_s8 + $0x10] sm:$0xff] %vm1181_vm11, %v2287_v14 }
0x1930   :  { %v2283_v17 = vpop.permute.xlu0 %2282 }
0x1931   :  { %2285 = vst.msk [vmem:[#allocation4] sm:$0xff] %vm195_vm0, %v2283_v17 }
0x1938   :  { %v2286_v36 = vld [vmem:[#allocation4] sm:$0xff] }
0x1939   :  { %2291 = vrot.lane.b32.xlu0 %v2286_v36, %s2602_s6  ;;  %2401 = vst.msk [vmem:[%s3540_s7 + $0x10] sm:$0xff] %vm1181_vm11, %v2286_v36 }
0x198a   :  { %v2300_v18 = vpop.permute.xlu1 %2299 }
0x198b   :  { %2404 = vst.msk [vmem:[%s3539_s8 + $0x18] sm:$0xff] %vm1181_vm11, %v2300_v18 }
0x19ab   :  { %v2292_v21 = vpop.permute.xlu0 %2291 }
0x19ac   :  { %2402 = vst.msk [vmem:[%s3540_s7 + $0x18] sm:$0xff] %vm1181_vm11, %v2292_v21 }

</bundles_post_ra>
